<compile_context>
chip_gen: v6e
topology: v6e:2x2x1
jax: 0.10.0
libtpu: 0.0.40
codegen_flags: <defaults>
</compile_context>

<pallas_src>
import numpy as np
import jax
import jax.numpy as jnp
from jax.experimental import pallas as pl
from jax.experimental.pallas import tpu as pltpu


# ----------------------------------------------------------------------------
# Host-side constants (pure function of `weight` and the static input shape).
# ----------------------------------------------------------------------------

def _bicubic_matrix(in_size: int, out_size: int) -> np.ndarray:
    """Dense (out_size, in_size) matrix reproducing PyTorch
    F.interpolate(mode='bicubic', align_corners=False) along one axis
    (Keys cubic kernel with A=-0.75, edge-clamped indices)."""
    A = -0.75
    scale = in_size / out_size
    out_idx = np.arange(out_size, dtype=np.float64)
    coord = (out_idx + 0.5) * scale - 0.5
    x0 = np.floor(coord).astype(np.int64)
    t = coord - x0

    def cubic1(x):  # |x| <= 1
        return ((A + 2.0) * x - (A + 3.0)) * x * x + 1.0

    def cubic2(x):  # 1 < |x| < 2
        return ((A * x - 5.0 * A) * x + 8.0 * A) * x - 4.0 * A

    w = np.stack([cubic2(t + 1.0), cubic1(t), cubic1(1.0 - t), cubic2(2.0 - t)], axis=1)
    idx = np.clip(x0[:, None] + np.arange(-1, 3)[None, :], 0, in_size - 1)
    M = np.zeros((out_size, in_size), dtype=np.float64)
    rows = np.repeat(np.arange(out_size, dtype=np.int64), 4)
    np.add.at(M, (rows, idx.ravel()), w.ravel())
    return M.astype(np.float32)


def _round_up(x: int, m: int) -> int:
    return ((x + m - 1) // m) * m


def _prepare_consts(weight, H: int, W: int):
    """Precompute resize matrices and the folded conv+H-resize matrices.
    Depends only on (weight, H, W): hoist to module init (review item 11)."""
    C = weight.shape[0]
    new_h = round(H * (512 / 360))
    new_w = round(W * (512 / 640))
    PW = _round_up(new_w, 128)                       # lane-dense output width

    ah = _bicubic_matrix(H, new_h)                   # (new_h, H)
    aw = _bicubic_matrix(W, new_w)                   # (new_w, W)
    # Fold the conv's zero padding in as zero border rows of the resize matrices.
    ahp = np.zeros((new_h + 2, H), np.float32); ahp[1:-1] = ah
    awp = np.zeros((new_w + 2, W), np.float32); awp[1:-1] = aw

    # Step-1 matrix: 3 dw-shifted column-resize taps packed along lanes, each
    # padded to 128 lanes (one fused matmul; 128-aligned per-tap slices; the
    # zero pad columns propagate exact zeros to the padded output columns).
    awT_cat = np.zeros((W, 3 * PW), np.float32)
    for dw in range(3):
        awT_cat[:, dw * PW: dw * PW + new_w] = awp[dw:dw + new_w, :].T

    # Step-2 matrices, one per column tap dw (no in-kernel concat needed):
    #   BH[dw, o*new_h + i, c*H + hi] = sum_dh w[o,c,dh,dw] * Ahp[i+dh, hi]
    ahp_sh = jnp.asarray(np.stack([ahp[dh:dh + new_h, :] for dh in range(3)], axis=0))
    bh3 = jnp.einsum('ocde,dih->eoich', weight.astype(jnp.float32), ahp_sh)
    bh3 = bh3.reshape(3, C * new_h, C * H)

    return dict(C=C, H=H, W=W, new_h=new_h, new_w=new_w, PW=PW,
                awT_cat=jnp.asarray(awT_cat), bh3=bh3)


# ----------------------------------------------------------------------------
# Generation-aware tiling / VMEM budgeting.
# ----------------------------------------------------------------------------

def _device_budget():
    """Returns (per-step VMEM budget bytes, vmem_limit cap bytes, dual_tensorcore?)."""
    kind = ""
    try:
        kind = jax.devices()[0].device_kind.lower()
    except Exception:
        pass
    if "v7" in kind:
        # v7x: 64 MiB VMEM per TensorCore, 2 TCs share the parallel grid.
        return 48 * 1024 * 1024, 60 * 1024 * 1024, True
    # v5e / v6e: 128 MiB VMEM, single TensorCore.
    return 100 * 1024 * 1024, 120 * 1024 * 1024, False


def _vmem_estimate(nb, rt, CH, W, PW, itemsize, bh_single, awt_single):
    in_block = nb * CH * W * itemsize            # input slab block
    out_block = nb * rt * PW * itemsize          # output block (lane-dense)
    awt = W * 3 * PW * 4                         # fused step-1 matrix
    bh_block = 3 * rt * CH * 4                   # per-tap folded conv+resize
    live = (nb * CH * W * 4                      # xr (f32 copy of input block)
            + nb * CH * 3 * PW * 4               # fused step-1 result R
            + 3 * rt * CH * 4                    # hoisted BH tap loads
            + 3 * rt * PW * 4)                   # acc + dot temporaries
    return (2 * in_block + 2 * out_block
            + (1 if awt_single else 2) * awt
            + (1 if bh_single else 2) * bh_block + live)


def _pick_row_tile(rows, CH, budget):
    """Largest BH row tile (divisor of rows, multiple of 8 unless full) whose
    resident block stays within ~1/4 of the VMEM budget (review item 4)."""
    def bh_bytes(rt):
        return 3 * rt * CH * 4
    if bh_bytes(rows) <= budget // 4:
        return rows
    for rt in range(rows, 0, -1):
        if rows % rt or rt % 8:
            continue
        if bh_bytes(rt) <= budget // 4:
            return rt
    return rows  # no clean divisor: keep whole (correct, just more resident VMEM)


def _pick_nb(N, CH, W, rt, PW, itemsize, budget, dual_tc, bh_single, awt_single):
    """Largest per-step batch that divides N, keeps 8-aligned sublane blocks,
    fits the VMEM budget, and (on v7x) keeps >=2 (preferably even) steps."""
    def fits(nb):
        return _vmem_estimate(nb, rt, CH, W, PW, itemsize, bh_single, awt_single) <= budget

    def aligned(nb):
        return nb == N or (nb * CH) % 8 == 0     # BlockSpec (8,128) rule

    max_nb = max(1, N // 2) if dual_tc else N
    candidates = [nb for nb in range(max_nb, 0, -1)
                  if N % nb == 0 and aligned(nb) and fits(nb)]
    if not candidates:
        # Fall back to one step covering everything (block == full array is
        # always layout-legal); budget becomes a soft limit.
        return N
    if dual_tc:
        even = [nb for nb in candidates if (N // nb) % 2 == 0]
        if even:
            return even[0]
    return candidates[0]


# ----------------------------------------------------------------------------
# Kernel.
# ----------------------------------------------------------------------------

def _make_kernel(nb: int, CH: int, PW: int):
    def kernel(awT_ref, bh_ref, x_ref, o_ref):
        # x_ref: (nb*C*H, W) -- batch, channels, rows fused into the matmul M dim.
        xr = x_ref[...].astype(jnp.float32)

        # Step 1: one fused W-axis bicubic-resize matmul for all 3 column taps
        # (conv zero-padding folded into zero border rows; each tap occupies a
        # 128-lane-aligned, zero-padded column group).
        r = jnp.dot(xr, awT_ref[...], preferred_element_type=jnp.float32)  # (nb*CH, 3*PW)

        # Hoist the per-tap folded conv + H-resize matrices out of the n loop.
        bh0 = bh_ref[0]
        bh1 = bh_ref[1]
        bh2 = bh_ref[2]                                                    # (RT, CH) each

        for n in range(nb):
            rn = r[n * CH:(n + 1) * CH, :]                                 # (CH, 3*PW)
            # Step 2: H-axis resize + full 3x3 conv as 3 accumulating MXU dots,
            # written straight into the output block (no concats, no temps).
            acc = jnp.dot(bh0, rn[:, 0:PW], preferred_element_type=jnp.float32)
            acc = acc + jnp.dot(bh1, rn[:, PW:2 * PW], preferred_element_type=jnp.float32)
            acc = acc + jnp.dot(bh2, rn[:, 2 * PW:3 * PW], preferred_element_type=jnp.float32)
            o_ref[n] = acc.astype(o_ref.dtype)                             # (RT, PW) lane-dense

    return kernel


# ----------------------------------------------------------------------------
# Wrapper.
# ----------------------------------------------------------------------------

def _apply(x, consts, single_buffer_consts: bool = True):
    C, H, W = consts["C"], consts["H"], consts["W"]
    new_h, new_w, PW = consts["new_h"], consts["new_w"], consts["PW"]
    N, Cx, Hx, Wx = x.shape
    assert (Cx, Hx, Wx) == (C, H, W), "input shape mismatch vs prepared constants"
    CH = C * H
    rows = C * new_h
    itemsize = jnp.dtype(x.dtype).itemsize

    budget, vmem_cap, dual_tc = _device_budget()
    rt = _pick_row_tile(rows, CH, budget)
    gt = rows // rt
    bh_const_idx = (gt == 1)   # BH block only constant across the grid if untiled

    nb = _pick_nb(N, CH, W, rt, PW, itemsize, budget, dual_tc,
                  bh_single=(single_buffer_consts and bh_const_idx),
                  awt_single=single_buffer_consts)
    gb = N // nb

    est = _vmem_estimate(nb, rt, CH, W, PW, itemsize,
                         single_buffer_consts and bh_const_idx, single_buffer_consts)
    vmem_limit = int(min(vmem_cap, max(32 * 1024 * 1024, int(est * 1.5))))

    x2 = x.reshape(N * CH, W)   # 2-D row-major slab (free reshape outside the kernel)
    kernel = _make_kernel(nb, CH, PW)

    def const_spec(shape, index_map, single):
        if single:
            # Constant index map => single-buffer the block (review item 5).
            return pl.BlockSpec(shape, index_map, pipeline_mode=pl.Buffered(1))
        return pl.BlockSpec(shape, index_map)

    def run(single):
        return pl.pallas_call(
            kernel,
            out_shape=jax.ShapeDtypeStruct((N, rows, PW), x.dtype),
            grid_spec=pltpu.PrefetchScalarGridSpec(
                num_scalar_prefetch=0,
                grid=(gb, gt),
                in_specs=[
                    const_spec((W, 3 * PW), lambda g, t: (0, 0), single),
                    const_spec((3, rt, CH), lambda g, t: (0, t, 0),
                               single and bh_const_idx),
                    pl.BlockSpec((nb * CH, W), lambda g, t: (g, 0)),
                ],
                out_specs=pl.BlockSpec((nb, rt, PW), lambda g, t: (g, t, 0)),
            ),
            compiler_params=pltpu.CompilerParams(
                dimension_semantics=("parallel", "parallel"),
                vmem_limit_bytes=vmem_limit,
            ),
        )(consts["awT_cat"], consts["bh3"], x2)

    if single_buffer_consts:
        try:
            out3 = run(True)
        except Exception:
            # pl.Buffered(1) unavailable on this jax version: fall back to the
            # default double-buffered constants (correctness unaffected).
            out3 = run(False)
    else:
        out3 = run(False)

    out = out3.reshape(N, C, new_h, PW)
    if PW != new_w:
        out = out[..., :new_w]   # strip lane padding (wrapper-side, cheap slice)
    return out


def make_landscape_to_square(weight, H: int, W: int):
    """Precompute all host-side constants once; returns x -> forward(x)."""
    consts = _prepare_consts(weight, H, W)

    def forward(x):
        return _apply(x, consts)

    return forward


def landscape_to_square(x, weight):
    """One-shot convenience wrapper (recomputes the host constants)."""
    return make_landscape_to_square(weight, x.shape[2], x.shape[3])(x)


if __name__ == "__main__":
    key = jax.random.PRNGKey(0)
    kx, kv = jax.random.split(key)

    # Landscape-ish small input: (N, C, H, W) = (4, 4, 18, 32) -> resized to 26x26.
    N, C, H, W = 4, 4, 18, 32
    x = jax.random.normal(kx, (N, C, H, W), jnp.float32)

    # weight_norm(nn.Conv2d(ch, ch, 3, 1, 1, bias=False)):
    #   effective weight = g * V / ||V||, with g = ||V|| at init (explicit here).
    v = jax.random.normal(kv, (C, C, 3, 3), jnp.float32) * 0.1
    norm = jnp.sqrt(jnp.sum(v * v, axis=(1, 2, 3), keepdims=True))
    g = norm
    weight = g * v / norm

    fwd = make_landscape_to_square(weight, H, W)   # host-side prep done once
    out = fwd(x)
    jax.block_until_ready(out)
    assert out.shape == (N, C, round(H * 512 / 360), round(W * 512 / 640))
    print("KERNEL_OK")
</pallas_src>

<mosaic_0001>
module attributes {stable_mosaic.version = 11 : i64} {
  func.func @kernel(%arg0: i32, %arg1: i32, %arg2: memref<32x384xf32, #tpu.memory_space<vmem>>, %arg3: memref<3x104x72xf32, #tpu.memory_space<vmem>>, %arg4: memref<288x32xf32, #tpu.memory_space<vmem>>, %arg5: memref<4x104x128xf32, #tpu.memory_space<vmem>>) attributes {dimension_semantics = [#tpu.dimension_semantics<parallel>, #tpu.dimension_semantics<parallel>], iteration_bounds = array<i64: 1, 1>, scalar_prefetch = 0 : i64, scratch_operands = 0 : i64, tpu.core_type = #tpu.core_type<tc>, window_params = [{pipeline_mode = #tpu.pipeline_mode<synchronous>, transform_indices = @transform_0, window_bounds = array<i64: 32, 384>}, {pipeline_mode = #tpu.pipeline_mode<synchronous>, transform_indices = @transform_1, window_bounds = array<i64: 3, 104, 72>}, {transform_indices = @transform_2, window_bounds = array<i64: 288, 32>}, {transform_indices = @transform_3, window_bounds = array<i64: 4, 104, 128>}]} {
    %c0 = arith.constant 0 : index
    %c0_0 = arith.constant 0 : index
    %0 = vector.load %arg4[%c0, %c0_0] : memref<288x32xf32, #tpu.memory_space<vmem>>, vector<288x32xf32>
    %c0_1 = arith.constant 0 : index
    %c0_2 = arith.constant 0 : index
    %1 = vector.load %arg2[%c0_1, %c0_2] : memref<32x384xf32, #tpu.memory_space<vmem>>, vector<32x384xf32>
    %cst = arith.constant dense<0.000000e+00> : vector<288x384xf32>
    %2 = tpu.matmul %0, %1, %cst {dimension_numbers = #tpu.dot_dimension_numbers<[1], [0], [0], [1], [0, 0, 1, 1], [], []>} : vector<288x32xf32>, vector<32x384xf32>, vector<288x384xf32> -> vector<288x384xf32>
    %c0_3 = arith.constant 0 : index
    %c0_4 = arith.constant 0 : index
    %c0_5 = arith.constant 0 : index
    %3 = vector.load %arg3[%c0_3, %c0_4, %c0_5] : memref<3x104x72xf32, #tpu.memory_space<vmem>>, vector<1x104x72xf32>
    %4 = vector.shape_cast %3 : vector<1x104x72xf32> to vector<104x72xf32>
    %c1 = arith.constant 1 : index
    %c0_6 = arith.constant 0 : index
    %c0_7 = arith.constant 0 : index
    %5 = vector.load %arg3[%c1, %c0_6, %c0_7] : memref<3x104x72xf32, #tpu.memory_space<vmem>>, vector<1x104x72xf32>
    %6 = vector.shape_cast %5 : vector<1x104x72xf32> to vector<104x72xf32>
    %c2 = arith.constant 2 : index
    %c0_8 = arith.constant 0 : index
    %c0_9 = arith.constant 0 : index
    %7 = vector.load %arg3[%c2, %c0_8, %c0_9] : memref<3x104x72xf32, #tpu.memory_space<vmem>>, vector<1x104x72xf32>
    %8 = vector.shape_cast %7 : vector<1x104x72xf32> to vector<104x72xf32>
    %9 = vector.extract_strided_slice %2 {offsets = [0, 0], sizes = [72, 384], strides = [1, 1]} : vector<288x384xf32> to vector<72x384xf32>
    %10 = vector.extract_strided_slice %9 {offsets = [0, 0], sizes = [72, 128], strides = [1, 1]} : vector<72x384xf32> to vector<72x128xf32>
    %cst_10 = arith.constant dense<0.000000e+00> : vector<104x128xf32>
    %11 = tpu.matmul %4, %10, %cst_10 {dimension_numbers = #tpu.dot_dimension_numbers<[1], [0], [0], [1], [0, 0, 1, 1], [], []>} : vector<104x72xf32>, vector<72x128xf32>, vector<104x128xf32> -> vector<104x128xf32>
    %12 = vector.extract_strided_slice %9 {offsets = [0, 128], sizes = [72, 128], strides = [1, 1]} : vector<72x384xf32> to vector<72x128xf32>
    %cst_11 = arith.constant dense<0.000000e+00> : vector<104x128xf32>
    %13 = tpu.matmul %6, %12, %cst_11 {dimension_numbers = #tpu.dot_dimension_numbers<[1], [0], [0], [1], [0, 0, 1, 1], [], []>} : vector<104x72xf32>, vector<72x128xf32>, vector<104x128xf32> -> vector<104x128xf32>
    %14 = arith.addf %11, %13 : vector<104x128xf32>
    %15 = vector.extract_strided_slice %9 {offsets = [0, 256], sizes = [72, 128], strides = [1, 1]} : vector<72x384xf32> to vector<72x128xf32>
    %cst_12 = arith.constant dense<0.000000e+00> : vector<104x128xf32>
    %16 = tpu.matmul %8, %15, %cst_12 {dimension_numbers = #tpu.dot_dimension_numbers<[1], [0], [0], [1], [0, 0, 1, 1], [], []>} : vector<104x72xf32>, vector<72x128xf32>, vector<104x128xf32> -> vector<104x128xf32>
    %17 = arith.addf %14, %16 : vector<104x128xf32>
    %c0_13 = arith.constant 0 : index
    %c0_14 = arith.constant 0 : index
    %c0_15 = arith.constant 0 : index
    %18 = vector.load %arg5[%c0_13, %c0_14, %c0_15] : memref<4x104x128xf32, #tpu.memory_space<vmem>>, vector<1x104x128xf32>
    %19 = vector.shape_cast %18 : vector<1x104x128xf32> to vector<104x128xf32>
    %20 = vector.shape_cast %17 : vector<104x128xf32> to vector<1x104x128xf32>
    tpu.vector_store %arg5[%c0_13, %c0_14, %c0_15], %20 {strides = array<i32>} : memref<4x104x128xf32, #tpu.memory_space<vmem>>, vector<1x104x128xf32>,
    %21 = vector.extract_strided_slice %2 {offsets = [72, 0], sizes = [72, 384], strides = [1, 1]} : vector<288x384xf32> to vector<72x384xf32>
    %22 = vector.extract_strided_slice %21 {offsets = [0, 0], sizes = [72, 128], strides = [1, 1]} : vector<72x384xf32> to vector<72x128xf32>
    %cst_16 = arith.constant dense<0.000000e+00> : vector<104x128xf32>
    %23 = tpu.matmul %4, %22, %cst_16 {dimension_numbers = #tpu.dot_dimension_numbers<[1], [0], [0], [1], [0, 0, 1, 1], [], []>} : vector<104x72xf32>, vector<72x128xf32>, vector<104x128xf32> -> vector<104x128xf32>
    %24 = vector.extract_strided_slice %21 {offsets = [0, 128], sizes = [72, 128], strides = [1, 1]} : vector<72x384xf32> to vector<72x128xf32>
    %cst_17 = arith.constant dense<0.000000e+00> : vector<104x128xf32>
    %25 = tpu.matmul %6, %24, %cst_17 {dimension_numbers = #tpu.dot_dimension_numbers<[1], [0], [0], [1], [0, 0, 1, 1], [], []>} : vector<104x72xf32>, vector<72x128xf32>, vector<104x128xf32> -> vector<104x128xf32>
    %26 = arith.addf %23, %25 : vector<104x128xf32>
    %27 = vector.extract_strided_slice %21 {offsets = [0, 256], sizes = [72, 128], strides = [1, 1]} : vector<72x384xf32> to vector<72x128xf32>
    %cst_18 = arith.constant dense<0.000000e+00> : vector<104x128xf32>
    %28 = tpu.matmul %8, %27, %cst_18 {dimension_numbers = #tpu.dot_dimension_numbers<[1], [0], [0], [1], [0, 0, 1, 1], [], []>} : vector<104x72xf32>, vector<72x128xf32>, vector<104x128xf32> -> vector<104x128xf32>
    %29 = arith.addf %26, %28 : vector<104x128xf32>
    %c1_19 = arith.constant 1 : index
    %c0_20 = arith.constant 0 : index
    %c0_21 = arith.constant 0 : index
    %30 = vector.load %arg5[%c1_19, %c0_20, %c0_21] : memref<4x104x128xf32, #tpu.memory_space<vmem>>, vector<1x104x128xf32>
    %31 = vector.shape_cast %30 : vector<1x104x128xf32> to vector<104x128xf32>
    %32 = vector.shape_cast %29 : vector<104x128xf32> to vector<1x104x128xf32>
    tpu.vector_store %arg5[%c1_19, %c0_20, %c0_21], %32 {strides = array<i32>} : memref<4x104x128xf32, #tpu.memory_space<vmem>>, vector<1x104x128xf32>,
    %33 = vector.extract_strided_slice %2 {offsets = [144, 0], sizes = [72, 384], strides = [1, 1]} : vector<288x384xf32> to vector<72x384xf32>
    %34 = vector.extract_strided_slice %33 {offsets = [0, 0], sizes = [72, 128], strides = [1, 1]} : vector<72x384xf32> to vector<72x128xf32>
    %cst_22 = arith.constant dense<0.000000e+00> : vector<104x128xf32>
    %35 = tpu.matmul %4, %34, %cst_22 {dimension_numbers = #tpu.dot_dimension_numbers<[1], [0], [0], [1], [0, 0, 1, 1], [], []>} : vector<104x72xf32>, vector<72x128xf32>, vector<104x128xf32> -> vector<104x128xf32>
    %36 = vector.extract_strided_slice %33 {offsets = [0, 128], sizes = [72, 128], strides = [1, 1]} : vector<72x384xf32> to vector<72x128xf32>
    %cst_23 = arith.constant dense<0.000000e+00> : vector<104x128xf32>
    %37 = tpu.matmul %6, %36, %cst_23 {dimension_numbers = #tpu.dot_dimension_numbers<[1], [0], [0], [1], [0, 0, 1, 1], [], []>} : vector<104x72xf32>, vector<72x128xf32>, vector<104x128xf32> -> vector<104x128xf32>
    %38 = arith.addf %35, %37 : vector<104x128xf32>
    %39 = vector.extract_strided_slice %33 {offsets = [0, 256], sizes = [72, 128], strides = [1, 1]} : vector<72x384xf32> to vector<72x128xf32>
    %cst_24 = arith.constant dense<0.000000e+00> : vector<104x128xf32>
    %40 = tpu.matmul %8, %39, %cst_24 {dimension_numbers = #tpu.dot_dimension_numbers<[1], [0], [0], [1], [0, 0, 1, 1], [], []>} : vector<104x72xf32>, vector<72x128xf32>, vector<104x128xf32> -> vector<104x128xf32>
    %41 = arith.addf %38, %40 : vector<104x128xf32>
    %c2_25 = arith.constant 2 : index
    %c0_26 = arith.constant 0 : index
    %c0_27 = arith.constant 0 : index
    %42 = vector.load %arg5[%c2_25, %c0_26, %c0_27] : memref<4x104x128xf32, #tpu.memory_space<vmem>>, vector<1x104x128xf32>
    %43 = vector.shape_cast %42 : vector<1x104x128xf32> to vector<104x128xf32>
    %44 = vector.shape_cast %41 : vector<104x128xf32> to vector<1x104x128xf32>
    tpu.vector_store %arg5[%c2_25, %c0_26, %c0_27], %44 {strides = array<i32>} : memref<4x104x128xf32, #tpu.memory_space<vmem>>, vector<1x104x128xf32>,
    %45 = vector.extract_strided_slice %2 {offsets = [216, 0], sizes = [72, 384], strides = [1, 1]} : vector<288x384xf32> to vector<72x384xf32>
    %46 = vector.extract_strided_slice %45 {offsets = [0, 0], sizes = [72, 128], strides = [1, 1]} : vector<72x384xf32> to vector<72x128xf32>
    %cst_28 = arith.constant dense<0.000000e+00> : vector<104x128xf32>
    %47 = tpu.matmul %4, %46, %cst_28 {dimension_numbers = #tpu.dot_dimension_numbers<[1], [0], [0], [1], [0, 0, 1, 1], [], []>} : vector<104x72xf32>, vector<72x128xf32>, vector<104x128xf32> -> vector<104x128xf32>
    %48 = vector.extract_strided_slice %45 {offsets = [0, 128], sizes = [72, 128], strides = [1, 1]} : vector<72x384xf32> to vector<72x128xf32>
    %cst_29 = arith.constant dense<0.000000e+00> : vector<104x128xf32>
    %49 = tpu.matmul %6, %48, %cst_29 {dimension_numbers = #tpu.dot_dimension_numbers<[1], [0], [0], [1], [0, 0, 1, 1], [], []>} : vector<104x72xf32>, vector<72x128xf32>, vector<104x128xf32> -> vector<104x128xf32>
    %50 = arith.addf %47, %49 : vector<104x128xf32>
    %51 = vector.extract_strided_slice %45 {offsets = [0, 256], sizes = [72, 128], strides = [1, 1]} : vector<72x384xf32> to vector<72x128xf32>
    %cst_30 = arith.constant dense<0.000000e+00> : vector<104x128xf32>
    %52 = tpu.matmul %8, %51, %cst_30 {dimension_numbers = #tpu.dot_dimension_numbers<[1], [0], [0], [1], [0, 0, 1, 1], [], []>} : vector<104x72xf32>, vector<72x128xf32>, vector<104x128xf32> -> vector<104x128xf32>
    %53 = arith.addf %50, %52 : vector<104x128xf32>
    %c3 = arith.constant 3 : index
    %c0_31 = arith.constant 0 : index
    %c0_32 = arith.constant 0 : index
    %54 = vector.load %arg5[%c3, %c0_31, %c0_32] : memref<4x104x128xf32, #tpu.memory_space<vmem>>, vector<1x104x128xf32>
    %55 = vector.shape_cast %54 : vector<1x104x128xf32> to vector<104x128xf32>
    %56 = vector.shape_cast %53 : vector<104x128xf32> to vector<1x104x128xf32>
    tpu.vector_store %arg5[%c3, %c0_31, %c0_32], %56 {strides = array<i32>} : memref<4x104x128xf32, #tpu.memory_space<vmem>>, vector<1x104x128xf32>,
    return
  }
  func.func @transform_0(%arg0: i32, %arg1: i32) -> (i32, i32) {
    %c0_i32 = arith.constant 0 : i32
    %c0_i32_0 = arith.constant 0 : i32
    %c0_i32_1 = arith.constant 0 : i32
    return %c0_i32, %c0_i32_0 : i32, i32
  }
  func.func @transform_1(%arg0: i32, %arg1: i32) -> (i32, i32, i32) {
    %c0_i32 = arith.constant 0 : i32
    %c0_i32_0 = arith.constant 0 : i32
    %c0_i32_1 = arith.constant 0 : i32
    return %c0_i32, %arg1, %c0_i32_0 : i32, i32, i32
  }
  func.func @transform_2(%arg0: i32, %arg1: i32) -> (i32, i32) {
    %c0_i32 = arith.constant 0 : i32
    %c0_i32_0 = arith.constant 0 : i32
    return %arg0, %c0_i32 : i32, i32
  }
  func.func @transform_3(%arg0: i32, %arg1: i32) -> (i32, i32, i32) {
    %c0_i32 = arith.constant 0 : i32
    %c0_i32_0 = arith.constant 0 : i32
    return %arg0, %arg1, %c0_i32 : i32, i32, i32
  }
}

module attributes {stable_mosaic.version = 11 : i64} {
  func.func @kernel(%arg0: i32, %arg1: i32, %arg2: memref<32x384xf32, #tpu.memory_space<vmem>>, %arg3: memref<3x104x72xf32, #tpu.memory_space<vmem>>, %arg4: memref<288x32xf32, #tpu.memory_space<vmem>>, %arg5: memref<4x104x128xf32, #tpu.memory_space<vmem>>) attributes {dimension_semantics = [#tpu.dimension_semantics<parallel>, #tpu.dimension_semantics<parallel>], iteration_bounds = array<i64: 1, 1>, scalar_prefetch = 0 : i64, scratch_operands = 0 : i64, tpu.core_type = #tpu.core_type<tc>, window_params = [{pipeline_mode = #tpu.pipeline_mode<synchronous>, transform_indices = @transform_0, window_bounds = array<i64: 32, 384>}, {transform_indices = @transform_1, window_bounds = array<i64: 3, 104, 72>}, {transform_indices = @transform_2, window_bounds = array<i64: 288, 32>}, {transform_indices = @transform_3, window_bounds = array<i64: 4, 104, 128>}]} {
    %c0 = arith.constant 0 : index
    %c0_0 = arith.constant 0 : index
    %0 = vector.load %arg4[%c0, %c0_0] : memref<288x32xf32, #tpu.memory_space<vmem>>, vector<288x32xf32>
    %c0_1 = arith.constant 0 : index
    %c0_2 = arith.constant 0 : index
    %1 = vector.load %arg2[%c0_1, %c0_2] : memref<32x384xf32, #tpu.memory_space<vmem>>, vector<32x384xf32>
    %cst = arith.constant dense<0.000000e+00> : vector<288x384xf32>
    %2 = tpu.matmul %0, %1, %cst {dimension_numbers = #tpu.dot_dimension_numbers<[1], [0], [0], [1], [0, 0, 1, 1], [], []>} : vector<288x32xf32>, vector<32x384xf32>, vector<288x384xf32> -> vector<288x384xf32>
    %c0_3 = arith.constant 0 : index
    %c0_4 = arith.constant 0 : index
    %c0_5 = arith.constant 0 : index
    %3 = vector.load %arg3[%c0_3, %c0_4, %c0_5] : memref<3x104x72xf32, #tpu.memory_space<vmem>>, vector<1x104x72xf32>
    %4 = vector.shape_cast %3 : vector<1x104x72xf32> to vector<104x72xf32>
    %c1 = arith.constant 1 : index
    %c0_6 = arith.constant 0 : index
    %c0_7 = arith.constant 0 : index
    %5 = vector.load %arg3[%c1, %c0_6, %c0_7] : memref<3x104x72xf32, #tpu.memory_space<vmem>>, vector<1x104x72xf32>
    %6 = vector.shape_cast %5 : vector<1x104x72xf32> to vector<104x72xf32>
    %c2 = arith.constant 2 : index
    %c0_8 = arith.constant 0 : index
    %c0_9 = arith.constant 0 : index
    %7 = vector.load %arg3[%c2, %c0_8, %c0_9] : memref<3x104x72xf32, #tpu.memory_space<vmem>>, vector<1x104x72xf32>
    %8 = vector.shape_cast %7 : vector<1x104x72xf32> to vector<104x72xf32>
    %9 = vector.extract_strided_slice %2 {offsets = [0, 0], sizes = [72, 384], strides = [1, 1]} : vector<288x384xf32> to vector<72x384xf32>
    %10 = vector.extract_strided_slice %9 {offsets = [0, 0], sizes = [72, 128], strides = [1, 1]} : vector<72x384xf32> to vector<72x128xf32>
    %cst_10 = arith.constant dense<0.000000e+00> : vector<104x128xf32>
    %11 = tpu.matmul %4, %10, %cst_10 {dimension_numbers = #tpu.dot_dimension_numbers<[1], [0], [0], [1], [0, 0, 1, 1], [], []>} : vector<104x72xf32>, vector<72x128xf32>, vector<104x128xf32> -> vector<104x128xf32>
    %12 = vector.extract_strided_slice %9 {offsets = [0, 128], sizes = [72, 128], strides = [1, 1]} : vector<72x384xf32> to vector<72x128xf32>
    %cst_11 = arith.constant dense<0.000000e+00> : vector<104x128xf32>
    %13 = tpu.matmul %6, %12, %cst_11 {dimension_numbers = #tpu.dot_dimension_numbers<[1], [0], [0], [1], [0, 0, 1, 1], [], []>} : vector<104x72xf32>, vector<72x128xf32>, vector<104x128xf32> -> vector<104x128xf32>
    %14 = arith.addf %11, %13 : vector<104x128xf32>
    %15 = vector.extract_strided_slice %9 {offsets = [0, 256], sizes = [72, 128], strides = [1, 1]} : vector<72x384xf32> to vector<72x128xf32>
    %cst_12 = arith.constant dense<0.000000e+00> : vector<104x128xf32>
    %16 = tpu.matmul %8, %15, %cst_12 {dimension_numbers = #tpu.dot_dimension_numbers<[1], [0], [0], [1], [0, 0, 1, 1], [], []>} : vector<104x72xf32>, vector<72x128xf32>, vector<104x128xf32> -> vector<104x128xf32>
    %17 = arith.addf %14, %16 : vector<104x128xf32>
    %c0_13 = arith.constant 0 : index
    %c0_14 = arith.constant 0 : index
    %c0_15 = arith.constant 0 : index
    %18 = vector.load %arg5[%c0_13, %c0_14, %c0_15] : memref<4x104x128xf32, #tpu.memory_space<vmem>>, vector<1x104x128xf32>
    %19 = vector.shape_cast %18 : vector<1x104x128xf32> to vector<104x128xf32>
    %20 = vector.shape_cast %17 : vector<104x128xf32> to vector<1x104x128xf32>
    tpu.vector_store %arg5[%c0_13, %c0_14, %c0_15], %20 {strides = array<i32>} : memref<4x104x128xf32, #tpu.memory_space<vmem>>, vector<1x104x128xf32>,
    %21 = vector.extract_strided_slice %2 {offsets = [72, 0], sizes = [72, 384], strides = [1, 1]} : vector<288x384xf32> to vector<72x384xf32>
    %22 = vector.extract_strided_slice %21 {offsets = [0, 0], sizes = [72, 128], strides = [1, 1]} : vector<72x384xf32> to vector<72x128xf32>
    %cst_16 = arith.constant dense<0.000000e+00> : vector<104x128xf32>
    %23 = tpu.matmul %4, %22, %cst_16 {dimension_numbers = #tpu.dot_dimension_numbers<[1], [0], [0], [1], [0, 0, 1, 1], [], []>} : vector<104x72xf32>, vector<72x128xf32>, vector<104x128xf32> -> vector<104x128xf32>
    %24 = vector.extract_strided_slice %21 {offsets = [0, 128], sizes = [72, 128], strides = [1, 1]} : vector<72x384xf32> to vector<72x128xf32>
    %cst_17 = arith.constant dense<0.000000e+00> : vector<104x128xf32>
    %25 = tpu.matmul %6, %24, %cst_17 {dimension_numbers = #tpu.dot_dimension_numbers<[1], [0], [0], [1], [0, 0, 1, 1], [], []>} : vector<104x72xf32>, vector<72x128xf32>, vector<104x128xf32> -> vector<104x128xf32>
    %26 = arith.addf %23, %25 : vector<104x128xf32>
    %27 = vector.extract_strided_slice %21 {offsets = [0, 256], sizes = [72, 128], strides = [1, 1]} : vector<72x384xf32> to vector<72x128xf32>
    %cst_18 = arith.constant dense<0.000000e+00> : vector<104x128xf32>
    %28 = tpu.matmul %8, %27, %cst_18 {dimension_numbers = #tpu.dot_dimension_numbers<[1], [0], [0], [1], [0, 0, 1, 1], [], []>} : vector<104x72xf32>, vector<72x128xf32>, vector<104x128xf32> -> vector<104x128xf32>
    %29 = arith.addf %26, %28 : vector<104x128xf32>
    %c1_19 = arith.constant 1 : index
    %c0_20 = arith.constant 0 : index
    %c0_21 = arith.constant 0 : index
    %30 = vector.load %arg5[%c1_19, %c0_20, %c0_21] : memref<4x104x128xf32, #tpu.memory_space<vmem>>, vector<1x104x128xf32>
    %31 = vector.shape_cast %30 : vector<1x104x128xf32> to vector<104x128xf32>
    %32 = vector.shape_cast %29 : vector<104x128xf32> to vector<1x104x128xf32>
    tpu.vector_store %arg5[%c1_19, %c0_20, %c0_21], %32 {strides = array<i32>} : memref<4x104x128xf32, #tpu.memory_space<vmem>>, vector<1x104x128xf32>,
    %33 = vector.extract_strided_slice %2 {offsets = [144, 0], sizes = [72, 384], strides = [1, 1]} : vector<288x384xf32> to vector<72x384xf32>
    %34 = vector.extract_strided_slice %33 {offsets = [0, 0], sizes = [72, 128], strides = [1, 1]} : vector<72x384xf32> to vector<72x128xf32>
    %cst_22 = arith.constant dense<0.000000e+00> : vector<104x128xf32>
    %35 = tpu.matmul %4, %34, %cst_22 {dimension_numbers = #tpu.dot_dimension_numbers<[1], [0], [0], [1], [0, 0, 1, 1], [], []>} : vector<104x72xf32>, vector<72x128xf32>, vector<104x128xf32> -> vector<104x128xf32>
    %36 = vector.extract_strided_slice %33 {offsets = [0, 128], sizes = [72, 128], strides = [1, 1]} : vector<72x384xf32> to vector<72x128xf32>
    %cst_23 = arith.constant dense<0.000000e+00> : vector<104x128xf32>
    %37 = tpu.matmul %6, %36, %cst_23 {dimension_numbers = #tpu.dot_dimension_numbers<[1], [0], [0], [1], [0, 0, 1, 1], [], []>} : vector<104x72xf32>, vector<72x128xf32>, vector<104x128xf32> -> vector<104x128xf32>
    %38 = arith.addf %35, %37 : vector<104x128xf32>
    %39 = vector.extract_strided_slice %33 {offsets = [0, 256], sizes = [72, 128], strides = [1, 1]} : vector<72x384xf32> to vector<72x128xf32>
    %cst_24 = arith.constant dense<0.000000e+00> : vector<104x128xf32>
    %40 = tpu.matmul %8, %39, %cst_24 {dimension_numbers = #tpu.dot_dimension_numbers<[1], [0], [0], [1], [0, 0, 1, 1], [], []>} : vector<104x72xf32>, vector<72x128xf32>, vector<104x128xf32> -> vector<104x128xf32>
    %41 = arith.addf %38, %40 : vector<104x128xf32>
    %c2_25 = arith.constant 2 : index
    %c0_26 = arith.constant 0 : index
    %c0_27 = arith.constant 0 : index
    %42 = vector.load %arg5[%c2_25, %c0_26, %c0_27] : memref<4x104x128xf32, #tpu.memory_space<vmem>>, vector<1x104x128xf32>
    %43 = vector.shape_cast %42 : vector<1x104x128xf32> to vector<104x128xf32>
    %44 = vector.shape_cast %41 : vector<104x128xf32> to vector<1x104x128xf32>
    tpu.vector_store %arg5[%c2_25, %c0_26, %c0_27], %44 {strides = array<i32>} : memref<4x104x128xf32, #tpu.memory_space<vmem>>, vector<1x104x128xf32>,
    %45 = vector.extract_strided_slice %2 {offsets = [216, 0], sizes = [72, 384], strides = [1, 1]} : vector<288x384xf32> to vector<72x384xf32>
    %46 = vector.extract_strided_slice %45 {offsets = [0, 0], sizes = [72, 128], strides = [1, 1]} : vector<72x384xf32> to vector<72x128xf32>
    %cst_28 = arith.constant dense<0.000000e+00> : vector<104x128xf32>
    %47 = tpu.matmul %4, %46, %cst_28 {dimension_numbers = #tpu.dot_dimension_numbers<[1], [0], [0], [1], [0, 0, 1, 1], [], []>} : vector<104x72xf32>, vector<72x128xf32>, vector<104x128xf32> -> vector<104x128xf32>
    %48 = vector.extract_strided_slice %45 {offsets = [0, 128], sizes = [72, 128], strides = [1, 1]} : vector<72x384xf32> to vector<72x128xf32>
    %cst_29 = arith.constant dense<0.000000e+00> : vector<104x128xf32>
    %49 = tpu.matmul %6, %48, %cst_29 {dimension_numbers = #tpu.dot_dimension_numbers<[1], [0], [0], [1], [0, 0, 1, 1], [], []>} : vector<104x72xf32>, vector<72x128xf32>, vector<104x128xf32> -> vector<104x128xf32>
    %50 = arith.addf %47, %49 : vector<104x128xf32>
    %51 = vector.extract_strided_slice %45 {offsets = [0, 256], sizes = [72, 128], strides = [1, 1]} : vector<72x384xf32> to vector<72x128xf32>
    %cst_30 = arith.constant dense<0.000000e+00> : vector<104x128xf32>
    %52 = tpu.matmul %8, %51, %cst_30 {dimension_numbers = #tpu.dot_dimension_numbers<[1], [0], [0], [1], [0, 0, 1, 1], [], []>} : vector<104x72xf32>, vector<72x128xf32>, vector<104x128xf32> -> vector<104x128xf32>
    %53 = arith.addf %50, %52 : vector<104x128xf32>
    %c3 = arith.constant 3 : index
    %c0_31 = arith.constant 0 : index
    %c0_32 = arith.constant 0 : index
    %54 = vector.load %arg5[%c3, %c0_31, %c0_32] : memref<4x104x128xf32, #tpu.memory_space<vmem>>, vector<1x104x128xf32>
    %55 = vector.shape_cast %54 : vector<1x104x128xf32> to vector<104x128xf32>
    %56 = vector.shape_cast %53 : vector<104x128xf32> to vector<1x104x128xf32>
    tpu.vector_store %arg5[%c3, %c0_31, %c0_32], %56 {strides = array<i32>} : memref<4x104x128xf32, #tpu.memory_space<vmem>>, vector<1x104x128xf32>,
    return
  }
  func.func @transform_0(%arg0: i32, %arg1: i32) -> (i32, i32) {
    %c0_i32 = arith.constant 0 : i32
    %c0_i32_0 = arith.constant 0 : i32
    %c0_i32_1 = arith.constant 0 : i32
    return %c0_i32, %c0_i32_0 : i32, i32
  }
  func.func @transform_1(%arg0: i32, %arg1: i32) -> (i32, i32, i32) {
    %c0_i32 = arith.constant 0 : i32
    %c0_i32_0 = arith.constant 0 : i32
    %c0_i32_1 = arith.constant 0 : i32
    return %c0_i32, %arg1, %c0_i32_0 : i32, i32, i32
  }
  func.func @transform_2(%arg0: i32, %arg1: i32) -> (i32, i32) {
    %c0_i32 = arith.constant 0 : i32
    %c0_i32_0 = arith.constant 0 : i32
    return %arg0, %c0_i32 : i32, i32
  }
  func.func @transform_3(%arg0: i32, %arg1: i32) -> (i32, i32, i32) {
    %c0_i32 = arith.constant 0 : i32
    %c0_i32_0 = arith.constant 0 : i32
    return %arg0, %arg1, %c0_i32 : i32, i32, i32
  }
}

</mosaic_0001>

<bundles_post_ra>
// kernel: tpu_custom_call.1
= control target key start
LH: loop header
LB: loop body
LE: loop exit
PB: predicated region body
PF: predicated region fallthrough
CT: control target
= control target key end

     0   :  { %vm63_vm0 = vcmask 261120   ;;  %v3915_v14 = vmov 0.0   ;;  %s5699_s0 = inlined_call_operand.vmem [shape: f32[32,384], index: 0, kind: input, shape index: {}]   ;;  %s5700_s1 = inlined_call_operand.vmem [shape: f32[3,104,72], index: 1, kind: input, shape index: {}]   ;;  %s5701_s2 = inlined_call_operand.vmem [shape: f32[288,32], index: 2, kind: input, shape index: {}]   ;;  %s5702_s3 = inlined_call_operand.hbm [shape: f32[4,104,128], index: 3, kind: output, shape index: {}]  }
   0x1   :  { %v61_v0 = vld [vmem:[%s5699_s0 + $0x50] sm:$0xff]  ;;  %v62_v1 = vld [vmem:[%s5699_s0 + $0x58] sm:$0xff]  ;;  %v60_v2 = vld [vmem:[%s5699_s0 + $0x48] sm:$0xff]  ;;  %236 = vmatprep.mubr.f32.mxu0 %v3915_v14 }
   0x2   :  { %196 = vmatprep.subr.mxu0 %v61_v0  ;;  %3098 = vmatprep.subr.mxu1 %v62_v1  ;;  %v58_v3 = vld [vmem:[%s5699_s0 + $0x38] sm:$0xff]  ;;  %v59_v4 = vld [vmem:[%s5699_s0 + $0x40] sm:$0xff]  ;;  %v57_v5 = vld [vmem:[%s5699_s0 + $0x30] sm:$0xff] }
   0x3   :  { %197 = vmatpush1.msra.mxu0 %v60_v2  ;;  %3099 = vmatpush3.msra.mxu1 %v62_v1  ;;  %v55_v6 = vld [vmem:[%s5699_s0 + $0x20] sm:$0xff]  ;;  %v56_v7 = vld [vmem:[%s5699_s0 + $0x28] sm:$0xff]  ;;  %v54_v8 = vld [vmem:[%s5699_s0 + $0x18] sm:$0xff] }
   0x4   :  { %198 = vmatprep.subr.mxu0 %v58_v3  ;;  %3100 = vmatprep.subr.mxu1 %v59_v4  ;;  %v52_v9 = vld [vmem:[%s5699_s0 + $0x8] sm:$0xff]  ;;  %v53_v10 = vld [vmem:[%s5699_s0 + $0x10] sm:$0xff]  ;;  %v51_v11 = vld [vmem:[%s5699_s0] sm:$0xff] }
   0x5   :  { %199 = vmatpush1.msra.mxu0 %v57_v5  ;;  %3101 = vmatpush3.msra.mxu1 %v59_v4  ;;  %v15_v12 = vld [vmem:[%s5701_s2] sm:$0xff]  ;;  %v16_v13 = vld [vmem:[%s5701_s2 + $0x8] sm:$0xff]  ;;  %v17_v15 = vld [vmem:[%s5701_s2 + $0x10] sm:$0xff] }
   0x6   :  { %200 = vmatprep.subr.mxu0 %v55_v6  ;;  %3102 = vmatprep.subr.mxu1 %v56_v7  ;;  %v18_v16 = vld [vmem:[%s5701_s2 + $0x18] sm:$0xff]  ;;  %v19_v17 = vld [vmem:[%s5701_s2 + $0x20] sm:$0xff] }
   0x7   :  { %201 = vmatpush1.msra.mxu0 %v54_v8  ;;  %3103 = vmatpush3.msra.mxu1 %v56_v7 }
   0x8   :  { %202 = vmatprep.subr.mxu0 %v52_v9  ;;  %3104 = vmatprep.subr.mxu1 %v53_v10 }
   0x9   :  { %203 = vmatpush1.msra.mxu0 %v51_v11  ;;  %3105 = vmatpush3.msra.mxu1 %v53_v10 }
   0xa   :  { %3106 = vmatprep.mubr.msk.f32.mxu1 %vm63_vm0, %v15_v12  ;;  %2540 = vmatmul.mubr.msk.f32.vlgmr.msra.gmra.mxu0 %vm63_vm0, %v15_v12 }
   0xb   :  { %3107 = vmatmul.mubr.msk.f32.vlgmr.msra.gmra.mxu1 %vm63_vm0, %v16_v13  ;;  %242 = vmatprep.mubr.f32.mxu0 %v3915_v14 }
   0xc   :  { %3109 = vmatprep.mubr.msk.f32.mxu1 %vm63_vm0, %v17_v15  ;;  %3274 = vmatprep.subr.mxu0 %v3915_v14 }
   0xd   :  { %3160 = vmatprep.subr.mxu1 %v3915_v14 }
   0xe   :  { %8 = vsyncpa [#allocation3], 0  ;;  %2541 = vmatmul.mubr.msk.f32.gmra.mxu0 %vm63_vm0, %v16_v13  ;;  %v20_v18 = vld [vmem:[%s5701_s2 + $0x28] sm:$0xff]  ;;  %v21_v19 = vld [vmem:[%s5701_s2 + $0x30] sm:$0xff]  ;;  %vm3916_vm1 = vmmov 0   ;;  %vm739_vm2 = vcmask 588800  }
   0xf   :  { %3110 = vmatmul.mubr.msk.f32.gmra.mxu1 %vm63_vm0, %v18_v16  ;;  %248 = vmatprep.mubr.f32.mxu0 %v3915_v14  ;;  %v22_v20 = vld [vmem:[%s5701_s2 + $0x38] sm:$0xff]  ;;  %v23_v21 = vld [vmem:[%s5701_s2 + $0x40] sm:$0xff]  ;;  %v24_v22 = vld [vmem:[%s5701_s2 + $0x48] sm:$0xff] }
  0x10   :  { %3112 = vmatprep.mubr.msk.f32.mxu1 %vm63_vm0, %v19_v17  ;;  %v25_v23 = vld [vmem:[%s5701_s2 + $0x50] sm:$0xff]  ;;  %v26_v24 = vld [vmem:[%s5701_s2 + $0x58] sm:$0xff]  ;;  %v27_v25 = vld [vmem:[%s5701_s2 + $0x60] sm:$0xff] }
  0x11   :  { %v28_v26 = vld [vmem:[%s5701_s2 + $0x68] sm:$0xff]  ;;  %v29_v27 = vld [vmem:[%s5701_s2 + $0x70] sm:$0xff]  ;;  %v30_v28 = vld [vmem:[%s5701_s2 + $0x78] sm:$0xff] }
  0x12   :  { %2542 = vmatmul.mubr.msk.f32.gmra.mxu0 %vm63_vm0, %v17_v15  ;;  %v31_v29 = vld [vmem:[%s5701_s2 + $0x80] sm:$0xff]  ;;  %v32_v30 = vld [vmem:[%s5701_s2 + $0x88] sm:$0xff]  ;;  %v33_v31 = vld [vmem:[%s5701_s2 + $0x90] sm:$0xff] }
  0x13   :  { %3113 = vmatmul.mubr.msk.f32.gmra.mxu1 %vm63_vm0, %v20_v18  ;;  %254 = vmatprep.mubr.f32.mxu0 %v3915_v14  ;;  %v34_v32 = vld [vmem:[%s5701_s2 + $0x98] sm:$0xff]  ;;  %v35_v33 = vld [vmem:[%s5701_s2 + $0xa0] sm:$0xff]  ;;  %v36_v34 = vld [vmem:[%s5701_s2 + $0xa8] sm:$0xff] }
  0x14   :  { %3115 = vmatprep.mubr.msk.f32.mxu1 %vm63_vm0, %v21_v19  ;;  %v37_v35 = vld [vmem:[%s5701_s2 + $0xb0] sm:$0xff]  ;;  %v38_v36 = vld [vmem:[%s5701_s2 + $0xb8] sm:$0xff]  ;;  %v39_v37 = vld [vmem:[%s5701_s2 + $0xc0] sm:$0xff] }
  0x15   :  { %v40_v38 = vld [vmem:[%s5701_s2 + $0xc8] sm:$0xff]  ;;  %v41_v39 = vld [vmem:[%s5701_s2 + $0xd0] sm:$0xff]  ;;  %v42_v40 = vld [vmem:[%s5701_s2 + $0xd8] sm:$0xff] }
  0x16   :  { %2543 = vmatmul.mubr.msk.f32.gmra.mxu0 %vm63_vm0, %v18_v16  ;;  %v43_v41 = vld [vmem:[%s5701_s2 + $0xe0] sm:$0xff]  ;;  %v44_v42 = vld [vmem:[%s5701_s2 + $0xe8] sm:$0xff]  ;;  %v45_v43 = vld [vmem:[%s5701_s2 + $0xf0] sm:$0xff] }
  0x17   :  { %3116 = vmatmul.mubr.msk.f32.gmra.mxu1 %vm63_vm0, %v22_v20  ;;  %260 = vmatprep.mubr.f32.mxu0 %v3915_v14  ;;  %v46_v44 = vld [vmem:[%s5701_s2 + $0xf8] sm:$0xff]  ;;  %v47_v45 = vld [vmem:[%s5701_s2 + $0x100] sm:$0xff]  ;;  %v48_v46 = vld [vmem:[%s5701_s2 + $0x108] sm:$0xff] }
  0x18   :  { %3118 = vmatprep.mubr.msk.f32.mxu1 %vm63_vm0, %v23_v21  ;;  %v49_v47 = vld [vmem:[%s5701_s2 + $0x110] sm:$0xff]  ;;  %v50_v48 = vld [vmem:[%s5701_s2 + $0x118] sm:$0xff] }
  0x19   :  { %v4230_v12 = vld [vmem:[%s5700_s1 + $0xd0] sm:$0xff]  ;;  %v4243_v16 = vld [vmem:[%s5700_s1 + $0xd8] sm:$0xff] }
  0x1a   :  { %2544 = vmatmul.mubr.msk.f32.gmra.mxu0 %vm63_vm0, %v19_v17 }
  0x1b   :  { %3119 = vmatmul.mubr.msk.f32.gmra.mxu1 %vm63_vm0, %v24_v22  ;;  %266 = vmatprep.mubr.f32.mxu0 %v3915_v14 }
  0x1c   :  { %3121 = vmatprep.mubr.msk.f32.mxu1 %vm63_vm0, %v25_v23 }
  0x1e   :  { %2545 = vmatmul.mubr.msk.f32.gmra.mxu0 %vm63_vm0, %v20_v18 }
  0x1f   :  { %3122 = vmatmul.mubr.msk.f32.gmra.mxu1 %vm63_vm0, %v26_v24  ;;  %272 = vmatprep.mubr.f32.mxu0 %v3915_v14 }
  0x20   :  { %3124 = vmatprep.mubr.msk.f32.mxu1 %vm63_vm0, %v27_v25 }
  0x22   :  { %2546 = vmatmul.mubr.msk.f32.gmra.mxu0 %vm63_vm0, %v21_v19  ;;  %v4259_v19 = vld [vmem:[%s5700_s1 + $0xe0] sm:$0xff] }
  0x23   :  { %3125 = vmatmul.mubr.msk.f32.gmra.mxu1 %vm63_vm0, %v28_v26  ;;  %278 = vmatprep.mubr.f32.mxu0 %v3915_v14 }
  0x24   :  { %3127 = vmatprep.mubr.msk.f32.mxu1 %vm63_vm0, %v29_v27 }
  0x26   :  { %2547 = vmatmul.mubr.msk.f32.gmra.mxu0 %vm63_vm0, %v22_v20 }
  0x27   :  { %3128 = vmatmul.mubr.msk.f32.gmra.mxu1 %vm63_vm0, %v30_v28  ;;  %284 = vmatprep.mubr.f32.mxu0 %v3915_v14 }
  0x28   :  { %3130 = vmatprep.mubr.msk.f32.mxu1 %vm63_vm0, %v31_v29 }
  0x2a   :  { %2548 = vmatmul.mubr.msk.f32.gmra.mxu0 %vm63_vm0, %v23_v21 }
  0x2b   :  { %3131 = vmatmul.mubr.msk.f32.gmra.mxu1 %vm63_vm0, %v32_v30  ;;  %290 = vmatprep.mubr.f32.mxu0 %v3915_v14 }
  0x2c   :  { %3133 = vmatprep.mubr.msk.f32.mxu1 %vm63_vm0, %v33_v31 }
  0x2e   :  { %2549 = vmatmul.mubr.msk.f32.gmra.mxu0 %vm63_vm0, %v24_v22  ;;  %v4274_v22 = vld [vmem:[%s5700_s1 + $0xe8] sm:$0xff] }
  0x2f   :  { %3134 = vmatmul.mubr.msk.f32.gmra.mxu1 %vm63_vm0, %v34_v32  ;;  %296 = vmatprep.mubr.f32.mxu0 %v3915_v14 }
  0x30   :  { %3136 = vmatprep.mubr.msk.f32.mxu1 %vm63_vm0, %v35_v33 }
  0x32   :  { %2550 = vmatmul.mubr.msk.f32.gmra.mxu0 %vm63_vm0, %v25_v23 }
  0x33   :  { %3137 = vmatmul.mubr.msk.f32.gmra.mxu1 %vm63_vm0, %v36_v34  ;;  %302 = vmatprep.mubr.f32.mxu0 %v3915_v14 }
  0x34   :  { %3139 = vmatprep.mubr.msk.f32.mxu1 %vm63_vm0, %v37_v35 }
  0x36   :  { %2551 = vmatmul.mubr.msk.f32.gmra.mxu0 %vm63_vm0, %v26_v24 }
  0x37   :  { %3140 = vmatmul.mubr.msk.f32.gmra.mxu1 %vm63_vm0, %v38_v36  ;;  %308 = vmatprep.mubr.f32.mxu0 %v3915_v14 }
  0x38   :  { %3142 = vmatprep.mubr.msk.f32.mxu1 %vm63_vm0, %v39_v37 }
  0x3a   :  { %2552 = vmatmul.mubr.msk.f32.gmra.mxu0 %vm63_vm0, %v27_v25  ;;  %v4289_v25 = vld [vmem:[%s5700_s1 + $0x68] sm:$0xff] }
  0x3b   :  { %3143 = vmatmul.mubr.msk.f32.gmra.mxu1 %vm63_vm0, %v40_v38  ;;  %314 = vmatprep.mubr.f32.mxu0 %v3915_v14 }
  0x3c   :  { %3145 = vmatprep.mubr.msk.f32.mxu1 %vm63_vm0, %v41_v39 }
  0x3e   :  { %2553 = vmatmul.mubr.msk.f32.gmra.mxu0 %vm63_vm0, %v28_v26 }
  0x3f   :  { %3146 = vmatmul.mubr.msk.f32.gmra.mxu1 %vm63_vm0, %v42_v40  ;;  %320 = vmatprep.mubr.f32.mxu0 %v3915_v14 }
  0x40   :  { %3148 = vmatprep.mubr.msk.f32.mxu1 %vm63_vm0, %v43_v41 }
  0x42   :  { %2554 = vmatmul.mubr.msk.f32.gmra.mxu0 %vm63_vm0, %v29_v27  ;;  %v4300_v27 = vld [vmem:[%s5700_s1 + $0xf0] sm:$0xff] }
  0x43   :  { %326 = vmatprep.mubr.f32.mxu0 %v3915_v14  ;;  %3149 = vmatmul.mubr.msk.f32.gmra.mxu1 %vm63_vm0, %v44_v42 }
  0x44   :  { %3151 = vmatprep.mubr.msk.f32.mxu1 %vm63_vm0, %v45_v43 }
  0x46   :  { %2555 = vmatmul.mubr.msk.f32.gmra.mxu0 %vm63_vm0, %v30_v28 }
  0x47   :  { %332 = vmatprep.mubr.f32.mxu0 %v3915_v14  ;;  %3152 = vmatmul.mubr.msk.f32.gmra.mxu1 %vm63_vm0, %v46_v44 }
  0x48   :  { %3154 = vmatprep.mubr.msk.f32.mxu1 %vm63_vm0, %v47_v45 }
  0x4a   :  { %2556 = vmatmul.mubr.msk.f32.gmra.mxu0 %vm63_vm0, %v31_v29  ;;  %v4312_v29 = vld [vmem:[%s5700_s1 + $0x70] sm:$0xff] }
  0x4b   :  { %338 = vmatprep.mubr.f32.mxu0 %v3915_v14  ;;  %3155 = vmatmul.mubr.msk.f32.gmra.mxu1 %vm63_vm0, %v48_v46 }
  0x4c   :  { %3157 = vmatprep.mubr.msk.f32.mxu1 %vm63_vm0, %v49_v47 }
  0x4e   :  { %2557 = vmatmul.mubr.msk.f32.gmra.mxu0 %vm63_vm0, %v32_v30 }
  0x4f   :  { %344 = vmatprep.mubr.f32.mxu0 %v3915_v14  ;;  %3158 = vmatmul.mubr.msk.f32.gmra.mxu1 %vm63_vm0, %v50_v48 }
  0x50   :  { %3178 = vmatprep.mubr.msk.f32.mxu1 %vm3916_vm1, %v3915_v14 }
  0x52   :  { %2558 = vmatmul.mubr.msk.f32.gmra.mxu0 %vm63_vm0, %v33_v31  ;;  %v4324_v31 = vld [vmem:[%s5700_s1 + $0xf8] sm:$0xff] }
  0x53   :  { %350 = vmatprep.mubr.f32.mxu0 %v3915_v14 }
  0x56   :  { %2559 = vmatmul.mubr.msk.f32.gmra.mxu0 %vm63_vm0, %v34_v32 }
  0x57   :  { %356 = vmatprep.mubr.f32.mxu0 %v3915_v14 }
  0x5a   :  { %2560 = vmatmul.mubr.msk.f32.gmra.mxu0 %vm63_vm0, %v35_v33  ;;  %v4337_v33 = vld [vmem:[%s5700_s1 + $0x78] sm:$0xff] }
  0x5b   :  { %362 = vmatprep.mubr.f32.mxu0 %v3915_v14 }
  0x5e   :  { %2561 = vmatmul.mubr.msk.f32.gmra.mxu0 %vm63_vm0, %v36_v34 }
  0x5f   :  { %368 = vmatprep.mubr.f32.mxu0 %v3915_v14 }
  0x62   :  { %2562 = vmatmul.mubr.msk.f32.gmra.mxu0 %vm63_vm0, %v37_v35  ;;  %v4350_v35 = vld [vmem:[%s5700_s1 + $0x100] sm:$0xff] }
  0x63   :  { %374 = vmatprep.mubr.f32.mxu0 %v3915_v14 }
  0x66   :  { %2563 = vmatmul.mubr.msk.f32.gmra.mxu0 %vm63_vm0, %v38_v36 }
  0x67   :  { %380 = vmatprep.mubr.f32.mxu0 %v3915_v14 }
  0x6a   :  { %2564 = vmatmul.mubr.msk.f32.gmra.mxu0 %vm63_vm0, %v39_v37  ;;  %v4361_v37 = vld [vmem:[%s5700_s1 + $0x80] sm:$0xff] }
  0x6b   :  { %386 = vmatprep.mubr.f32.mxu0 %v3915_v14 }
  0x6e   :  { %2565 = vmatmul.mubr.msk.f32.gmra.mxu0 %vm63_vm0, %v40_v38 }
  0x6f   :  { %392 = vmatprep.mubr.f32.mxu0 %v3915_v14 }
  0x72   :  { %2566 = vmatmul.mubr.msk.f32.gmra.mxu0 %vm63_vm0, %v41_v39  ;;  %v4374_v39 = vld [vmem:[%s5700_s1 + $0x108] sm:$0xff] }
  0x73   :  { %398 = vmatprep.mubr.f32.mxu0 %v3915_v14 }
  0x76   :  { %2567 = vmatmul.mubr.msk.f32.gmra.mxu0 %vm63_vm0, %v42_v40 }
  0x77   :  { %404 = vmatprep.mubr.f32.mxu0 %v3915_v14 }
  0x7a   :  { %2568 = vmatmul.mubr.msk.f32.gmra.mxu0 %vm63_vm0, %v43_v41  ;;  %v4385_v41 = vld [vmem:[%s5700_s1 + $0x88] sm:$0xff] }
  0x7b   :  { %410 = vmatprep.mubr.f32.mxu0 %v3915_v14 }
  0x7e   :  { %2569 = vmatmul.mubr.msk.f32.gmra.mxu0 %vm63_vm0, %v44_v42 }
  0x7f   :  { %416 = vmatprep.mubr.f32.mxu0 %v3915_v14 }
  0x82   :  { %2570 = vmatmul.mubr.msk.f32.gmra.mxu0 %vm63_vm0, %v45_v43  ;;  %v4398_v43 = vld [vmem:[%s5700_s1 + $0x110] sm:$0xff] }
  0x83   :  { %422 = vmatprep.mubr.f32.mxu0 %v3915_v14 }
  0x86   :  { %2571 = vmatmul.mubr.msk.f32.gmra.mxu0 %vm63_vm0, %v46_v44 }
  0x87   :  { %428 = vmatprep.mubr.f32.mxu0 %v3915_v14 }
  0x8a   :  { %2572 = vmatmul.mubr.msk.f32.gmra.mxu0 %vm63_vm0, %v47_v45  ;;  %v4409_v45 = vld [vmem:[%s5700_s1 + $0x90] sm:$0xff] }
  0x8b   :  { %434 = vmatprep.mubr.f32.mxu0 %v3915_v14 }
  0x8e   :  { %2573 = vmatmul.mubr.msk.f32.gmra.mxu0 %vm63_vm0, %v48_v46 }
  0x8f   :  { %440 = vmatprep.mubr.f32.mxu0 %v3915_v14 }
  0x92   :  { %2574 = vmatmul.mubr.msk.f32.gmra.mxu0 %vm63_vm0, %v49_v47  ;;  %v4421_v47 = vld [vmem:[%s5700_s1 + $0x118] sm:$0xff] }
  0x93   :  { %446 = vmatprep.mubr.f32.mxu0 %v3915_v14 }
  0x96   :  { %2575 = vmatmul.mubr.msk.f32.gmra.mxu0 %vm63_vm0, %v50_v48 }
  0x97   :  { %3292 = vmatprep.mubr.msk.f32.mxu0 %vm3916_vm1, %v3915_v14 }
  0xca   :  { %v4198_v49 = vpop.f32.mrf.mxu0 }
  0xcb   :  { %v3108_v50 = vpop.f32.mrf.mxu1 }
  0xcc   :  { %v4200_v51 = vpop.f32.mrf.mxu0 }
  0xcd   :  { %v519_v52 = vpop.f32.mrf.mxu1 }
  0xce   :  { %v4202_v53 = vpop.f32.mrf.mxu0 }
  0xcf   :  { %v3111_v54 = vpop.f32.mrf.mxu1 }
  0xd0   :  { %v4204_v55 = vpop.f32.mrf.mxu0 }
  0xd1   :  { %v529_v56 = vpop.f32.mrf.mxu1 }
  0xd2   :  { %v4206_v57 = vpop.f32.mrf.mxu0 }
  0xd3   :  { %v3114_v58 = vpop.f32.mrf.mxu1 }
  0xd4   :  { %v4208_v59 = vpop.f32.mrf.mxu0 }
  0xd5   :  { %v539_v60 = vpop.f32.mrf.mxu1 }
  0xd6   :  { %v4210_v61 = vpop.f32.mrf.mxu0 }
  0xd7   :  { %v3117_v62 = vpop.f32.mrf.mxu1 }
  0xd8   :  { %v258_v63 = vpop.f32.mrf.mxu0 }
  0xd9   :  { %v549_v0 = vpop.f32.mrf.mxu1 }
  0xda   :  { %v4212_v1 = vpop.f32.mrf.mxu0 }
  0xdb   :  { %v4214_v2 = vpop.f32.mrf.mxu1 }
  0xdc   :  { %v264_v3 = vpop.f32.mrf.mxu0 }
  0xdd   :  { %v559_v4 = vpop.f32.mrf.mxu1 }
  0xde   :  { %3275 = vmatpush3.msra.mxu0 %v559_v4  ;;  %v4216_v5 = vpop.f32.mrf.mxu0  ;;  %v4528_v4 = vld [vmem:[%s5700_s1] sm:$0xff] }
  0xdf   :  { %3276 = vmatprep.subr.mxu0 %v3915_v14  ;;  %5725 = vst [vmem:[#allocation7_spill] sm:$0xff] %v4528_v4 }
  0xe0   :  { %3277 = vmatpush3.msra.mxu0 %v3117_v62  ;;  %v270_v6 = vpop.f32.mrf.mxu0  ;;  %v4503_v62 = vld [vmem:[%s5700_s1 + $0x130] sm:$0xff] }
  0xe1   :  { %3278 = vmatprep.subr.mxu0 %v3915_v14  ;;  %5724 = vst [vmem:[#allocation6_spill] sm:$0xff] %v4503_v62 }
  0xe2   :  { %3279 = vmatpush3.msra.mxu0 %v549_v0  ;;  %v4220_v7 = vpop.f32.mrf.mxu0 }
  0xe3   :  { %3280 = vmatprep.subr.mxu0 %v3915_v14 }
  0xe4   :  { %3281 = vmatpush3.msra.mxu0 %v3114_v58  ;;  %v276_v8 = vpop.f32.mrf.mxu0 }
  0xe5   :  { %3282 = vmatprep.subr.mxu0 %v3915_v14 }
  0xe6   :  { %3283 = vmatpush3.msra.mxu0 %v539_v60  ;;  %v280_v9 = vpop.f32.mrf.mxu0  ;;  %v4489_v60 = vld [vmem:[%s5700_s1 + $0xa8] sm:$0xff] }
  0xe7   :  { %3284 = vmatprep.subr.mxu0 %v3915_v14 }
  0xe8   :  { %3285 = vmatpush3.msra.mxu0 %v3111_v54  ;;  %v282_v10 = vpop.f32.mrf.mxu0 }
  0xe9   :  { %3286 = vmatprep.subr.mxu0 %v3915_v14 }
  0xea   :  { %3287 = vmatpush3.msra.mxu0 %v529_v56  ;;  %v286_v11 = vpop.f32.mrf.mxu0 }
  0xeb   :  { %3288 = vmatprep.subr.mxu0 %v3915_v14 }
  0xec   :  { %3289 = vmatpush3.msra.mxu0 %v3108_v50  ;;  %v288_v13 = vpop.f32.mrf.mxu0  ;;  %v4435_v50 = vld [vmem:[%s5700_s1 + $0x98] sm:$0xff] }
  0xed   :  { %3290 = vmatprep.subr.mxu0 %v3915_v14  ;;  %3161 = vmatpush3.msra.mxu1 %v288_v13  ;;  %v4569_v13 = vld [vmem:[%s5700_s1 + $0xc0] sm:$0xff] }
  0xee   :  { %3291 = vmatpush3.msra.mxu0 %v519_v52  ;;  %3162 = vmatprep.subr.mxu1 %v3915_v14  ;;  %v4236_v15 = vpop.f32.mrf.mxu0  ;;  %v4447_v52 = vld [vmem:[%s5700_s1 + $0x120] sm:$0xff] }
  0xef   :  { %3293 = vmatmul.mubr.msk.f32.vlgmr.msra.gmra.mxu0 %vm739_vm2, %v4230_v12  ;;  %3163 = vmatpush3.msra.mxu1 %v282_v10 }
  0xf0   :  { %3295 = vmatprep.mubr.msk.f32.mxu0 %vm3916_vm1, %v3915_v14  ;;  %3164 = vmatprep.subr.mxu1 %v3915_v14  ;;  %v4246_v17 = vpop.f32.mrf.mxu0 }
  0xf1   :  { %3388 = vmatprep.subr.mxu0 %v3915_v14  ;;  %3165 = vmatpush3.msra.mxu1 %v276_v8 }
  0xf2   :  { %3166 = vmatprep.subr.mxu1 %v3915_v14  ;;  %v4252_v18 = vpop.f32.mrf.mxu0 }
  0xf3   :  { %3296 = vmatmul.mubr.msk.f32.gmra.mxu0 %vm739_vm2, %v4243_v16  ;;  %3167 = vmatpush3.msra.mxu1 %v270_v6 }
  0xf4   :  { %3298 = vmatprep.mubr.msk.f32.mxu0 %vm3916_vm1, %v3915_v14  ;;  %3168 = vmatprep.subr.mxu1 %v3915_v14  ;;  %v4262_v20 = vpop.f32.mrf.mxu0 }
  0xf5   :  { %3169 = vmatpush3.msra.mxu1 %v264_v3 }
  0xf6   :  { %3170 = vmatprep.subr.mxu1 %v3915_v14  ;;  %v4267_v21 = vpop.f32.mrf.mxu0 }
  0xf7   :  { %3299 = vmatmul.mubr.msk.f32.gmra.mxu0 %vm739_vm2, %v4259_v19  ;;  %3171 = vmatpush3.msra.mxu1 %v258_v63 }
  0xf8   :  { %3301 = vmatprep.mubr.msk.f32.mxu0 %vm3916_vm1, %v3915_v14  ;;  %3172 = vmatprep.subr.mxu1 %v3915_v14  ;;  %v4277_v23 = vpop.f32.mrf.mxu0 }
  0xf9   :  { %3173 = vmatpush3.msra.mxu1 %v4208_v59 }
  0xfa   :  { %3174 = vmatprep.subr.mxu1 %v3915_v14  ;;  %v4283_v24 = vpop.f32.mrf.mxu0 }
  0xfb   :  { %3302 = vmatmul.mubr.msk.f32.gmra.mxu0 %vm739_vm2, %v4274_v22  ;;  %3175 = vmatpush3.msra.mxu1 %v4204_v55  ;;  %v4461_v55 = vld [vmem:[%s5700_s1 + $0xa0] sm:$0xff] }
  0xfc   :  { %3304 = vmatprep.mubr.msk.f32.mxu0 %vm3916_vm1, %v3915_v14  ;;  %3176 = vmatprep.subr.mxu1 %v3915_v14  ;;  %v4294_v26 = vpop.f32.mrf.mxu0 }
  0xfd   :  { %3177 = vmatpush3.msra.mxu1 %v4200_v51 }
  0xfe   :  { %3179 = vmatmul.mubr.msk.f32.vlgmr.msra.gmra.mxu1 %vm739_vm2, %v4289_v25  ;;  %3217 = vmatprep.subr.mxu1 %v3915_v14  ;;  %v4305_v28 = vpop.f32.mrf.mxu0 }
  0xff   :  { %3218 = vmatpush3.msra.mxu1 %v286_v11  ;;  %3181 = vmatprep.mubr.msk.f32.mxu1 %vm3916_vm1, %v3915_v14 }
 0x100   :  { %3219 = vmatprep.subr.mxu1 %v3915_v14  ;;  %3305 = vmatmul.mubr.msk.f32.gmra.mxu0 %vm739_vm2, %v4300_v27  ;;  %v4317_v30 = vpop.f32.mrf.mxu0 }
 0x101   :  { %3220 = vmatpush3.msra.mxu1 %v280_v9  ;;  %3307 = vmatprep.mubr.msk.f32.mxu0 %vm3916_vm1, %v3915_v14  ;;  %v4554_v9 = vld [vmem:[%s5700_s1 + $0x8] sm:$0xff] }
 0x102   :  { %3182 = vmatmul.mubr.msk.f32.gmra.mxu1 %vm739_vm2, %v4312_v29  ;;  %3221 = vmatprep.subr.mxu1 %v3915_v14  ;;  %v4329_v32 = vpop.f32.mrf.mxu0  ;;  %5726 = vst [vmem:[#allocation8_spill] sm:$0xff] %v4554_v9 }
 0x103   :  { %3222 = vmatpush3.msra.mxu1 %v4220_v7  ;;  %3184 = vmatprep.mubr.msk.f32.mxu1 %vm3916_vm1, %v3915_v14  ;;  %v4545_v7 = vld [vmem:[%s5700_s1 + $0xb8] sm:$0xff] }
 0x104   :  { %3223 = vmatprep.subr.mxu1 %v3915_v14  ;;  %3308 = vmatmul.mubr.msk.f32.gmra.mxu0 %vm739_vm2, %v4324_v31  ;;  %v4342_v34 = vpop.f32.mrf.mxu0 }
 0x105   :  { %3224 = vmatpush3.msra.mxu1 %v4216_v5  ;;  %3310 = vmatprep.mubr.msk.f32.mxu0 %vm3916_vm1, %v3915_v14 }
 0x106   :  { %3185 = vmatmul.mubr.msk.f32.gmra.mxu1 %vm739_vm2, %v4337_v33  ;;  %3225 = vmatprep.subr.mxu1 %v3915_v14  ;;  %v328_v36 = vpop.f32.mrf.mxu0 }
 0x107   :  { %3226 = vmatpush3.msra.mxu1 %v4212_v1  ;;  %3187 = vmatprep.mubr.msk.f32.mxu1 %vm3916_vm1, %v3915_v14  ;;  %v4517_v1 = vld [vmem:[%s5700_s1 + $0xb0] sm:$0xff] }
 0x108   :  { %3227 = vmatprep.subr.mxu1 %v3915_v14  ;;  %3311 = vmatmul.mubr.msk.f32.gmra.mxu0 %vm739_vm2, %v4350_v35  ;;  %v4366_v38 = vpop.f32.mrf.mxu0 }
 0x109   :  { %3228 = vmatpush3.msra.mxu1 %v4210_v61  ;;  %3313 = vmatprep.mubr.msk.f32.mxu0 %vm3916_vm1, %v3915_v14 }
 0x10a   :  { %3188 = vmatmul.mubr.msk.f32.gmra.mxu1 %vm739_vm2, %v4361_v37  ;;  %3229 = vmatprep.subr.mxu1 %v3915_v14  ;;  %v334_v40 = vpop.f32.mrf.mxu0 }
 0x10b   :  { %3230 = vmatpush3.msra.mxu1 %v4206_v57  ;;  %3190 = vmatprep.mubr.msk.f32.mxu1 %vm3916_vm1, %v3915_v14  ;;  %v4475_v57 = vld [vmem:[%s5700_s1 + $0x128] sm:$0xff] }
 0x10c   :  { %3231 = vmatprep.subr.mxu1 %v3915_v14  ;;  %3314 = vmatmul.mubr.msk.f32.gmra.mxu0 %vm739_vm2, %v4374_v39  ;;  %v4390_v42 = vpop.f32.mrf.mxu0  ;;  %5723 = vst [vmem:[#allocation5_spill] sm:$0xff] %v4475_v57 }
 0x10d   :  { %3232 = vmatpush3.msra.mxu1 %v4202_v53  ;;  %3316 = vmatprep.mubr.msk.f32.mxu0 %vm3916_vm1, %v3915_v14 }
 0x10e   :  { %3191 = vmatmul.mubr.msk.f32.gmra.mxu1 %vm739_vm2, %v4385_v41  ;;  %3233 = vmatprep.subr.mxu1 %v3915_v14  ;;  %v340_v44 = vpop.f32.mrf.mxu0 }
 0x10f   :  { %3234 = vmatpush3.msra.mxu1 %v4198_v49  ;;  %3193 = vmatprep.mubr.msk.f32.mxu1 %vm3916_vm1, %v3915_v14  ;;  %v4428_v49 = vpop.f32.mrf.mxu1 }
 0x110   :  { %3317 = vmatmul.mubr.msk.f32.gmra.mxu0 %vm739_vm2, %v4398_v43  ;;  %v4413_v46 = vpop.f32.mrf.mxu0  ;;  %3331 = vmatprep.subr.mxu1 %v3915_v14 }
 0x111   :  { %3319 = vmatprep.mubr.msk.f32.mxu0 %vm3916_vm1, %v3915_v14  ;;  %3389 = vmatpush3.msra.mxu0 %v340_v44  ;;  %v4454_v54 = vpop.f32.mrf.mxu1 }
 0x112   :  { %3194 = vmatmul.mubr.msk.f32.gmra.mxu1 %vm739_vm2, %v4409_v45  ;;  %3390 = vmatprep.subr.mxu0 %v3915_v14  ;;  %v4426_v48 = vpop.f32.mrf.mxu0 }
 0x113   :  { %3196 = vmatprep.mubr.msk.f32.mxu1 %vm3916_vm1, %v3915_v14  ;;  %3391 = vmatpush3.msra.mxu0 %v334_v40  ;;  %v4482_v59 = vpop.f32.mrf.mxu1  ;;  %v4615_v40 = vld [vmem:[%s5700_s1 + $0x20] sm:$0xff] }
 0x114   :  { %3320 = vmatmul.mubr.msk.f32.gmra.mxu0 %vm739_vm2, %v4421_v47  ;;  %3392 = vmatprep.subr.mxu0 %v3915_v14  ;;  %v4440_v51 = vpop.f32.mrf.mxu0 }
 0x115   :  { %3322 = vmatprep.mubr.msk.f32.mxu0 %vm3916_vm1, %v3915_v14  ;;  %3393 = vmatpush3.msra.mxu0 %v328_v36  ;;  %v4510_v0 = vpop.f32.mrf.mxu1 }
 0x116   :  { %3197 = vmatmul.mubr.msk.f32.gmra.mxu1 %vm739_vm2, %v4435_v50  ;;  %3394 = vmatprep.subr.mxu0 %v3915_v14  ;;  %v4452_v53 = vpop.f32.mrf.mxu0 }
 0x117   :  { %3199 = vmatprep.mubr.msk.f32.mxu1 %vm3916_vm1, %v3915_v14  ;;  %3395 = vmatpush3.msra.mxu0 %v4329_v32  ;;  %v4538_v6 = vpop.f32.mrf.mxu1 }
 0x118   :  { %3323 = vmatmul.mubr.msk.f32.gmra.mxu0 %vm739_vm2, %v4447_v52  ;;  %3396 = vmatprep.subr.mxu0 %v3915_v14  ;;  %v4467_v56 = vpop.f32.mrf.mxu0 }
 0x119   :  { %3325 = vmatprep.mubr.msk.f32.mxu0 %vm3916_vm1, %v3915_v14  ;;  %3397 = vmatpush3.msra.mxu0 %v4305_v28  ;;  %v4562_v11 = vpop.f32.mrf.mxu1  ;;  %v4598_v28 = vld [vmem:[%s5700_s1 + $0x18] sm:$0xff] }
 0x11a   :  { %3200 = vmatmul.mubr.msk.f32.gmra.mxu1 %vm739_vm2, %v4461_v55  ;;  %3398 = vmatprep.subr.mxu0 %v3915_v14  ;;  %v4480_v58 = vpop.f32.mrf.mxu0  ;;  %5728 = vst [vmem:[#allocation10_spill] sm:$0xff] %v4598_v28 }
 0x11b   :  { %3202 = vmatprep.mubr.msk.f32.mxu1 %vm3916_vm1, %v3915_v14  ;;  %3399 = vmatpush3.msra.mxu0 %v4283_v24  ;;  %v4591_v24 = vld [vmem:[%s5700_s1 + $0xc8] sm:$0xff] }
 0x11c   :  { %3326 = vmatmul.mubr.msk.f32.gmra.mxu0 %vm739_vm2, %v4475_v57  ;;  %3400 = vmatprep.subr.mxu0 %v3915_v14  ;;  %v4495_v61 = vpop.f32.mrf.mxu0  ;;  %v4633_v57 = vld [vmem:[%s5700_s1 + $0x28] sm:$0xff] }
 0x11d   :  { %3328 = vmatprep.mubr.msk.f32.mxu0 %vm3916_vm1, %v3915_v14  ;;  %3401 = vmatpush3.msra.mxu0 %v4267_v21  ;;  %v4584_v21 = vpop.f32.mrf.mxu1  ;;  %5729 = vst [vmem:[#allocation11_spill] sm:$0xff] %v4633_v57 }
 0x11e   :  { %3203 = vmatmul.mubr.msk.f32.gmra.mxu1 %vm739_vm2, %v4489_v60  ;;  %3402 = vmatprep.subr.mxu0 %v3915_v14  ;;  %v4508_v63 = vpop.f32.mrf.mxu0 }
 0x11f   :  { %3205 = vmatprep.mubr.msk.f32.mxu1 %vm3916_vm1, %v3915_v14  ;;  %3403 = vmatpush3.msra.mxu0 %v4252_v18  ;;  %v4606_v36 = vpop.f32.mrf.mxu1 }
 0x120   :  { %3329 = vmatmul.mubr.msk.f32.gmra.mxu0 %vm739_vm2, %v4503_v62  ;;  %3404 = vmatprep.subr.mxu0 %v3915_v14  ;;  %v4523_v3 = vpop.f32.mrf.mxu0 }
 0x121   :  { %3405 = vmatpush3.msra.mxu0 %v4236_v15  ;;  %3406 = vmatprep.mubr.msk.f32.mxu0 %vm3916_vm1, %v3915_v14  ;;  %v4576_v15 = vld [vmem:[%s5700_s1 + $0x10] sm:$0xff]  ;;  %v4621_v62 = vpop.f32.mrf.mxu1 }
 0x122   :  { %3206 = vmatmul.mubr.msk.f32.gmra.mxu1 %vm739_vm2, %v4517_v1  ;;  %v4535_v5 = vpop.f32.mrf.mxu0  ;;  %3502 = vmatprep.subr.mxu0 %v3915_v14  ;;  %5727 = vst [vmem:[#allocation9_spill] sm:$0xff] %v4576_v15 }
 0x123   :  { %3208 = vmatprep.mubr.msk.f32.mxu1 %vm3916_vm1, %v3915_v14 }
 0x124   :  { %3407 = vmatmul.mubr.msk.f32.vlgmr.msra.gmra.mxu0 %vm739_vm2, %v4528_v4  ;;  %v4549_v8 = vpop.f32.mrf.mxu0 }
 0x125   :  { %3409 = vmatprep.mubr.msk.f32.mxu0 %vm3916_vm1, %v3915_v14 }
 0x126   :  { %3209 = vmatmul.mubr.msk.f32.gmra.mxu1 %vm739_vm2, %v4545_v7  ;;  %v4560_v10 = vpop.f32.mrf.mxu0 }
 0x127   :  { %3211 = vmatprep.mubr.msk.f32.mxu1 %vm3916_vm1, %v3915_v14 }
 0x128   :  { %3410 = vmatmul.mubr.msk.f32.gmra.mxu0 %vm739_vm2, %v4554_v9  ;;  %v4582_v18 = vpop.f32.mrf.mxu0 }
 0x129   :  { %3412 = vmatprep.mubr.msk.f32.mxu0 %vm3916_vm1, %v3915_v14 }
 0x12a   :  { %3212 = vmatmul.mubr.msk.f32.gmra.mxu1 %vm739_vm2, %v4569_v13  ;;  %v4604_v32 = vpop.f32.mrf.mxu0 }
 0x12b   :  { %3214 = vmatprep.mubr.msk.f32.mxu1 %vm3916_vm1, %v3915_v14 }
 0x12c   :  { %3413 = vmatmul.mubr.msk.f32.gmra.mxu0 %vm739_vm2, %v4576_v15  ;;  %v384_v44 = vpop.f32.mrf.mxu0 }
 0x12d   :  { %3415 = vmatprep.mubr.msk.f32.mxu0 %vm3916_vm1, %v3915_v14 }
 0x12e   :  { %3215 = vmatmul.mubr.msk.f32.gmra.mxu1 %vm739_vm2, %v4591_v24 }
 0x12f   :  { %3235 = vmatprep.mubr.msk.f32.mxu1 %vm3916_vm1, %v3915_v14 }
 0x130   :  { %3416 = vmatmul.mubr.msk.f32.gmra.mxu0 %vm739_vm2, %v4598_v28 }
 0x131   :  { %3418 = vmatprep.mubr.msk.f32.mxu0 %vm3916_vm1, %v3915_v14 }
 0x132   :  { %3236 = vmatmul.mubr.msk.f32.vlgmr.msra.gmra.mxu1 %vm739_vm2, %v4528_v4  ;;  %v4642_v4 = vpop.f32.mrf.mxu1 }
 0x133   :  { %3238 = vmatprep.mubr.msk.f32.mxu1 %vm3916_vm1, %v3915_v14  ;;  %3332 = vmatpush3.msra.mxu1 %v4413_v46  ;;  %v4640_v46 = vpop.f32.mrf.mxu0 }
 0x134   :  { %3333 = vmatprep.subr.mxu1 %v3915_v14  ;;  %3419 = vmatmul.mubr.msk.f32.gmra.mxu0 %vm739_vm2, %v4615_v40 }
 0x135   :  { %3334 = vmatpush3.msra.mxu1 %v4390_v42  ;;  %3421 = vmatprep.mubr.msk.f32.mxu0 %vm3916_vm1, %v3915_v14  ;;  %v4654_v42 = vld [vmem:[%s5700_s1 + $0x30] sm:$0xff] }
 0x136   :  { %3239 = vmatmul.mubr.msk.f32.gmra.mxu1 %vm739_vm2, %v4554_v9  ;;  %3335 = vmatprep.subr.mxu1 %v3915_v14  ;;  %5730 = vst [vmem:[#allocation12_spill] sm:$0xff] %v4654_v42  ;;  %v4661_v9 = vpop.f32.mrf.mxu1 }
 0x137   :  { %3241 = vmatprep.mubr.msk.f32.mxu1 %vm3916_vm1, %v3915_v14  ;;  %3336 = vmatpush3.msra.mxu1 %v4366_v38  ;;  %v390_v38 = vpop.f32.mrf.mxu0 }
 0x138   :  { %3337 = vmatprep.subr.mxu1 %v3915_v14  ;;  %3422 = vmatmul.mubr.msk.f32.gmra.mxu0 %vm739_vm2, %v4633_v57 }
 0x139   :  { %3338 = vmatpush3.msra.mxu1 %v4342_v34  ;;  %3424 = vmatprep.mubr.msk.f32.mxu0 %vm3916_vm1, %v3915_v14  ;;  %v4673_v34 = vld [vmem:[%s5700_s1 + $0x38] sm:$0xff] }
 0x13a   :  { %3242 = vmatmul.mubr.msk.f32.gmra.mxu1 %vm739_vm2, %v4576_v15  ;;  %3339 = vmatprep.subr.mxu1 %v3915_v14  ;;  %5731 = vst [vmem:[#allocation13_spill] sm:$0xff] %v4673_v34  ;;  %v4682_v15 = vpop.f32.mrf.mxu1 }
 0x13b   :  { %3244 = vmatprep.mubr.msk.f32.mxu1 %vm3916_vm1, %v3915_v14  ;;  %3340 = vmatpush3.msra.mxu1 %v4317_v30  ;;  %v4680_v30 = vpop.f32.mrf.mxu0 }
 0x13c   :  { %3341 = vmatprep.subr.mxu1 %v3915_v14  ;;  %3425 = vmatmul.mubr.msk.f32.gmra.mxu0 %vm739_vm2, %v4654_v42 }
 0x13d   :  { %3342 = vmatpush3.msra.mxu1 %v4294_v26  ;;  %3427 = vmatprep.mubr.msk.f32.mxu0 %vm3916_vm1, %v3915_v14  ;;  %v4694_v26 = vld [vmem:[%s5700_s1 + $0x40] sm:$0xff] }
 0x13e   :  { %3245 = vmatmul.mubr.msk.f32.gmra.mxu1 %vm739_vm2, %v4598_v28  ;;  %3343 = vmatprep.subr.mxu1 %v3915_v14  ;;  %5732 = vst [vmem:[#allocation14_spill] sm:$0xff] %v4694_v26  ;;  %v4701_v28 = vpop.f32.mrf.mxu1 }
 0x13f   :  { %3247 = vmatprep.mubr.msk.f32.mxu1 %vm3916_vm1, %v3915_v14  ;;  %3344 = vmatpush3.msra.mxu1 %v4277_v23  ;;  %v396_v23 = vpop.f32.mrf.mxu0 }
 0x140   :  { %3345 = vmatprep.subr.mxu1 %v3915_v14  ;;  %3428 = vmatmul.mubr.msk.f32.gmra.mxu0 %vm739_vm2, %v4673_v34 }
 0x141   :  { %3346 = vmatpush3.msra.mxu1 %v4262_v20  ;;  %3430 = vmatprep.mubr.msk.f32.mxu0 %vm3916_vm1, %v3915_v14  ;;  %v4712_v20 = vld [vmem:[%s5700_s1 + $0x48] sm:$0xff] }
 0x142   :  { %3248 = vmatmul.mubr.msk.f32.gmra.mxu1 %vm739_vm2, %v4615_v40  ;;  %3347 = vmatprep.subr.mxu1 %v3915_v14 }
 0x143   :  { %3250 = vmatprep.mubr.msk.f32.mxu1 %vm3916_vm1, %v3915_v14  ;;  %3348 = vmatpush3.msra.mxu1 %v4246_v17  ;;  %v4719_v17 = vpop.f32.mrf.mxu1 }
 0x144   :  { %3431 = vmatmul.mubr.msk.f32.gmra.mxu0 %vm739_vm2, %v4694_v26  ;;  %3445 = vmatprep.subr.mxu1 %v3915_v14 }
 0x145   :  { %3433 = vmatprep.mubr.msk.f32.mxu0 %vm3916_vm1, %v3915_v14  ;;  %3503 = vmatpush3.msra.mxu0 %v396_v23  ;;  %v4729_v23 = vld [vmem:[%s5700_s1 + $0x50] sm:$0xff] }
 0x146   :  { %3251 = vmatmul.mubr.msk.f32.gmra.mxu1 %vm739_vm2, %v4633_v57  ;;  %3504 = vmatprep.subr.mxu0 %v3915_v14  ;;  %v4736_v57 = vpop.f32.mrf.mxu0 }
 0x147   :  { %3253 = vmatprep.mubr.msk.f32.mxu1 %vm3916_vm1, %v3915_v14  ;;  %3505 = vmatpush3.msra.mxu0 %v390_v38  ;;  %v3144_v38 = vpop.f32.mrf.mxu1 }
 0x148   :  { %3434 = vmatmul.mubr.msk.f32.gmra.mxu0 %vm739_vm2, %v4712_v20  ;;  %3506 = vmatprep.subr.mxu0 %v3915_v14 }
 0x149   :  { %3436 = vmatprep.mubr.msk.f32.mxu0 %vm3916_vm1, %v3915_v14  ;;  %3507 = vmatpush3.msra.mxu0 %v384_v44  ;;  %v4747_v44 = vld [vmem:[%s5700_s1 + $0x58] sm:$0xff] }
 0x14a   :  { %3254 = vmatmul.mubr.msk.f32.gmra.mxu1 %vm739_vm2, %v4654_v42  ;;  %3508 = vmatprep.subr.mxu0 %v3915_v14  ;;  %v4755_v42 = vpop.f32.mrf.mxu0 }
 0x14b   :  { %3256 = vmatprep.mubr.msk.f32.mxu1 %vm3916_vm1, %v3915_v14  ;;  %3509 = vmatpush3.msra.mxu0 %v4582_v18  ;;  %v639_v18 = vpop.f32.mrf.mxu1 }
 0x14c   :  { %3437 = vmatmul.mubr.msk.f32.gmra.mxu0 %vm739_vm2, %v4729_v23  ;;  %3510 = vmatprep.subr.mxu0 %v3915_v14 }
 0x14d   :  { %3439 = vmatprep.mubr.msk.f32.mxu0 %vm3916_vm1, %v3915_v14  ;;  %3511 = vmatpush3.msra.mxu0 %v4549_v8  ;;  %v4766_v8 = vld [vmem:[%s5700_s1 + $0x60] sm:$0xff] }
 0x14e   :  { %3257 = vmatmul.mubr.msk.f32.gmra.mxu1 %vm739_vm2, %v4673_v34  ;;  %3512 = vmatprep.subr.mxu0 %v3915_v14  ;;  %v4776_v34 = vpop.f32.mrf.mxu0 }
 0x14f   :  { %3259 = vmatprep.mubr.msk.f32.mxu1 %vm3916_vm1, %v3915_v14  ;;  %3513 = vmatpush3.msra.mxu0 %v4523_v3  ;;  %v4774_v3 = vpop.f32.mrf.mxu1 }
 0x150   :  { %3440 = vmatmul.mubr.msk.f32.gmra.mxu0 %vm739_vm2, %v4747_v44  ;;  %3514 = vmatprep.subr.mxu0 %v3915_v14 }
 0x151   :  { %3442 = vmatprep.mubr.msk.f32.mxu0 %vm3916_vm1, %v3915_v14  ;;  %3515 = vmatpush3.msra.mxu0 %v4495_v61  ;;  %v649_v61 = vpop.f32.mrf.mxu1 }
 0x152   :  { %3260 = vmatmul.mubr.msk.f32.gmra.mxu1 %vm739_vm2, %v4694_v26  ;;  %3516 = vmatprep.subr.mxu0 %v3915_v14  ;;  %v4790_v26 = vpop.f32.mrf.mxu0 }
 0x153   :  { %3262 = vmatprep.mubr.msk.f32.mxu1 %vm3916_vm1, %v3915_v14  ;;  %3517 = vmatpush3.msra.mxu0 %v4467_v56 }
 0x154   :  { %3443 = vmatmul.mubr.msk.f32.gmra.mxu0 %vm739_vm2, %v4766_v8  ;;  %3518 = vmatprep.subr.mxu0 %v3915_v14 }
 0x155   :  { %3519 = vmatpush3.msra.mxu0 %v4440_v51  ;;  %3520 = vmatprep.mubr.msk.f32.mxu0 %vm3916_vm1, %v3915_v14  ;;  %v4801_v51 = vpop.f32.mrf.mxu0 }
 0x156   :  { %3263 = vmatmul.mubr.msk.f32.gmra.mxu1 %vm739_vm2, %v4712_v20  ;;  %3616 = vmatprep.subr.mxu0 %v3915_v14 }
 0x157   :  { %3265 = vmatprep.mubr.msk.f32.mxu1 %vm3916_vm1, %v3915_v14  ;;  %v4813_v56 = vpop.f32.mrf.mxu0 }
 0x158   :  { %3521 = vmatmul.mubr.msk.f32.vlgmr.msra.gmra.mxu0 %vm739_vm2, %v4289_v25 }
 0x159   :  { %3523 = vmatprep.mubr.msk.f32.mxu0 %vm3916_vm1, %v3915_v14  ;;  %3617 = vmatpush3.msra.mxu0 %v649_v61 }
 0x15a   :  { %3266 = vmatmul.mubr.msk.f32.gmra.mxu1 %vm739_vm2, %v4729_v23  ;;  %3618 = vmatprep.subr.mxu0 %v3915_v14 }
 0x15b   :  { %3268 = vmatprep.mubr.msk.f32.mxu1 %vm3916_vm1, %v3915_v14  ;;  %3619 = vmatpush3.msra.mxu0 %v3144_v38  ;;  %v4827_v38 = vpop.f32.mrf.mxu0 }
 0x15c   :  { %3524 = vmatmul.mubr.msk.f32.gmra.mxu0 %vm739_vm2, %v4312_v29  ;;  %3620 = vmatprep.subr.mxu0 %v3915_v14 }
 0x15d   :  { %3526 = vmatprep.mubr.msk.f32.mxu0 %vm3916_vm1, %v3915_v14  ;;  %3621 = vmatpush3.msra.mxu0 %v639_v18 }
 0x15e   :  { %3269 = vmatmul.mubr.msk.f32.gmra.mxu1 %vm739_vm2, %v4747_v44  ;;  %3622 = vmatprep.subr.mxu0 %v3915_v14 }
 0x15f   :  { %3271 = vmatprep.mubr.msk.f32.mxu1 %vm3916_vm1, %v3915_v14  ;;  %3623 = vmatpush3.msra.mxu0 %v4701_v28  ;;  %v4841_v28 = vpop.f32.mrf.mxu0 }
 0x160   :  { %3527 = vmatmul.mubr.msk.f32.gmra.mxu0 %vm739_vm2, %v4337_v33  ;;  %3624 = vmatprep.subr.mxu0 %v3915_v14 }
 0x161   :  { %3529 = vmatprep.mubr.msk.f32.mxu0 %vm3916_vm1, %v3915_v14  ;;  %3625 = vmatpush3.msra.mxu0 %v4719_v17 }
 0x162   :  { %3272 = vmatmul.mubr.msk.f32.gmra.mxu1 %vm739_vm2, %v4766_v8  ;;  %3626 = vmatprep.subr.mxu0 %v3915_v14 }
 0x163   :  { %3349 = vmatprep.mubr.msk.f32.mxu1 %vm3916_vm1, %v3915_v14  ;;  %3627 = vmatpush3.msra.mxu0 %v4661_v9 }
 0x164   :  { %3530 = vmatmul.mubr.msk.f32.gmra.mxu0 %vm739_vm2, %v4361_v37  ;;  %3628 = vmatprep.subr.mxu0 %v3915_v14 }
 0x165   :  { %3532 = vmatprep.mubr.msk.f32.mxu0 %vm3916_vm1, %v3915_v14  ;;  %3629 = vmatpush3.msra.mxu0 %v4682_v15 }
 0x166   :  { %3350 = vmatmul.mubr.msk.f32.vlgmr.msra.gmra.mxu1 %vm739_vm2, %v4289_v25  ;;  %3630 = vmatprep.subr.mxu0 %v3915_v14  ;;  %v4855_v25 = vpop.f32.mrf.mxu0 }
 0x167   :  { %3446 = vmatpush3.msra.mxu1 %v4584_v21  ;;  %3352 = vmatprep.mubr.msk.f32.mxu1 %vm3916_vm1, %v3915_v14  ;;  %v5737_v21 = vld [vmem:[#allocation9_spill] sm:$0xff] }
 0x168   :  { %3447 = vmatprep.subr.mxu1 %v3915_v14  ;;  %3533 = vmatmul.mubr.msk.f32.gmra.mxu0 %vm739_vm2, %v4385_v41 }
 0x169   :  { %3448 = vmatpush3.msra.mxu1 %v4606_v36  ;;  %3535 = vmatprep.mubr.msk.f32.mxu0 %vm3916_vm1, %v3915_v14 }
 0x16a   :  { %3449 = vmatprep.subr.mxu1 %v3915_v14  ;;  %3353 = vmatmul.mubr.msk.f32.gmra.mxu1 %vm739_vm2, %v4312_v29  ;;  %v4869_v29 = vpop.f32.mrf.mxu0 }
 0x16b   :  { %3450 = vmatpush3.msra.mxu1 %v4538_v6  ;;  %3355 = vmatprep.mubr.msk.f32.mxu1 %vm3916_vm1, %v3915_v14 }
 0x16c   :  { %3451 = vmatprep.subr.mxu1 %v3915_v14  ;;  %3536 = vmatmul.mubr.msk.f32.gmra.mxu0 %vm739_vm2, %v4409_v45 }
 0x16d   :  { %3452 = vmatpush3.msra.mxu1 %v4562_v11  ;;  %3538 = vmatprep.mubr.msk.f32.mxu0 %vm3916_vm1, %v3915_v14 }
 0x16e   :  { %3453 = vmatprep.subr.mxu1 %v3915_v14  ;;  %3356 = vmatmul.mubr.msk.f32.gmra.mxu1 %vm739_vm2, %v4337_v33  ;;  %v430_v33 = vpop.f32.mrf.mxu0 }
 0x16f   :  { %3454 = vmatpush3.msra.mxu1 %v4482_v59  ;;  %3358 = vmatprep.mubr.msk.f32.mxu1 %vm3916_vm1, %v3915_v14  ;;  %v5733_v59 = vld [vmem:[#allocation5_spill] sm:$0xff] }
 0x170   :  { %3455 = vmatprep.subr.mxu1 %v3915_v14  ;;  %3539 = vmatmul.mubr.msk.f32.gmra.mxu0 %vm739_vm2, %v4435_v50 }
 0x171   :  { %3456 = vmatpush3.msra.mxu1 %v4510_v0  ;;  %3541 = vmatprep.mubr.msk.f32.mxu0 %vm3916_vm1, %v3915_v14 }
 0x172   :  { %3457 = vmatprep.subr.mxu1 %v3915_v14  ;;  %3359 = vmatmul.mubr.msk.f32.gmra.mxu1 %vm739_vm2, %v4361_v37  ;;  %v4895_v37 = vpop.f32.mrf.mxu0 }
 0x173   :  { %3458 = vmatpush3.msra.mxu1 %v4428_v49  ;;  %3361 = vmatprep.mubr.msk.f32.mxu1 %vm3916_vm1, %v3915_v14 }
 0x174   :  { %3459 = vmatprep.subr.mxu1 %v3915_v14  ;;  %3542 = vmatmul.mubr.msk.f32.gmra.mxu0 %vm739_vm2, %v4461_v55 }
 0x175   :  { %3460 = vmatpush3.msra.mxu1 %v4454_v54  ;;  %3544 = vmatprep.mubr.msk.f32.mxu0 %vm3916_vm1, %v3915_v14 }
 0x176   :  { %3461 = vmatprep.subr.mxu1 %v3915_v14  ;;  %3362 = vmatmul.mubr.msk.f32.gmra.mxu1 %vm739_vm2, %v4385_v41  ;;  %v436_v41 = vpop.f32.mrf.mxu0 }
 0x177   :  { %3462 = vmatpush3.msra.mxu1 %v4214_v2  ;;  %3364 = vmatprep.mubr.msk.f32.mxu1 %vm3916_vm1, %v3915_v14 }
 0x178   :  { %3545 = vmatmul.mubr.msk.f32.gmra.mxu0 %vm739_vm2, %v4489_v60  ;;  %3559 = vmatprep.subr.mxu1 %v3915_v14  ;;  %v4919_v2 = vpop.f32.mrf.mxu0 }
 0x179   :  { %3547 = vmatprep.mubr.msk.f32.mxu0 %vm3916_vm1, %v3915_v14  ;;  %3631 = vmatpush3.msra.mxu0 %v4621_v62 }
 0x17a   :  { %3365 = vmatmul.mubr.msk.f32.gmra.mxu1 %vm739_vm2, %v4409_v45  ;;  %3632 = vmatprep.subr.mxu0 %v3915_v14  ;;  %v442_v45 = vpop.f32.mrf.mxu0 }
 0x17b   :  { %3367 = vmatprep.mubr.msk.f32.mxu1 %vm3916_vm1, %v3915_v14  ;;  %3633 = vmatpush3.msra.mxu0 %v4642_v4  ;;  %v5735_v4 = vld [vmem:[#allocation7_spill] sm:$0xff] }
 0x17c   :  { %3548 = vmatmul.mubr.msk.f32.gmra.mxu0 %vm739_vm2, %v4517_v1  ;;  %3730 = vmatprep.subr.mxu0 %v3915_v14  ;;  %v4937_v49 = vpop.f32.mrf.mxu0 }
 0x17d   :  { %3550 = vmatprep.mubr.msk.f32.mxu0 %vm3916_vm1, %v3915_v14 }
 0x17e   :  { %3368 = vmatmul.mubr.msk.f32.gmra.mxu1 %vm739_vm2, %v4435_v50  ;;  %v448_v50 = vpop.f32.mrf.mxu0 }
 0x17f   :  { %3370 = vmatprep.mubr.msk.f32.mxu1 %vm3916_vm1, %v3915_v14 }
 0x180   :  { %3551 = vmatmul.mubr.msk.f32.gmra.mxu0 %vm739_vm2, %v4545_v7 }
 0x181   :  { %3553 = vmatprep.mubr.msk.f32.mxu0 %vm3916_vm1, %v3915_v14 }
 0x182   :  { %3371 = vmatmul.mubr.msk.f32.gmra.mxu1 %vm739_vm2, %v4461_v55 }
 0x183   :  { %3373 = vmatprep.mubr.msk.f32.mxu1 %vm3916_vm1, %v3915_v14 }
 0x184   :  { %3554 = vmatmul.mubr.msk.f32.gmra.mxu0 %vm739_vm2, %v4569_v13 }
 0x185   :  { %3556 = vmatprep.mubr.msk.f32.mxu0 %vm3916_vm1, %v3915_v14 }
 0x186   :  { %3374 = vmatmul.mubr.msk.f32.gmra.mxu1 %vm739_vm2, %v4489_v60 }
 0x187   :  { %3376 = vmatprep.mubr.msk.f32.mxu1 %vm3916_vm1, %v3915_v14 }
 0x188   :  { %3557 = vmatmul.mubr.msk.f32.gmra.mxu0 %vm739_vm2, %v4591_v24 }
 0x189   :  { %3634 = vmatprep.mubr.msk.f32.mxu0 %vm3916_vm1, %v3915_v14 }
 0x18a   :  { %3377 = vmatmul.mubr.msk.f32.gmra.mxu1 %vm739_vm2, %v4517_v1 }
 0x18b   :  { %3379 = vmatprep.mubr.msk.f32.mxu1 %vm3916_vm1, %v3915_v14 }
 0x18c   :  { %3635 = vmatmul.mubr.msk.f32.vlgmr.msra.gmra.mxu0 %vm739_vm2, %v4230_v12 }
 0x18d   :  { %3637 = vmatprep.mubr.msk.f32.mxu0 %vm3916_vm1, %v3915_v14  ;;  %3731 = vmatpush3.msra.mxu0 %v448_v50 }
 0x18e   :  { %3380 = vmatmul.mubr.msk.f32.gmra.mxu1 %vm739_vm2, %v4545_v7  ;;  %3732 = vmatprep.subr.mxu0 %v3915_v14 }
 0x18f   :  { %3382 = vmatprep.mubr.msk.f32.mxu1 %vm3916_vm1, %v3915_v14  ;;  %3733 = vmatpush3.msra.mxu0 %v442_v45 }
 0x190   :  { %3638 = vmatmul.mubr.msk.f32.gmra.mxu0 %vm739_vm2, %v4243_v16  ;;  %3734 = vmatprep.subr.mxu0 %v3915_v14 }
 0x191   :  { %3640 = vmatprep.mubr.msk.f32.mxu0 %vm3916_vm1, %v3915_v14  ;;  %3735 = vmatpush3.msra.mxu0 %v436_v41 }
 0x192   :  { %3383 = vmatmul.mubr.msk.f32.gmra.mxu1 %vm739_vm2, %v4569_v13  ;;  %3736 = vmatprep.subr.mxu0 %v3915_v14 }
 0x193   :  { %3385 = vmatprep.mubr.msk.f32.mxu1 %vm3916_vm1, %v3915_v14  ;;  %3737 = vmatpush3.msra.mxu0 %v430_v33 }
 0x194   :  { %3641 = vmatmul.mubr.msk.f32.gmra.mxu0 %vm739_vm2, %v4259_v19  ;;  %3738 = vmatprep.subr.mxu0 %v3915_v14 }
 0x195   :  { %3643 = vmatprep.mubr.msk.f32.mxu0 %vm3916_vm1, %v3915_v14  ;;  %3739 = vmatpush3.msra.mxu0 %v4855_v25 }
 0x196   :  { %3386 = vmatmul.mubr.msk.f32.gmra.mxu1 %vm739_vm2, %v4591_v24  ;;  %3740 = vmatprep.subr.mxu0 %v3915_v14 }
 0x197   :  { %3463 = vmatprep.mubr.msk.f32.mxu1 %vm3916_vm1, %v3915_v14  ;;  %3741 = vmatpush3.msra.mxu0 %v4827_v38 }
 0x198   :  { %3644 = vmatmul.mubr.msk.f32.gmra.mxu0 %vm739_vm2, %v4274_v22  ;;  %3742 = vmatprep.subr.mxu0 %v3915_v14 }
 0x199   :  { %3646 = vmatprep.mubr.msk.f32.mxu0 %vm3916_vm1, %v3915_v14  ;;  %3743 = vmatpush3.msra.mxu0 %v4801_v51 }
 0x19a   :  { %3464 = vmatmul.mubr.msk.f32.vlgmr.msra.gmra.mxu1 %vm739_vm2, %v4230_v12  ;;  %3744 = vmatprep.subr.mxu0 %v3915_v14  ;;  %v5005_v12 = vpop.f32.mrf.mxu1 }
 0x19b   :  { %3560 = vmatpush3.msra.mxu1 %v4680_v30  ;;  %3466 = vmatprep.mubr.msk.f32.mxu1 %vm3916_vm1, %v3915_v14 }
 0x19c   :  { %3561 = vmatprep.subr.mxu1 %v3915_v14  ;;  %3647 = vmatmul.mubr.msk.f32.gmra.mxu0 %vm739_vm2, %v4300_v27 }
 0x19d   :  { %3562 = vmatpush3.msra.mxu1 %v4640_v46  ;;  %3649 = vmatprep.mubr.msk.f32.mxu0 %vm3916_vm1, %v3915_v14 }
 0x19e   :  { %3563 = vmatprep.subr.mxu1 %v3915_v14  ;;  %3467 = vmatmul.mubr.msk.f32.gmra.mxu1 %vm739_vm2, %v4243_v16  ;;  %v5019_v16 = vpop.f32.mrf.mxu1 }
 0x19f   :  { %3564 = vmatpush3.msra.mxu1 %v4604_v32  ;;  %3469 = vmatprep.mubr.msk.f32.mxu1 %vm3916_vm1, %v3915_v14 }
 0x1a0   :  { %3565 = vmatprep.subr.mxu1 %v3915_v14  ;;  %3650 = vmatmul.mubr.msk.f32.gmra.mxu0 %vm739_vm2, %v4324_v31 }
 0x1a1   :  { %3566 = vmatpush3.msra.mxu1 %v4560_v10  ;;  %3652 = vmatprep.mubr.msk.f32.mxu0 %vm3916_vm1, %v3915_v14  ;;  %v5736_v10 = vld [vmem:[#allocation8_spill] sm:$0xff] }
 0x1a2   :  { %3567 = vmatprep.subr.mxu1 %v3915_v14  ;;  %3470 = vmatmul.mubr.msk.f32.gmra.mxu1 %vm739_vm2, %v4259_v19  ;;  %v5033_v19 = vpop.f32.mrf.mxu1 }
 0x1a3   :  { %3568 = vmatpush3.msra.mxu1 %v4535_v5  ;;  %3472 = vmatprep.mubr.msk.f32.mxu1 %vm3916_vm1, %v3915_v14 }
 0x1a4   :  { %3569 = vmatprep.subr.mxu1 %v3915_v14  ;;  %3653 = vmatmul.mubr.msk.f32.gmra.mxu0 %vm739_vm2, %v4350_v35  ;;  %v5048_v54 = vpop.f32.mrf.mxu1 }
 0x1a5   :  { %3570 = vmatpush3.msra.mxu1 %v4508_v63  ;;  %3655 = vmatprep.mubr.msk.f32.mxu0 %vm3916_vm1, %v3915_v14  ;;  %v5734_v63 = vld [vmem:[#allocation6_spill] sm:$0xff] }
 0x1a6   :  { %3571 = vmatprep.subr.mxu1 %v3915_v14  ;;  %3473 = vmatmul.mubr.msk.f32.gmra.mxu1 %vm739_vm2, %v4274_v22  ;;  %v5043_v22 = vpop.f32.mrf.mxu0 }
 0x1a7   :  { %3572 = vmatpush3.msra.mxu1 %v4480_v58  ;;  %3475 = vmatprep.mubr.msk.f32.mxu1 %vm3916_vm1, %v3915_v14 }
 0x1a8   :  { %3573 = vmatprep.subr.mxu1 %v3915_v14  ;;  %3656 = vmatmul.mubr.msk.f32.gmra.mxu0 %vm739_vm2, %v4374_v39 }
 0x1a9   :  { %3574 = vmatpush3.msra.mxu1 %v4452_v53  ;;  %3658 = vmatprep.mubr.msk.f32.mxu0 %vm3916_vm1, %v3915_v14 }
 0x1aa   :  { %3575 = vmatprep.subr.mxu1 %v3915_v14  ;;  %3476 = vmatmul.mubr.msk.f32.gmra.mxu1 %vm739_vm2, %v4300_v27 }
 0x1ab   :  { %3576 = vmatpush3.msra.mxu1 %v4426_v48  ;;  %3478 = vmatprep.mubr.msk.f32.mxu1 %vm3916_vm1, %v3915_v14  ;;  %v5064_v48 = vpop.f32.mrf.mxu1 }
 0x1ac   :  { %3659 = vmatmul.mubr.msk.f32.gmra.mxu0 %vm739_vm2, %v4398_v43  ;;  %3673 = vmatprep.subr.mxu1 %v3915_v14 }
 0x1ad   :  { %3661 = vmatprep.mubr.msk.f32.mxu0 %vm3916_vm1, %v3915_v14  ;;  %3745 = vmatpush3.msra.mxu0 %v4776_v34  ;;  %v5077_v55 = vpop.f32.mrf.mxu1  ;;  %v5738_v34 = vld [vmem:[#allocation10_spill] sm:$0xff] }
 0x1ae   :  { %3479 = vmatmul.mubr.msk.f32.gmra.mxu1 %vm739_vm2, %v4324_v31  ;;  %3746 = vmatprep.subr.mxu0 %v3915_v14 }
 0x1af   :  { %v5059_v27 = vpop.f32.mrf.mxu0  ;;  %3481 = vmatprep.mubr.msk.f32.mxu1 %vm3916_vm1, %v3915_v14  ;;  %3747 = vmatpush3.msra.mxu0 %v4736_v57 }
 0x1b0   :  { %3662 = vmatmul.mubr.msk.f32.gmra.mxu0 %vm739_vm2, %v4421_v47  ;;  %3787 = vmatprep.subr.mxu0 %v3915_v14 }
 0x1b1   :  { %v3294_v53 = vpop.f32.mrf.mxu0  ;;  %3664 = vmatprep.mubr.msk.f32.mxu0 %vm3916_vm1, %v3915_v14 }
 0x1b2   :  { %3482 = vmatmul.mubr.msk.f32.gmra.mxu1 %vm739_vm2, %v4350_v35  ;;  %v5089_v35 = vpop.f32.mrf.mxu1  ;;  %v5740_v53 = vld [vmem:[#allocation12_spill] sm:$0xff] }
 0x1b3   :  { %v5073_v31 = vpop.f32.mrf.mxu0  ;;  %3484 = vmatprep.mubr.msk.f32.mxu1 %vm3916_vm1, %v3915_v14 }
 0x1b4   :  { %3665 = vmatmul.mubr.msk.f32.gmra.mxu0 %vm739_vm2, %v4447_v52 }
 0x1b5   :  { %v3297_v57 = vpop.f32.mrf.mxu0  ;;  %3667 = vmatprep.mubr.msk.f32.mxu0 %vm3916_vm1, %v3915_v14 }
 0x1b6   :  { %3485 = vmatmul.mubr.msk.f32.gmra.mxu1 %vm739_vm2, %v4374_v39  ;;  %v5101_v39 = vpop.f32.mrf.mxu1 }
 0x1b7   :  { %v5085_v58 = vpop.f32.mrf.mxu0  ;;  %3487 = vmatprep.mubr.msk.f32.mxu1 %vm3916_vm1, %v3915_v14 }
 0x1b8   :  { %3668 = vmatmul.mubr.msk.f32.gmra.mxu0 %vm739_vm2, %v5733_v59 }
 0x1b9   :  { %v3300_v60 = vpop.f32.mrf.mxu0  ;;  %3670 = vmatprep.mubr.msk.f32.mxu0 %vm3916_vm1, %v3915_v14 }
 0x1ba   :  { %3488 = vmatmul.mubr.msk.f32.gmra.mxu1 %vm739_vm2, %v4398_v43  ;;  %v5741_v60 = vld [vmem:[#allocation13_spill] sm:$0xff] }
 0x1bb   :  { %v5097_v62 = vpop.f32.mrf.mxu0  ;;  %3490 = vmatprep.mubr.msk.f32.mxu1 %vm3916_vm1, %v3915_v14 }
 0x1bc   :  { %3671 = vmatmul.mubr.msk.f32.gmra.mxu0 %vm739_vm2, %v5734_v63 }
 0x1bd   :  { %v3303_v0 = vpop.f32.mrf.mxu0  ;;  %3748 = vmatprep.mubr.msk.f32.mxu0 %vm3916_vm1, %v3915_v14 }
 0x1be   :  { %3491 = vmatmul.mubr.msk.f32.gmra.mxu1 %vm739_vm2, %v4421_v47  ;;  %v5109_v1 = vpop.f32.mrf.mxu1 }
 0x1bf   :  { %3493 = vmatprep.mubr.msk.f32.mxu1 %vm3916_vm1, %v3915_v14 }
 0x1c0   :  { %v3180_v43 = vpop.f32.mrf.mxu1  ;;  %3749 = vmatmul.mubr.msk.f32.vlgmr.msra.gmra.mxu0 %vm739_vm2, %v5735_v4  ;;  %v5115_v5 = vpop.f32.mrf.mxu0 }
 0x1c1   :  { %3788 = vmatpush3.msra.mxu0 %v5089_v35  ;;  %3751 = vmatprep.mubr.msk.f32.mxu0 %vm3916_vm1, %v3915_v14  ;;  %v5742_v43 = vld [vmem:[#allocation14_spill] sm:$0xff] }
 0x1c2   :  { %3494 = vmatmul.mubr.msk.f32.gmra.mxu1 %vm739_vm2, %v4447_v52  ;;  %v5122_v47 = vpop.f32.mrf.mxu1  ;;  %3789 = vmatprep.subr.mxu0 %v3915_v14  ;;  %v3306_v6 = vpop.f32.mrf.mxu0 }
 0x1c3   :  { %3496 = vmatprep.mubr.msk.f32.mxu1 %vm3916_vm1, %v3915_v14  ;;  %3790 = vmatpush3.msra.mxu0 %v5101_v39 }
 0x1c4   :  { %v3183_v7 = vpop.f32.mrf.mxu1  ;;  %3791 = vmatprep.subr.mxu0 %v3915_v14  ;;  %v5129_v9 = vpop.f32.mrf.mxu0  ;;  %3752 = vmatmul.mubr.msk.f32.gmra.mxu0 %vm739_vm2, %v5736_v10 }
 0x1c5   :  { %3792 = vmatpush3.msra.mxu0 %v5064_v48  ;;  %3754 = vmatprep.mubr.msk.f32.mxu0 %vm3916_vm1, %v3915_v14 }
 0x1c6   :  { %3497 = vmatmul.mubr.msk.f32.gmra.mxu1 %vm739_vm2, %v5733_v59  ;;  %v5138_v52 = vpop.f32.mrf.mxu1  ;;  %3793 = vmatprep.subr.mxu0 %v3915_v14  ;;  %v3309_v11 = vpop.f32.mrf.mxu0 }
 0x1c7   :  { %3499 = vmatprep.mubr.msk.f32.mxu1 %vm3916_vm1, %v3915_v14  ;;  %3794 = vmatpush3.msra.mxu0 %v5077_v55 }
 0x1c8   :  { %v3186_v13 = vpop.f32.mrf.mxu1  ;;  %3795 = vmatprep.subr.mxu0 %v3915_v14  ;;  %v5145_v15 = vpop.f32.mrf.mxu0  ;;  %3755 = vmatmul.mubr.msk.f32.gmra.mxu0 %vm739_vm2, %v5737_v21 }
 0x1c9   :  { %3796 = vmatpush3.msra.mxu0 %v5033_v19  ;;  %3757 = vmatprep.mubr.msk.f32.mxu0 %vm3916_vm1, %v3915_v14 }
 0x1ca   :  { %3500 = vmatmul.mubr.msk.f32.gmra.mxu1 %vm739_vm2, %v5734_v63  ;;  %v5154_v24 = vpop.f32.mrf.mxu1  ;;  %3797 = vmatprep.subr.mxu0 %v3915_v14  ;;  %v3312_v32 = vpop.f32.mrf.mxu0 }
 0x1cb   :  { %3577 = vmatprep.mubr.msk.f32.mxu1 %vm3916_vm1, %v3915_v14  ;;  %3798 = vmatpush3.msra.mxu0 %v5048_v54 }
 0x1cc   :  { %v3189_v36 = vpop.f32.mrf.mxu1  ;;  %3799 = vmatprep.subr.mxu0 %v3915_v14  ;;  %v5161_v46 = vpop.f32.mrf.mxu0  ;;  %3758 = vmatmul.mubr.msk.f32.gmra.mxu0 %vm739_vm2, %v5738_v34 }
 0x1cd   :  { %3800 = vmatpush3.msra.mxu0 %v5005_v12  ;;  %3760 = vmatprep.mubr.msk.f32.mxu0 %vm3916_vm1, %v3915_v14 }
 0x1ce   :  { %3578 = vmatmul.mubr.msk.f32.vlgmr.msra.gmra.mxu1 %vm739_vm2, %v5735_v4  ;;  %v5170_v30 = vpop.f32.mrf.mxu1  ;;  %3801 = vmatprep.subr.mxu0 %v3915_v14  ;;  %v3315_v17 = vpop.f32.mrf.mxu0 }
 0x1cf   :  { %3580 = vmatprep.mubr.msk.f32.mxu1 %vm3916_vm1, %v3915_v14  ;;  %3674 = vmatpush3.msra.mxu1 %v5043_v22 }
 0x1d0   :  { %v3192_v18 = vpop.f32.mrf.mxu1  ;;  %3675 = vmatprep.subr.mxu1 %v3915_v14  ;;  %3802 = vmatpush3.msra.mxu0 %v5019_v16  ;;  %v5178_v61 = vpop.f32.mrf.mxu0 }
 0x1d1   :  { %3676 = vmatpush3.msra.mxu1 %v4937_v49  ;;  %3803 = vmatprep.subr.mxu0 %v3915_v14  ;;  %v5739_v49 = vld [vmem:[#allocation11_spill] sm:$0xff] }
 0x1d2   :  { %3581 = vmatmul.mubr.msk.f32.gmra.mxu1 %vm739_vm2, %v5736_v10  ;;  %v5184_v51 = vpop.f32.mrf.mxu1  ;;  %3677 = vmatprep.subr.mxu1 %v3915_v14  ;;  %v3318_v38 = vpop.f32.mrf.mxu0 }
 0x1d3   :  { %3583 = vmatprep.mubr.msk.f32.mxu1 %vm3916_vm1, %v3915_v14  ;;  %3678 = vmatpush3.msra.mxu1 %v4919_v2 }
 0x1d4   :  { %v3195_v25 = vpop.f32.mrf.mxu1  ;;  %3679 = vmatprep.subr.mxu1 %v3915_v14  ;;  %3804 = vmatpush3.msra.mxu0 %v4774_v3  ;;  %v5192_v33 = vpop.f32.mrf.mxu0 }
 0x1d5   :  { %3680 = vmatpush3.msra.mxu1 %v4895_v37  ;;  %3761 = vmatmul.mubr.msk.f32.gmra.mxu0 %vm739_vm2, %v4615_v40 }
 0x1d6   :  { %3584 = vmatmul.mubr.msk.f32.gmra.mxu1 %vm739_vm2, %v5737_v21  ;;  %v5199_v41 = vpop.f32.mrf.mxu1  ;;  %3681 = vmatprep.subr.mxu1 %v3915_v14  ;;  %v3321_v2 = vpop.f32.mrf.mxu0 }
 0x1d7   :  { %3586 = vmatprep.mubr.msk.f32.mxu1 %vm3916_vm1, %v3915_v14  ;;  %3682 = vmatpush3.msra.mxu1 %v4869_v29 }
 0x1d8   :  { %v3198_v45 = vpop.f32.mrf.mxu1  ;;  %3683 = vmatprep.subr.mxu1 %v3915_v14  ;;  %3763 = vmatprep.mubr.msk.f32.mxu0 %vm3916_vm1, %v3915_v14  ;;  %v5208_v37 = vpop.f32.mrf.mxu0 }
 0x1d9   :  { %3684 = vmatpush3.msra.mxu1 %v4841_v28  ;;  %3764 = vmatmul.mubr.msk.f32.gmra.mxu0 %vm739_vm2, %v5739_v49 }
 0x1da   :  { %3587 = vmatmul.mubr.msk.f32.gmra.mxu1 %vm739_vm2, %v5738_v34  ;;  %v5215_v50 = vpop.f32.mrf.mxu1  ;;  %3685 = vmatprep.subr.mxu1 %v3915_v14  ;;  %v3324_v29 = vpop.f32.mrf.mxu0 }
 0x1db   :  { %3589 = vmatprep.mubr.msk.f32.mxu1 %vm3916_vm1, %v3915_v14  ;;  %3686 = vmatpush3.msra.mxu1 %v4813_v56 }
 0x1dc   :  { %v3201_v22 = vpop.f32.mrf.mxu1  ;;  %3687 = vmatprep.subr.mxu1 %v3915_v14  ;;  %3766 = vmatprep.mubr.msk.f32.mxu0 %vm3916_vm1, %v3915_v14  ;;  %v5224_v28 = vpop.f32.mrf.mxu0 }
 0x1dd   :  { %3688 = vmatpush3.msra.mxu1 %v4790_v26  ;;  %3767 = vmatmul.mubr.msk.f32.gmra.mxu0 %vm739_vm2, %v5740_v53 }
 0x1de   :  { %3590 = vmatmul.mubr.msk.f32.gmra.mxu1 %vm739_vm2, %v4615_v40  ;;  %v5231_v57 = vpop.f32.mrf.mxu1  ;;  %3689 = vmatprep.subr.mxu1 %v3915_v14  ;;  %v3327_v56 = vpop.f32.mrf.mxu0 }
 0x1df   :  { %3592 = vmatprep.mubr.msk.f32.mxu1 %vm3916_vm1, %v3915_v14  ;;  %3690 = vmatpush3.msra.mxu1 %v4755_v42 }
 0x1e0   :  { %v3204_v59 = vpop.f32.mrf.mxu1  ;;  %3844 = vmatprep.subr.mxu1 %v3915_v14  ;;  %3769 = vmatprep.mubr.msk.f32.mxu0 %vm3916_vm1, %v3915_v14  ;;  %v5240_v26 = vpop.f32.mrf.mxu0 }
 0x1e1   :  { %3770 = vmatmul.mubr.msk.f32.gmra.mxu0 %vm739_vm2, %v5741_v60 }
 0x1e2   :  { %3593 = vmatmul.mubr.msk.f32.gmra.mxu1 %vm739_vm2, %v5739_v49  ;;  %v5246_v40 = vpop.f32.mrf.mxu1  ;;  %3772 = vmatprep.mubr.msk.f32.mxu0 %vm3916_vm1, %v3915_v14  ;;  %v3330_v42 = vpop.f32.mrf.mxu0 }
 0x1e3   :  { %3595 = vmatprep.mubr.msk.f32.mxu1 %vm3916_vm1, %v3915_v14 }
 0x1e4   :  { %v3207_v63 = vpop.f32.mrf.mxu1  ;;  %v5252_v0 = vpop.f32.mrf.mxu0 }
 0x1e5   :  { %3773 = vmatmul.mubr.msk.f32.gmra.mxu0 %vm739_vm2, %v5742_v43 }
 0x1e6   :  { %3596 = vmatmul.mubr.msk.f32.gmra.mxu1 %vm739_vm2, %v5740_v53  ;;  %v5258_v4 = vpop.f32.mrf.mxu1  ;;  %3775 = vmatprep.mubr.msk.f32.mxu0 %vm3916_vm1, %v3915_v14  ;;  %v3408_v6 = vpop.f32.mrf.mxu0 }
 0x1e7   :  { %3598 = vmatprep.mubr.msk.f32.mxu1 %vm3916_vm1, %v3915_v14 }
 0x1e8   :  { %v3210_v7 = vpop.f32.mrf.mxu1  ;;  %v5264_v10 = vpop.f32.mrf.mxu0 }
 0x1e9   :  { %3776 = vmatmul.mubr.msk.f32.gmra.mxu0 %vm739_vm2, %v4712_v20 }
 0x1ea   :  { %3599 = vmatmul.mubr.msk.f32.gmra.mxu1 %vm739_vm2, %v5741_v60  ;;  %v5270_v11 = vpop.f32.mrf.mxu1  ;;  %3778 = vmatprep.mubr.msk.f32.mxu0 %vm3916_vm1, %v3915_v14  ;;  %v3411_v13 = vpop.f32.mrf.mxu0 }
 0x1eb   :  { %3601 = vmatprep.mubr.msk.f32.mxu1 %vm3916_vm1, %v3915_v14 }
 0x1ec   :  { %v3213_v21 = vpop.f32.mrf.mxu1  ;;  %v5276_v32 = vpop.f32.mrf.mxu0 }
 0x1ed   :  { %3779 = vmatmul.mubr.msk.f32.gmra.mxu0 %vm739_vm2, %v4729_v23  ;;  %v3870_v21 = vld [vmem:[%s5700_s1 + $0x68] sm:$0xff] }
 0x1ee   :  { %3602 = vmatmul.mubr.msk.f32.gmra.mxu1 %vm739_vm2, %v5742_v43  ;;  %v5282_v36 = vpop.f32.mrf.mxu1  ;;  %3781 = vmatprep.mubr.msk.f32.mxu0 %vm3916_vm1, %v3915_v14  ;;  %v3414_v34 = vpop.f32.mrf.mxu0 }
 0x1ef   :  { %3604 = vmatprep.mubr.msk.f32.mxu1 %vm3916_vm1, %v3915_v14 }
 0x1f0   :  { %v3216_v17 = vpop.f32.mrf.mxu1  ;;  %v5288_v18 = vpop.f32.mrf.mxu0 }
 0x1f1   :  { %3782 = vmatmul.mubr.msk.f32.gmra.mxu0 %vm739_vm2, %v4747_v44 }
 0x1f2   :  { %3605 = vmatmul.mubr.msk.f32.gmra.mxu1 %vm739_vm2, %v4712_v20  ;;  %v1014_v38 = vpop.f32.mrf.mxu1  ;;  %3784 = vmatprep.mubr.msk.f32.mxu0 %vm3916_vm1, %v3915_v14  ;;  %v3417_v25 = vpop.f32.mrf.mxu0 }
 0x1f3   :  { %v1015_v2 = vadd.f32 %v1014_v38, %v5109_v1  ;;  %3607 = vmatprep.mubr.msk.f32.mxu1 %vm3916_vm1, %v3915_v14 }
 0x1f4   :  { %v3237_v45 = vpop.f32.mrf.mxu1  ;;  %v5299_v49 = vpop.f32.mrf.mxu0 }
 0x1f5   :  { %v1247_v29 = vadd.f32 %v5059_v27, %v1015_v2  ;;  %3785 = vmatmul.mubr.msk.f32.gmra.mxu0 %vm739_vm2, %v4766_v8  ;;  %v3871_v2 = vld [vmem:[%s5700_s1 + $0xe8] sm:$0xff] }
 0x1f6   :  { %3608 = vmatmul.mubr.msk.f32.gmra.mxu1 %vm739_vm2, %v4729_v23  ;;  %v1019_v20 = vpop.f32.mrf.mxu1  ;;  %3805 = vmatprep.mubr.msk.f32.mxu0 %vm3916_vm1, %v3915_v14  ;;  %v3420_v22 = vpop.f32.mrf.mxu0  ;;  %v3867_v23 = vld [vmem:[%s5700_s1 + $0xd0] sm:$0xff] }
 0x1f7   :  { %1260 = vst [vmem:[#allocation2] sm:$0xff] %v1247_v29  ;;  %v1020_v1 = vadd.f32 %v1019_v20, %v5122_v47  ;;  %3610 = vmatprep.mubr.msk.f32.mxu1 %vm3916_vm1, %v3915_v14 }
 0x1f8   :  { %v3240_v53 = vpop.f32.mrf.mxu1  ;;  %v5311_v56 = vpop.f32.mrf.mxu0 }
 0x1f9   :  { %v1248_v27 = vadd.f32 %v5073_v31, %v1020_v1  ;;  %3806 = vmatmul.mubr.msk.f32.vlgmr.msra.gmra.mxu0 %vm739_vm2, %v3867_v23 }
 0x1fa   :  { %3611 = vmatmul.mubr.msk.f32.gmra.mxu1 %vm739_vm2, %v4747_v44  ;;  %v1024_v59 = vpop.f32.mrf.mxu1  ;;  %3808 = vmatprep.mubr.msk.f32.mxu0 %vm3916_vm1, %v3915_v14  ;;  %v3423_v47 = vpop.f32.mrf.mxu0  ;;  %v3868_v44 = vld [vmem:[%s5700_s1 + $0xd8] sm:$0xff] }
 0x1fb   :  { %1261 = vst [vmem:[#allocation2 + $0x8] sm:$0xff] %v1248_v27  ;;  %v1025_v60 = vadd.f32 %v1024_v59, %v5138_v52  ;;  %3613 = vmatprep.mubr.msk.f32.mxu1 %vm3916_vm1, %v3915_v14 }
 0x1fc   :  { %v3243_v31 = vpop.f32.mrf.mxu1  ;;  %v5325_v42 = vpop.f32.mrf.mxu0 }
 0x1fd   :  { %v1249_v63 = vadd.f32 %v5085_v58, %v1025_v60  ;;  %3809 = vmatmul.mubr.msk.f32.gmra.mxu0 %vm739_vm2, %v3868_v44  ;;  %v3876_v44 = vld [vmem:[%s5700_s1 + $0x90] sm:$0xff] }
 0x1fe   :  { %3614 = vmatmul.mubr.msk.f32.gmra.mxu1 %vm739_vm2, %v4766_v8  ;;  %v1029_v43 = vpop.f32.mrf.mxu1  ;;  %3811 = vmatprep.mubr.msk.f32.mxu0 %vm3916_vm1, %v3915_v14  ;;  %v3426_v52 = vpop.f32.mrf.mxu0  ;;  %v3869_v8 = vld [vmem:[%s5700_s1 + $0xe0] sm:$0xff] }
 0x1ff   :  { %1262 = vst [vmem:[#allocation2 + $0x10] sm:$0xff] %v1249_v63  ;;  %v1030_v6 = vadd.f32 %v1029_v43, %v5154_v24  ;;  %3691 = vmatprep.mubr.msk.f32.mxu1 %vm3916_vm1, %v3915_v14 }
 0x200   :  { %v3246_v58 = vpop.f32.mrf.mxu1  ;;  %v5339_v7 = vpop.f32.mrf.mxu0 }
 0x201   :  { %v1250_v13 = vadd.f32 %v5097_v62, %v1030_v6  ;;  %3812 = vmatmul.mubr.msk.f32.gmra.mxu0 %vm739_vm2, %v3869_v8  ;;  %v3877_v58 = vld [vmem:[%s5700_s1 + $0x98] sm:$0xff] }
 0x202   :  { %3692 = vmatmul.mubr.msk.f32.vlgmr.msra.gmra.mxu1 %vm739_vm2, %v3870_v21  ;;  %v1034_v24 = vpop.f32.mrf.mxu1  ;;  %3814 = vmatprep.mubr.msk.f32.mxu0 %vm3916_vm1, %v3915_v14  ;;  %v3429_v34 = vpop.f32.mrf.mxu0 }
 0x203   :  { %3853 = vmatpush3.msra.mxu1 %v5089_v35  ;;  %1263 = vst [vmem:[#allocation2 + $0x18] sm:$0xff] %v1250_v13  ;;  %v1035_v62 = vadd.f32 %v1034_v24, %v5170_v30  ;;  %3694 = vmatprep.mubr.msk.f32.mxu1 %vm3916_vm1, %v3915_v14  ;;  %v3872_v30 = vld [vmem:[%s5700_s1 + $0x70] sm:$0xff]  ;;  %v3878_v34 = vld [vmem:[%s5700_s1 + $0xa0] sm:$0xff] }
 0x204   :  { %3845 = vmatprep.subr.mxu1 %v3915_v14  ;;  %v3249_v17 = vpop.f32.mrf.mxu1  ;;  %v5357_v38 = vpop.f32.mrf.mxu0 }
 0x205   :  { %3854 = vmatpush3.msra.mxu1 %v5101_v39  ;;  %v1251_v25 = vadd.f32 %v5115_v5, %v1035_v62  ;;  %3815 = vmatmul.mubr.msk.f32.gmra.mxu0 %vm739_vm2, %v3871_v2 }
 0x206   :  { %3846 = vmatprep.subr.mxu1 %v3915_v14  ;;  %v1039_v35 = vpop.f32.mrf.mxu1  ;;  %3695 = vmatmul.mubr.msk.f32.gmra.mxu1 %vm739_vm2, %v3872_v30  ;;  %v3432_v45 = vpop.f32.mrf.mxu0 }
 0x207   :  { %3855 = vmatpush3.msra.mxu1 %v5064_v48  ;;  %1264 = vst [vmem:[#allocation2 + $0x20] sm:$0xff] %v1251_v25  ;;  %v1040_v39 = vadd.f32 %v1039_v35, %v5184_v51  ;;  %3697 = vmatprep.mubr.msk.f32.mxu1 %vm3916_vm1, %v3915_v14  ;;  %v3873_v48 = vld [vmem:[%s5700_s1 + $0x78] sm:$0xff]  ;;  %v3879_v35 = vld [vmem:[%s5700_s1 + $0xa8] sm:$0xff] }
 0x208   :  { %3847 = vmatprep.subr.mxu1 %v3915_v14  ;;  %v3252_v5 = vpop.f32.mrf.mxu1  ;;  %v5375_v29 = vpop.f32.mrf.mxu0 }
 0x209   :  { %3856 = vmatpush3.msra.mxu1 %v5077_v55  ;;  %v1252_v20 = vadd.f32 %v5129_v9, %v1040_v39 }
 0x20a   :  { %3848 = vmatprep.subr.mxu1 %v3915_v14  ;;  %v1044_v22 = vpop.f32.mrf.mxu1  ;;  %3698 = vmatmul.mubr.msk.f32.gmra.mxu1 %vm739_vm2, %v3873_v48  ;;  %v3435_v51 = vpop.f32.mrf.mxu0 }
 0x20b   :  { %3857 = vmatpush3.msra.mxu1 %v5033_v19  ;;  %1265 = vst [vmem:[#allocation2 + $0x28] sm:$0xff] %v1252_v20  ;;  %v1045_v1 = vadd.f32 %v1044_v22, %v5199_v41  ;;  %3700 = vmatprep.mubr.msk.f32.mxu1 %vm3916_vm1, %v3915_v14  ;;  %v3874_v19 = vld [vmem:[%s5700_s1 + $0x80] sm:$0xff]  ;;  %v3880_v20 = vld [vmem:[%s5700_s1 + $0xb0] sm:$0xff] }
 0x20c   :  { %3849 = vmatprep.subr.mxu1 %v3915_v14  ;;  %v3255_v55 = vpop.f32.mrf.mxu1  ;;  %v5389_v9 = vpop.f32.mrf.mxu0 }
 0x20d   :  { %3858 = vmatpush3.msra.mxu1 %v5048_v54  ;;  %v1253_v53 = vadd.f32 %v5145_v15, %v1045_v1 }
 0x20e   :  { %3850 = vmatprep.subr.mxu1 %v3915_v14  ;;  %v1049_v27 = vpop.f32.mrf.mxu1  ;;  %3701 = vmatmul.mubr.msk.f32.gmra.mxu1 %vm739_vm2, %v3874_v19  ;;  %v3438_v41 = vpop.f32.mrf.mxu0  ;;  %v3882_v19 = vld [vmem:[%s5700_s1 + $0xc0] sm:$0xff] }
 0x20f   :  { %3859 = vmatpush3.msra.mxu1 %v5005_v12  ;;  %1266 = vst [vmem:[#allocation2 + $0x30] sm:$0xff] %v1253_v53  ;;  %v1050_v23 = vadd.f32 %v1049_v27, %v5215_v50  ;;  %3703 = vmatprep.mubr.msk.f32.mxu1 %vm3916_vm1, %v3915_v14  ;;  %v3875_v12 = vld [vmem:[%s5700_s1 + $0x88] sm:$0xff] }
 0x210   :  { %3851 = vmatprep.subr.mxu1 %v3915_v14  ;;  %v3258_v54 = vpop.f32.mrf.mxu1  ;;  %v5403_v15 = vpop.f32.mrf.mxu0 }
 0x211   :  { %3860 = vmatpush3.msra.mxu1 %v5019_v16  ;;  %v1254_v59 = vadd.f32 %v5161_v46, %v1050_v23 }
 0x212   :  { %3852 = vmatprep.subr.mxu1 %v3915_v14  ;;  %v1054_v47 = vpop.f32.mrf.mxu1  ;;  %3704 = vmatmul.mubr.msk.f32.gmra.mxu1 %vm739_vm2, %v3875_v12  ;;  %v3441_v50 = vpop.f32.mrf.mxu0 }
 0x213   :  { %3861 = vmatpush3.msra.mxu1 %v4774_v3  ;;  %1267 = vst [vmem:[#allocation2 + $0x38] sm:$0xff] %v1254_v59  ;;  %v1055_v60 = vadd.f32 %v1054_v47, %v5231_v57  ;;  %3706 = vmatprep.mubr.msk.f32.mxu1 %vm3916_vm1, %v3915_v14  ;;  %v3883_v47 = vld [vmem:[%s5700_s1 + $0xc8] sm:$0xff] }
 0x214   :  { %v3261_v16 = vpop.f32.mrf.mxu1  ;;  %v5416_v46 = vpop.f32.mrf.mxu0 }
 0x215   :  { %v1255_v31 = vadd.f32 %v5178_v61, %v1055_v60 }
 0x216   :  { %v1059_v63 = vpop.f32.mrf.mxu1  ;;  %3707 = vmatmul.mubr.msk.f32.gmra.mxu1 %vm739_vm2, %v3876_v44  ;;  %v3444_v43 = vpop.f32.mrf.mxu0 }
 0x217   :  { %1268 = vst [vmem:[#allocation2 + $0x40] sm:$0xff] %v1255_v31  ;;  %v1060_v3 = vadd.f32 %v1059_v63, %v5246_v40  ;;  %3709 = vmatprep.mubr.msk.f32.mxu1 %vm3916_vm1, %v3915_v14  ;;  %v3884_v31 = vld [vmem:[%s5700_s1 + $0xf0] sm:$0xff] }
 0x218   :  { %v3264_v57 = vpop.f32.mrf.mxu1  ;;  %v5426_v52 = vpop.f32.mrf.mxu0 }
 0x219   :  { %v1256_v6 = vadd.f32 %v5192_v33, %v1060_v3  ;;  %v3885_v57 = vld [vmem:[%s5700_s1 + $0xf8] sm:$0xff] }
 0x21a   :  { %v1064_v61 = vpop.f32.mrf.mxu1  ;;  %3710 = vmatmul.mubr.msk.f32.gmra.mxu1 %vm739_vm2, %v3877_v58  ;;  %v3522_v13 = vpop.f32.mrf.mxu0 }
 0x21b   :  { %1269 = vst [vmem:[#allocation2 + $0x48] sm:$0xff] %v1256_v6  ;;  %v1065_v8 = vadd.f32 %v1064_v61, %v5258_v4  ;;  %3712 = vmatprep.mubr.msk.f32.mxu1 %vm3916_vm1, %v3915_v14 }
 0x21c   :  { %v3267_v40 = vpop.f32.mrf.mxu1  ;;  %v5436_v21 = vpop.f32.mrf.mxu0 }
 0x21d   :  { %v1257_v24 = vadd.f32 %v5208_v37, %v1065_v8  ;;  %v3886_v8 = vld [vmem:[%s5700_s1 + $0x100] sm:$0xff] }
 0x21e   :  { %v1069_v33 = vpop.f32.mrf.mxu1  ;;  %3713 = vmatmul.mubr.msk.f32.gmra.mxu1 %vm739_vm2, %v3878_v34  ;;  %v3525_v62 = vpop.f32.mrf.mxu0 }
 0x21f   :  { %1270 = vst [vmem:[#allocation2 + $0x50] sm:$0xff] %v1257_v24  ;;  %v1070_v17 = vadd.f32 %v1069_v33, %v5270_v11  ;;  %3715 = vmatprep.mubr.msk.f32.mxu1 %vm3916_vm1, %v3915_v14  ;;  %v3887_v62 = vld [vmem:[%s5700_s1 + $0x108] sm:$0xff] }
 0x220   :  { %v3270_v4 = vpop.f32.mrf.mxu1  ;;  %v5446_v25 = vpop.f32.mrf.mxu0 }
 0x221   :  { %v1258_v2 = vadd.f32 %v5224_v28, %v1070_v17 }
 0x222   :  { %v1074_v37 = vpop.f32.mrf.mxu1  ;;  %3716 = vmatmul.mubr.msk.f32.gmra.mxu1 %vm739_vm2, %v3879_v35  ;;  %v3528_v30 = vpop.f32.mrf.mxu0  ;;  %v3888_v35 = vld [vmem:[%s5700_s1 + $0x110] sm:$0xff] }
 0x223   :  { %1271 = vst [vmem:[#allocation2 + $0x58] sm:$0xff] %v1258_v2  ;;  %v1075_v45 = vadd.f32 %v1074_v37, %v5282_v36  ;;  %3718 = vmatprep.mubr.msk.f32.mxu1 %vm3916_vm1, %v3915_v14 }
 0x224   :  { %v3273_v11 = vpop.f32.mrf.mxu1  ;;  %v5456_v39 = vpop.f32.mrf.mxu0 }
 0x225   :  { %v1259_v5 = vadd.f32 %v5240_v26, %v1075_v45  ;;  %v3881_v26 = vld [vmem:[%s5700_s1 + $0xb8] sm:$0xff] }
 0x226   :  { %v5459_v28 = vpop.f32.mrf.mxu1  ;;  %3719 = vmatmul.mubr.msk.f32.gmra.mxu1 %vm739_vm2, %v3880_v20  ;;  %v3531_v22 = vpop.f32.mrf.mxu0  ;;  %v3889_v20 = vld [vmem:[%s5700_s1 + $0x118] sm:$0xff] }
 0x227   :  { %1272 = vst [vmem:[#allocation2 + $0x60] sm:$0xff] %v1259_v5  ;;  %3721 = vmatprep.mubr.msk.f32.mxu1 %vm3916_vm1, %v3915_v14 }
 0x228   :  { %v3351_v36 = vpop.f32.mrf.mxu1  ;;  %v5467_v48 = vpop.f32.mrf.mxu0 }
 0x22a   :  { %v5469_v51 = vpop.f32.mrf.mxu1  ;;  %3722 = vmatmul.mubr.msk.f32.gmra.mxu1 %vm739_vm2, %v3881_v26  ;;  %v3534_v1 = vpop.f32.mrf.mxu0 }
 0x22b   :  { %3724 = vmatprep.mubr.msk.f32.mxu1 %vm3916_vm1, %v3915_v14 }
 0x22c   :  { %v3354_v55 = vpop.f32.mrf.mxu1  ;;  %v5477_v53 = vpop.f32.mrf.mxu0 }
 0x22d   :  { %v3890_v55 = vld [vmem:[%s5700_s1 + $0x120] sm:$0xff] }
 0x22e   :  { %v5479_v27 = vpop.f32.mrf.mxu1  ;;  %3725 = vmatmul.mubr.msk.f32.gmra.mxu1 %vm739_vm2, %v3882_v19  ;;  %v3537_v41 = vpop.f32.mrf.mxu0 }
 0x22f   :  { %3727 = vmatprep.mubr.msk.f32.mxu1 %vm3916_vm1, %v3915_v14 }
 0x230   :  { %v3357_v23 = vpop.f32.mrf.mxu1  ;;  %v5487_v54 = vpop.f32.mrf.mxu0 }
 0x232   :  { %v5489_v59 = vpop.f32.mrf.mxu1  ;;  %3728 = vmatmul.mubr.msk.f32.gmra.mxu1 %vm739_vm2, %v3883_v47  ;;  %v3540_v12 = vpop.f32.mrf.mxu0 }
 0x233   :  { %3817 = vmatprep.mubr.msk.f32.mxu1 %vm3916_vm1, %v3915_v14  ;;  %v3891_v12 = vld [vmem:[%s5700_s1 + $0x128] sm:$0xff] }
 0x234   :  { %v3360_v50 = vpop.f32.mrf.mxu1  ;;  %v5497_v60 = vpop.f32.mrf.mxu0 }
 0x236   :  { %v5499_v16 = vpop.f32.mrf.mxu1  ;;  %3818 = vmatmul.mubr.msk.f32.vlgmr.msra.gmra.mxu1 %vm739_vm2, %v3884_v31  ;;  %v3543_v63 = vpop.f32.mrf.mxu0 }
 0x237   :  { %3820 = vmatprep.mubr.msk.f32.mxu1 %vm3916_vm1, %v3915_v14 }
 0x238   :  { %v3363_v44 = vpop.f32.mrf.mxu1  ;;  %v5507_v43 = vpop.f32.mrf.mxu0 }
 0x23a   :  { %v5509_v3 = vpop.f32.mrf.mxu1  ;;  %3821 = vmatmul.mubr.msk.f32.gmra.mxu1 %vm739_vm2, %v3885_v57  ;;  %v3546_v6 = vpop.f32.mrf.mxu0  ;;  %v3892_v57 = vld [vmem:[%s5700_s1 + $0x130] sm:$0xff]  ;;  %s3917_s1 = smov [#allocation2]  }
 0x23b   :  { %3823 = vmatprep.mubr.msk.f32.mxu1 %vm3916_vm1, %v3915_v14  ;;  %s2529_s10 = sshll.u32 %s3917_s1, 4  ;;  %s2530_s10 = int_to_ptr.vmem [resolvable:$true] %s2529_s10 }
 0x23c   :  { %v3366_v61 = vpop.f32.mrf.mxu1  ;;  %v5517_v58 = vpop.f32.mrf.mxu0  ;;  %s3893_s11 = scalar_lea.vmem %s2530_s10, 6656  ;;  %p3898_p1 = scmp.lt.s32.totalorder %s2530_s10, %s2530_s10 }
 0x23d   :  { %p3894_p0 = scmp.ne.s32.totalorder %s2530_s10, %s3893_s11  ;;  %p3899_p2 = scmp.lt.s32.totalorder %s3893_s11, %s3893_s11 }
 0x23e   :  { %v5519_v13 = vpop.f32.mrf.mxu1  ;;  %3824 = vmatmul.mubr.msk.f32.gmra.mxu1 %vm739_vm2, %v3886_v8  ;;  %v3549_v40 = vpop.f32.mrf.mxu0 }
 0x23f   :  { %3826 = vmatprep.mubr.msk.f32.mxu1 %vm3916_vm1, %v3915_v14  ;;  %v1470_v40 = vadd.f32 %v5252_v0, %v5459_v28  ;;  %p3900_p3 = por %p3899_p2, %p3898_p1 }
 0x240   :  { %v3369_v24 = vpop.f32.mrf.mxu1  ;;  %v5527_v33 = vpop.f32.mrf.mxu0 }
 0x241   :  { %p3901_p4 = pnand %p3900_p3, %p3894_p0 }
 0x242   :  { %v5529_v34 = vpop.f32.mrf.mxu1  ;;  %3827 = vmatmul.mubr.msk.f32.gmra.mxu1 %vm739_vm2, %v3887_v62  ;;  %v3552_v17 = vpop.f32.mrf.mxu0 }
 0x243   :  { %3829 = vmatprep.mubr.msk.f32.mxu1 %vm3916_vm1, %v3915_v14 }
 0x244   :  { %v3372_v4 = vpop.f32.mrf.mxu1  ;;  %v5537_v2 = vpop.f32.mrf.mxu0 }
 0x246   :  { %v5539_v37 = vpop.f32.mrf.mxu1  ;;  %3830 = vmatmul.mubr.msk.f32.gmra.mxu1 %vm739_vm2, %v3888_v35  ;;  %v3555_v30 = vpop.f32.mrf.mxu0  ;;  %v1475_v35 = vadd.f32 %v5264_v10, %v5469_v51  ;;  %v1485_v10 = vadd.f32 %v5288_v18, %v5489_v59  ;;  %v1495_v18 = vadd.f32 %v5311_v56, %v5509_v3  ;;  %v1505_v56 = vadd.f32 %v5339_v7, %v5529_v34 }
 0x247   :  { %3832 = vmatprep.mubr.msk.f32.mxu1 %vm3916_vm1, %v3915_v14 }
 0x248   :  { %v3375_v45 = vpop.f32.mrf.mxu1  ;;  %v5547_v11 = vpop.f32.mrf.mxu0 }
 0x24a   :  { %v5549_v5 = vpop.f32.mrf.mxu1  ;;  %3833 = vmatmul.mubr.msk.f32.gmra.mxu1 %vm739_vm2, %v3889_v20  ;;  %v3558_v22 = vpop.f32.mrf.mxu0 }
 0x24b   :  { %3835 = vmatprep.mubr.msk.f32.mxu1 %vm3916_vm1, %v3915_v14  ;;  %v1515_v7 = vadd.f32 %v5375_v29, %v5549_v5 }
 0x24c   :  { %v3378_v36 = vpop.f32.mrf.mxu1  ;;  %v5557_v26 = vpop.f32.mrf.mxu0 }
 0x24e   :  { %v5559_v1 = vpop.f32.mrf.mxu1  ;;  %3836 = vmatmul.mubr.msk.f32.gmra.mxu1 %vm739_vm2, %v3890_v55  ;;  %v3636_v19 = vpop.f32.mrf.mxu0  ;;  %v1480_v55 = vadd.f32 %v5276_v32, %v5479_v27  ;;  %v1490_v32 = vadd.f32 %v5299_v49, %v5499_v16  ;;  %v1500_v49 = vadd.f32 %v5325_v42, %v5519_v13  ;;  %v1510_v42 = vadd.f32 %v5357_v38, %v5539_v37 }
 0x24f   :  { %3838 = vmatprep.mubr.msk.f32.mxu1 %vm3916_vm1, %v3915_v14  ;;  %v1520_v38 = vadd.f32 %v5389_v9, %v5559_v1 }
 0x250   :  { %v3381_v41 = vpop.f32.mrf.mxu1  ;;  %v5567_v23 = vpop.f32.mrf.mxu0 }
 0x252   :  { %v5569_v47 = vpop.f32.mrf.mxu1  ;;  %3839 = vmatmul.mubr.msk.f32.gmra.mxu1 %vm739_vm2, %v3891_v12  ;;  %v3639_v50 = vpop.f32.mrf.mxu0 }
 0x253   :  { %3841 = vmatprep.mubr.msk.f32.mxu1 %vm3916_vm1, %v3915_v14  ;;  %v1525_v29 = vadd.f32 %v5403_v15, %v5569_v47 }
 0x254   :  { %v3384_v31 = vpop.f32.mrf.mxu1  ;;  %v5577_v63 = vpop.f32.mrf.mxu0 }
 0x256   :  { %v5579_v44 = vpop.f32.mrf.mxu1  ;;  %3842 = vmatmul.mubr.msk.f32.gmra.mxu1 %vm739_vm2, %v3892_v57  ;;  %v3642_v6 = vpop.f32.mrf.mxu0 }
 0x257   :  { %v1530_v9 = vadd.f32 %v5416_v46, %v5579_v44 }
 0x258   :  { %v3387_v61 = vpop.f32.mrf.mxu1  ;;  %v5585_v8 = vpop.f32.mrf.mxu0 }
 0x25a   :  { %v1599_v24 = vpop.f32.mrf.mxu1  ;;  %v3645_v14 = vpop.f32.mrf.mxu0 }
 0x25b   :  { %v1663_v62 = vadd.f32 %v1599_v24, %v1470_v40 }
 0x25c   :  { %v3465_v17 = vpop.f32.mrf.mxu1  ;;  %v5589_v4 = vpop.f32.mrf.mxu0 }
 0x25d   :  { %1677 = vst [vmem:[#allocation2 + $0x68] sm:$0xff] %v1663_v62 }
 0x25e   :  { %v1604_v30 = vpop.f32.mrf.mxu1  ;;  %v3648_v45 = vpop.f32.mrf.mxu0 }
 0x25f   :  { %v1664_v20 = vadd.f32 %v1604_v30, %v1475_v35 }
 0x260   :  { %v3468_v22 = vpop.f32.mrf.mxu1  ;;  %v5593_v36 = vpop.f32.mrf.mxu0 }
 0x261   :  { %1678 = vst [vmem:[#allocation2 + $0x70] sm:$0xff] %v1664_v20 }
 0x262   :  { %v1609_v0 = vpop.f32.mrf.mxu1  ;;  %v3651_v28 = vpop.f32.mrf.mxu0 }
 0x263   :  { %v1665_v19 = vadd.f32 %v1609_v0, %v1480_v55 }
 0x264   :  { %v3471_v41 = vpop.f32.mrf.mxu1  ;;  %v5597_v12 = vpop.f32.mrf.mxu0 }
 0x265   :  { %1679 = vst [vmem:[#allocation2 + $0x78] sm:$0xff] %v1665_v19 }
 0x266   :  { %v1614_v51 = vpop.f32.mrf.mxu1  ;;  %v3654_v50 = vpop.f32.mrf.mxu0 }
 0x267   :  { %v1666_v31 = vadd.f32 %v1614_v51, %v1485_v10 }
 0x268   :  { %v3474_v57 = vpop.f32.mrf.mxu1  ;;  %v5601_v6 = vpop.f32.mrf.mxu0 }
 0x269   :  { %1680 = vst [vmem:[#allocation2 + $0x80] sm:$0xff] %v1666_v31 }
 0x26a   :  { %v1619_v27 = vpop.f32.mrf.mxu1  ;;  %v3657_v61 = vpop.f32.mrf.mxu0 }
 0x26b   :  { %v1667_v40 = vadd.f32 %v1619_v27, %v1490_v32 }
 0x26c   :  { %v3477_v24 = vpop.f32.mrf.mxu1  ;;  %v5605_v14 = vpop.f32.mrf.mxu0 }
 0x26d   :  { %1681 = vst [vmem:[#allocation2 + $0x88] sm:$0xff] %v1667_v40 }
 0x26e   :  { %v1624_v59 = vpop.f32.mrf.mxu1  ;;  %v3660_v62 = vpop.f32.mrf.mxu0 }
 0x26f   :  { %v1668_v17 = vadd.f32 %v1624_v59, %v1495_v18 }
 0x270   :  { %v3480_v35 = vpop.f32.mrf.mxu1  ;;  %v5609_v30 = vpop.f32.mrf.mxu0 }
 0x271   :  { %1682 = vst [vmem:[#allocation2 + $0x90] sm:$0xff] %v1668_v17 }
 0x272   :  { %v1629_v16 = vpop.f32.mrf.mxu1  ;;  %v3663_v45 = vpop.f32.mrf.mxu0 }
 0x273   :  { %v1669_v20 = vadd.f32 %v1629_v16, %v1500_v49 }
 0x274   :  { %v3483_v22 = vpop.f32.mrf.mxu1  ;;  %v5613_v55 = vpop.f32.mrf.mxu0 }
 0x275   :  { %1683 = vst [vmem:[#allocation2 + $0x98] sm:$0xff] %v1669_v20 }
 0x276   :  { %v1634_v3 = vpop.f32.mrf.mxu1  ;;  %v3666_v0 = vpop.f32.mrf.mxu0 }
 0x277   :  { %v1670_v28 = vadd.f32 %v1634_v3, %v1505_v56 }
 0x278   :  { %v3486_v19 = vpop.f32.mrf.mxu1  ;;  %v5617_v41 = vpop.f32.mrf.mxu0 }
 0x279   :  { %1684 = vst [vmem:[#allocation2 + $0xa0] sm:$0xff] %v1670_v28 }
 0x27a   :  { %v1639_v13 = vpop.f32.mrf.mxu1  ;;  %v3669_v10 = vpop.f32.mrf.mxu0 }
 0x27b   :  { %v1671_v51 = vadd.f32 %v1639_v13, %v1510_v42 }
 0x27c   :  { %v3489_v50 = vpop.f32.mrf.mxu1  ;;  %v5621_v31 = vpop.f32.mrf.mxu0 }
 0x27d   :  { %1685 = vst [vmem:[#allocation2 + $0xa8] sm:$0xff] %v1671_v51 }
 0x27e   :  { %v1644_v34 = vpop.f32.mrf.mxu1  ;;  %v3672_v57 = vpop.f32.mrf.mxu0 }
 0x27f   :  { %v1672_v32 = vadd.f32 %v1644_v34, %v1515_v7 }
 0x280   :  { %v3492_v27 = vpop.f32.mrf.mxu1  ;;  %v5625_v61 = vpop.f32.mrf.mxu0 }
 0x281   :  { %1686 = vst [vmem:[#allocation2 + $0xb0] sm:$0xff] %v1672_v32 }
 0x282   :  { %v1649_v37 = vpop.f32.mrf.mxu1  ;;  %v3750_v40 = vpop.f32.mrf.mxu0 }
 0x283   :  { %v1673_v24 = vadd.f32 %v1649_v37, %v1520_v38 }
 0x284   :  { %v3495_v18 = vpop.f32.mrf.mxu1  ;;  %v5629_v59 = vpop.f32.mrf.mxu0 }
 0x285   :  { %1687 = vst [vmem:[#allocation2 + $0xb8] sm:$0xff] %v1673_v24 }
 0x286   :  { %v1654_v5 = vpop.f32.mrf.mxu1  ;;  %v3753_v62 = vpop.f32.mrf.mxu0 }
 0x287   :  { %v1674_v17 = vadd.f32 %v1654_v5, %v1525_v29 }
 0x288   :  { %v3498_v35 = vpop.f32.mrf.mxu1  ;;  %v5633_v49 = vpop.f32.mrf.mxu0 }
 0x289   :  { %1688 = vst [vmem:[#allocation2 + $0xc0] sm:$0xff] %v1674_v17 }
 0x28a   :  { %v1659_v1 = vpop.f32.mrf.mxu1  ;;  %v3756_v16 = vpop.f32.mrf.mxu0 }
 0x28b   :  { %v1675_v45 = vadd.f32 %v1659_v1, %v1530_v9 }
 0x28c   :  { %v3501_v20 = vpop.f32.mrf.mxu1  ;;  %v5637_v22 = vpop.f32.mrf.mxu0 }
 0x28d   :  { %1689 = vst [vmem:[#allocation2 + $0xc8] sm:$0xff] %v1675_v45 }
 0x28e   :  { %v1886_v56 = vpop.f32.mrf.mxu1  ;;  %v3759_v15 = vpop.f32.mrf.mxu0 }
 0x28f   :  { %v1887_v47 = vadd.f32 %v1886_v56, %v5426_v52 }
 0x290   :  { %v3579_v3 = vpop.f32.mrf.mxu1 }
 0x291   :  { %v2080_v0 = vadd.f32 %v5557_v26, %v1887_v47 }
 0x292   :  { %v1891_v28 = vpop.f32.mrf.mxu1 }
 0x293   :  { %2094 = vst [vmem:[#allocation2 + $0xd0] sm:$0xff] %v2080_v0  ;;  %v1892_v19 = vadd.f32 %v1891_v28, %v5436_v21 }
 0x294   :  { %v3582_v46 = vpop.f32.mrf.mxu1 }
 0x295   :  { %v2081_v44 = vadd.f32 %v5567_v23, %v1892_v19  ;;  %v5643_v42 = vpop.f32.mrf.mxu0 }
 0x296   :  { %v1896_v13 = vpop.f32.mrf.mxu1 }
 0x297   :  { %2095 = vst [vmem:[#allocation2 + $0xd8] sm:$0xff] %v2081_v44  ;;  %v1897_v10 = vadd.f32 %v1896_v13, %v5446_v25  ;;  %v3762_v51 = vpop.f32.mrf.mxu0 }
 0x298   :  { %v3585_v50 = vpop.f32.mrf.mxu1 }
 0x299   :  { %v2082_v52 = vadd.f32 %v5577_v63, %v1897_v10  ;;  %v5647_v7 = vpop.f32.mrf.mxu0 }
 0x29a   :  { %v1901_v26 = vpop.f32.mrf.mxu1 }
 0x29b   :  { %2096 = vst [vmem:[#allocation2 + $0xe0] sm:$0xff] %v2082_v52  ;;  %v1902_v34 = vadd.f32 %v1901_v26, %v5456_v39  ;;  %v3765_v21 = vpop.f32.mrf.mxu0 }
 0x29c   :  { %v3588_v57 = vpop.f32.mrf.mxu1 }
 0x29d   :  { %v2083_v23 = vadd.f32 %v5585_v8, %v1902_v34  ;;  %v5651_v32 = vpop.f32.mrf.mxu0 }
 0x29e   :  { %v1906_v27 = vpop.f32.mrf.mxu1 }
 0x29f   :  { %2097 = vst [vmem:[#allocation2 + $0xe8] sm:$0xff] %v2083_v23  ;;  %v1907_v25 = vadd.f32 %v1906_v27, %v5467_v48  ;;  %v3768_v38 = vpop.f32.mrf.mxu0 }
 0x2a0   :  { %v3591_v37 = vpop.f32.mrf.mxu1 }
 0x2a1   :  { %v2084_v63 = vadd.f32 %v5589_v4, %v1907_v25  ;;  %v5655_v40 = vpop.f32.mrf.mxu0 }
 0x2a2   :  { %v1911_v24 = vpop.f32.mrf.mxu1 }
 0x2a3   :  { %2098 = vst [vmem:[#allocation2 + $0xf0] sm:$0xff] %v2084_v63  ;;  %v1912_v39 = vadd.f32 %v1911_v24, %v5477_v53  ;;  %v3771_v18 = vpop.f32.mrf.mxu0 }
 0x2a4   :  { %v3594_v29 = vpop.f32.mrf.mxu1 }
 0x2a5   :  { %v2085_v8 = vadd.f32 %v5593_v36, %v1912_v39  ;;  %v5659_v5 = vpop.f32.mrf.mxu0 }
 0x2a6   :  { %v1916_v62 = vpop.f32.mrf.mxu1 }
 0x2a7   :  { %2099 = vst [vmem:[#allocation2 + $0xf8] sm:$0xff] %v2085_v8  ;;  %v1917_v48 = vadd.f32 %v1916_v62, %v5487_v54  ;;  %v3774_v17 = vpop.f32.mrf.mxu0 }
 0x2a8   :  { %v3597_v35 = vpop.f32.mrf.mxu1 }
 0x2a9   :  { %v2086_v4 = vadd.f32 %v5597_v12, %v1917_v48  ;;  %v5663_v9 = vpop.f32.mrf.mxu0 }
 0x2aa   :  { %v1921_v1 = vpop.f32.mrf.mxu1 }
 0x2ab   :  { %2100 = vst [vmem:[#allocation2 + $0x100] sm:$0xff] %v2086_v4  ;;  %v1922_v53 = vadd.f32 %v1921_v1, %v5497_v60  ;;  %v3777_v16 = vpop.f32.mrf.mxu0 }
 0x2ac   :  { %v3600_v45 = vpop.f32.mrf.mxu1 }
 0x2ad   :  { %v2087_v36 = vadd.f32 %v5601_v6, %v1922_v53  ;;  %v5667_v20 = vpop.f32.mrf.mxu0 }
 0x2ae   :  { %v1926_v56 = vpop.f32.mrf.mxu1 }
 0x2af   :  { %2101 = vst [vmem:[#allocation2 + $0x108] sm:$0xff] %v2087_v36  ;;  %v1927_v54 = vadd.f32 %v1926_v56, %v5507_v43  ;;  %v3780_v15 = vpop.f32.mrf.mxu0 }
 0x2b0   :  { %v3603_v47 = vpop.f32.mrf.mxu1 }
 0x2b1   :  { %v2088_v12 = vadd.f32 %v5605_v14, %v1927_v54  ;;  %v5671_v3 = vpop.f32.mrf.mxu0 }
 0x2b2   :  { %v1931_v0 = vpop.f32.mrf.mxu1 }
 0x2b3   :  { %2102 = vst [vmem:[#allocation2 + $0x110] sm:$0xff] %v2088_v12  ;;  %v1932_v60 = vadd.f32 %v1931_v0, %v5517_v58  ;;  %v3783_v28 = vpop.f32.mrf.mxu0 }
 0x2b4   :  { %v3606_v19 = vpop.f32.mrf.mxu1 }
 0x2b5   :  { %v2089_v6 = vadd.f32 %v5609_v30, %v1932_v60  ;;  %v5675_v46 = vpop.f32.mrf.mxu0 }
 0x2b6   :  { %v1936_v44 = vpop.f32.mrf.mxu1 }
 0x2b7   :  { %2103 = vst [vmem:[#allocation2 + $0x118] sm:$0xff] %v2089_v6  ;;  %v1937_v43 = vadd.f32 %v1936_v44, %v5527_v33  ;;  %v3786_v13 = vpop.f32.mrf.mxu0 }
 0x2b8   :  { %v3609_v10 = vpop.f32.mrf.mxu1 }
 0x2b9   :  { %v2090_v14 = vadd.f32 %v5613_v55, %v1937_v43  ;;  %v2433_v51 = vpop.f32.mrf.mxu0 }
 0x2ba   :  { %v1941_v50 = vpop.f32.mrf.mxu1 }
 0x2bb   :  { %2104 = vst [vmem:[#allocation2 + $0x120] sm:$0xff] %v2090_v14  ;;  %v1942_v52 = vadd.f32 %v1941_v50, %v5537_v2  ;;  %v3807_v58 = vpop.f32.mrf.mxu0 }
 0x2bc   :  { %v3612_v26 = vpop.f32.mrf.mxu1 }
 0x2bd   :  { %v2091_v34 = vadd.f32 %v5617_v41, %v1942_v52  ;;  %v2438_v30 = vpop.f32.mrf.mxu0 }
 0x2be   :  { %v1946_v21 = vpop.f32.mrf.mxu1 }
 0x2bf   :  { %2105 = vst [vmem:[#allocation2 + $0x128] sm:$0xff] %v2091_v34  ;;  %v1947_v57 = vadd.f32 %v1946_v21, %v5547_v11  ;;  %v3810_v23 = vpop.f32.mrf.mxu0 }
 0x2c0   :  { %v3615_v33 = vpop.f32.mrf.mxu1 }
 0x2c1   :  { %v2092_v27 = vadd.f32 %v5621_v31, %v1947_v57  ;;  %v2443_v25 = vpop.f32.mrf.mxu0 }
 0x2c2   :  { %v2173_v55 = vpop.f32.mrf.mxu1 }
 0x2c3   :  { %2106 = vst [vmem:[#allocation2 + $0x130] sm:$0xff] %v2092_v27  ;;  %v2304_v38 = vadd.f32 %v5625_v61, %v2173_v55  ;;  %v3813_v37 = vpop.f32.mrf.mxu0 }
 0x2c4   :  { %v3693_v2 = vpop.f32.mrf.mxu1 }
 0x2c5   :  { %v2497_v63 = vadd.f32 %v2433_v51, %v2304_v38  ;;  %v2448_v24 = vpop.f32.mrf.mxu0 }
 0x2c6   :  { %v2178_v39 = vpop.f32.mrf.mxu1 }
 0x2c7   :  { %v2309_v41 = vadd.f32 %v5629_v59, %v2178_v39  ;;  %2511 = vst [vmem:[#allocation2 + $0x138] sm:$0xff] %v2497_v63  ;;  %v3816_v18 = vpop.f32.mrf.mxu0 }
 0x2c8   :  { %v3696_v29 = vpop.f32.mrf.mxu1 }
 0x2c9   :  { %v2498_v11 = vadd.f32 %v2438_v30, %v2309_v41 }
 0x2ca   :  { %v2183_v8 = vpop.f32.mrf.mxu1 }
 0x2cb   :  { %v2314_v62 = vadd.f32 %v5633_v49, %v2183_v8  ;;  %2512 = vst [vmem:[#allocation2 + $0x140] sm:$0xff] %v2498_v11 }
 0x2cc   :  { %v3699_v31 = vpop.f32.mrf.mxu1 }
 0x2cd   :  { %v2499_v48 = vadd.f32 %v2443_v25, %v2314_v62 }
 0x2ce   :  { %v2188_v17 = vpop.f32.mrf.mxu1 }
 0x2cf   :  { %v2319_v61 = vadd.f32 %v5637_v22, %v2188_v17  ;;  %2513 = vst [vmem:[#allocation2 + $0x148] sm:$0xff] %v2499_v48 }
 0x2d0   :  { %v3702_v35 = vpop.f32.mrf.mxu1 }
 0x2d1   :  { %v2500_v4 = vadd.f32 %v2448_v24, %v2319_v61 }
 0x2d2   :  { %v2193_v1 = vpop.f32.mrf.mxu1 }
 0x2d3   :  { %2514 = vst [vmem:[#allocation2 + $0x150] sm:$0xff] %v2500_v4  ;;  %v2324_v44 = vadd.f32 %v5643_v42, %v2193_v1 }
 0x2d4   :  { %v3705_v53 = vpop.f32.mrf.mxu1 }
 0x2d6   :  { %v2198_v59 = vpop.f32.mrf.mxu1 }
 0x2d7   :  { %v2329_v14 = vadd.f32 %v5647_v7, %v2198_v59 }
 0x2d8   :  { %v3708_v16 = vpop.f32.mrf.mxu1 }
 0x2da   :  { %v2203_v45 = vpop.f32.mrf.mxu1 }
 0x2db   :  { %v2334_v58 = vadd.f32 %v5651_v32, %v2203_v45 }
 0x2dc   :  { %v3711_v36 = vpop.f32.mrf.mxu1 }
 0x2de   :  { %v2208_v56 = vpop.f32.mrf.mxu1 }
 0x2df   :  { %v2339_v21 = vadd.f32 %v5655_v40, %v2208_v56 }
 0x2e0   :  { %v3714_v54 = vpop.f32.mrf.mxu1 }
 0x2e2   :  { %v2213_v15 = vpop.f32.mrf.mxu1 }
 0x2e3   :  { %v2344_v33 = vadd.f32 %v5659_v5, %v2213_v15 }
 0x2e4   :  { %v3717_v49 = vpop.f32.mrf.mxu1 }
 0x2e6   :  { %v2218_v47 = vpop.f32.mrf.mxu1 }
 0x2e7   :  { %v2349_v55 = vadd.f32 %v5663_v9, %v2218_v47 }
 0x2e8   :  { %v3720_v12 = vpop.f32.mrf.mxu1 }
 0x2ea   :  { %v2223_v0 = vpop.f32.mrf.mxu1 }
 0x2eb   :  { %v2354_v2 = vadd.f32 %v5667_v20, %v2223_v0 }
 0x2ec   :  { %v3723_v60 = vpop.f32.mrf.mxu1 }
 0x2ee   :  { %v2228_v28 = vpop.f32.mrf.mxu1 }
 0x2ef   :  { %v2359_v39 = vadd.f32 %v5671_v3, %v2228_v28 }
 0x2f0   :  { %v3726_v22 = vpop.f32.mrf.mxu1 }
 0x2f2   :  { %v2233_v19 = vpop.f32.mrf.mxu1 }
 0x2f3   :  { %v2364_v9 = vadd.f32 %v5675_v46, %v2233_v19 }
 0x2f4   :  { %v3729_v6 = vpop.f32.mrf.mxu1 }
 0x2f6   :  { %v2453_v43 = vpop.f32.mrf.mxu1 }
 0x2f7   :  { %v2501_v13 = vadd.f32 %v2453_v43, %v2324_v44 }
 0x2f8   :  { %v3819_v10 = vpop.f32.mrf.mxu1 }
 0x2f9   :  { %2515 = vst [vmem:[#allocation2 + $0x158] sm:$0xff] %v2501_v13 }
 0x2fa   :  { %v2458_v51 = vpop.f32.mrf.mxu1 }
 0x2fb   :  { %v2502_v50 = vadd.f32 %v2458_v51, %v2329_v14 }
 0x2fc   :  { %v3822_v52 = vpop.f32.mrf.mxu1 }
 0x2fd   :  { %2516 = vst [vmem:[#allocation2 + $0x160] sm:$0xff] %v2502_v50 }
 0x2fe   :  { %v2463_v26 = vpop.f32.mrf.mxu1 }
 0x2ff   :  { %v2503_v34 = vadd.f32 %v2463_v26, %v2334_v58 }
 0x300   :  { %v3825_v30 = vpop.f32.mrf.mxu1 }
 0x301   :  { %2517 = vst [vmem:[#allocation2 + $0x168] sm:$0xff] %v2503_v34 }
 0x302   :  { %v2468_v57 = vpop.f32.mrf.mxu1 }
 0x303   :  { %v2504_v42 = vadd.f32 %v2468_v57, %v2339_v21 }
 0x304   :  { %v3828_v23 = vpop.f32.mrf.mxu1 }
 0x305   :  { %2518 = vst [vmem:[#allocation2 + $0x170] sm:$0xff] %v2504_v42 }
 0x306   :  { %v2473_v7 = vpop.f32.mrf.mxu1 }
 0x307   :  { %v2505_v27 = vadd.f32 %v2473_v7, %v2344_v33 }
 0x308   :  { %v3831_v25 = vpop.f32.mrf.mxu1 }
 0x309   :  { %2519 = vst [vmem:[#allocation2 + $0x178] sm:$0xff] %v2505_v27 }
 0x30a   :  { %v2478_v32 = vpop.f32.mrf.mxu1 }
 0x30b   :  { %v2506_v38 = vadd.f32 %v2478_v32, %v2349_v55 }
 0x30c   :  { %v3834_v37 = vpop.f32.mrf.mxu1 }
 0x30d   :  { %2520 = vst [vmem:[#allocation2 + $0x180] sm:$0xff] %v2506_v38 }
 0x30e   :  { %v2483_v40 = vpop.f32.mrf.mxu1 }
 0x30f   :  { %v2507_v63 = vadd.f32 %v2483_v40, %v2354_v2 }
 0x310   :  { %v3837_v24 = vpop.f32.mrf.mxu1 }
 0x311   :  { %2521 = vst [vmem:[#allocation2 + $0x188] sm:$0xff] %v2507_v63 }
 0x312   :  { %v2488_v5 = vpop.f32.mrf.mxu1 }
 0x313   :  { %v2508_v41 = vadd.f32 %v2488_v5, %v2359_v39 }
 0x314   :  { %v3840_v18 = vpop.f32.mrf.mxu1 }
 0x315   :  { %2522 = vst [vmem:[#allocation2 + $0x190] sm:$0xff] %v2508_v41 }
 0x316   :  { %v2493_v29 = vpop.f32.mrf.mxu1 }
 0x317   :  { %v2509_v11 = vadd.f32 %v2493_v29, %v2364_v9 }
 0x318   :  { %v3843_v8 = vpop.f32.mrf.mxu1 }
 0x319   :  { %2523 = vst [vmem:[#allocation2 + $0x198] sm:$0xff] %v2509_v11 }
 0x31a   :  { %3904 = shalt.err (!%p3901_p4)
}
 0x31b   :  { %s3918_s12 = smov 128   ;;  %s3919_s13 = smov 8  }
 0x31c   :  { %2535 = dma.vmem_to_hbm [thread:$0]  %s2530_s10, 6656, %s5702_s3, [#allocation3], %s3918_s12, %s3918_s12, %s3919_s13  }
 0x31d   :  { %3913 = dma.done.wait [#allocation3], 6656  }
 0x31e   :  { %3914 = vsyncadd [#allocation3], 4294960640 }
 0x31f   :  { %2539 = vsyncpa [#allocation3], 1 }

// kernel: tpu_custom_call.1
= control target key start
LH: loop header
LB: loop body
LE: loop exit
PB: predicated region body
PF: predicated region fallthrough
CT: control target
= control target key end

     0   :  { %vm63_vm0 = vcmask 261120   ;;  %v3915_v14 = vmov 0.0   ;;  %s5699_s0 = inlined_call_operand.vmem [shape: f32[32,384], index: 0, kind: input, shape index: {}]   ;;  %s5700_s1 = inlined_call_operand.vmem [shape: f32[3,104,72], index: 1, kind: input, shape index: {}]   ;;  %s5701_s2 = inlined_call_operand.vmem [shape: f32[288,32], index: 2, kind: input, shape index: {}]   ;;  %s5702_s3 = inlined_call_operand.hbm [shape: f32[4,104,128], index: 3, kind: output, shape index: {}]  }
   0x1   :  { %v61_v0 = vld [vmem:[%s5699_s0 + $0x50] sm:$0xff]  ;;  %v62_v1 = vld [vmem:[%s5699_s0 + $0x58] sm:$0xff]  ;;  %v60_v2 = vld [vmem:[%s5699_s0 + $0x48] sm:$0xff]  ;;  %236 = vmatprep.mubr.f32.mxu0 %v3915_v14 }
   0x2   :  { %196 = vmatprep.subr.mxu0 %v61_v0  ;;  %3098 = vmatprep.subr.mxu1 %v62_v1  ;;  %v58_v3 = vld [vmem:[%s5699_s0 + $0x38] sm:$0xff]  ;;  %v59_v4 = vld [vmem:[%s5699_s0 + $0x40] sm:$0xff]  ;;  %v57_v5 = vld [vmem:[%s5699_s0 + $0x30] sm:$0xff] }
   0x3   :  { %197 = vmatpush1.msra.mxu0 %v60_v2  ;;  %3099 = vmatpush3.msra.mxu1 %v62_v1  ;;  %v55_v6 = vld [vmem:[%s5699_s0 + $0x20] sm:$0xff]  ;;  %v56_v7 = vld [vmem:[%s5699_s0 + $0x28] sm:$0xff]  ;;  %v54_v8 = vld [vmem:[%s5699_s0 + $0x18] sm:$0xff] }
   0x4   :  { %198 = vmatprep.subr.mxu0 %v58_v3  ;;  %3100 = vmatprep.subr.mxu1 %v59_v4  ;;  %v52_v9 = vld [vmem:[%s5699_s0 + $0x8] sm:$0xff]  ;;  %v53_v10 = vld [vmem:[%s5699_s0 + $0x10] sm:$0xff]  ;;  %v51_v11 = vld [vmem:[%s5699_s0] sm:$0xff] }
   0x5   :  { %199 = vmatpush1.msra.mxu0 %v57_v5  ;;  %3101 = vmatpush3.msra.mxu1 %v59_v4  ;;  %v15_v12 = vld [vmem:[%s5701_s2] sm:$0xff]  ;;  %v16_v13 = vld [vmem:[%s5701_s2 + $0x8] sm:$0xff]  ;;  %v17_v15 = vld [vmem:[%s5701_s2 + $0x10] sm:$0xff] }
   0x6   :  { %200 = vmatprep.subr.mxu0 %v55_v6  ;;  %3102 = vmatprep.subr.mxu1 %v56_v7  ;;  %v18_v16 = vld [vmem:[%s5701_s2 + $0x18] sm:$0xff]  ;;  %v19_v17 = vld [vmem:[%s5701_s2 + $0x20] sm:$0xff] }
   0x7   :  { %201 = vmatpush1.msra.mxu0 %v54_v8  ;;  %3103 = vmatpush3.msra.mxu1 %v56_v7 }
   0x8   :  { %202 = vmatprep.subr.mxu0 %v52_v9  ;;  %3104 = vmatprep.subr.mxu1 %v53_v10 }
   0x9   :  { %203 = vmatpush1.msra.mxu0 %v51_v11  ;;  %3105 = vmatpush3.msra.mxu1 %v53_v10 }
   0xa   :  { %3106 = vmatprep.mubr.msk.f32.mxu1 %vm63_vm0, %v15_v12  ;;  %2540 = vmatmul.mubr.msk.f32.vlgmr.msra.gmra.mxu0 %vm63_vm0, %v15_v12 }
   0xb   :  { %3107 = vmatmul.mubr.msk.f32.vlgmr.msra.gmra.mxu1 %vm63_vm0, %v16_v13  ;;  %242 = vmatprep.mubr.f32.mxu0 %v3915_v14 }
   0xc   :  { %3109 = vmatprep.mubr.msk.f32.mxu1 %vm63_vm0, %v17_v15  ;;  %3274 = vmatprep.subr.mxu0 %v3915_v14 }
   0xd   :  { %3160 = vmatprep.subr.mxu1 %v3915_v14 }
   0xe   :  { %8 = vsyncpa [#allocation3], 0  ;;  %2541 = vmatmul.mubr.msk.f32.gmra.mxu0 %vm63_vm0, %v16_v13  ;;  %v20_v18 = vld [vmem:[%s5701_s2 + $0x28] sm:$0xff]  ;;  %v21_v19 = vld [vmem:[%s5701_s2 + $0x30] sm:$0xff]  ;;  %vm3916_vm1 = vmmov 0   ;;  %vm739_vm2 = vcmask 588800  }
   0xf   :  { %3110 = vmatmul.mubr.msk.f32.gmra.mxu1 %vm63_vm0, %v18_v16  ;;  %248 = vmatprep.mubr.f32.mxu0 %v3915_v14  ;;  %v22_v20 = vld [vmem:[%s5701_s2 + $0x38] sm:$0xff]  ;;  %v23_v21 = vld [vmem:[%s5701_s2 + $0x40] sm:$0xff]  ;;  %v24_v22 = vld [vmem:[%s5701_s2 + $0x48] sm:$0xff] }
  0x10   :  { %3112 = vmatprep.mubr.msk.f32.mxu1 %vm63_vm0, %v19_v17  ;;  %v25_v23 = vld [vmem:[%s5701_s2 + $0x50] sm:$0xff]  ;;  %v26_v24 = vld [vmem:[%s5701_s2 + $0x58] sm:$0xff]  ;;  %v27_v25 = vld [vmem:[%s5701_s2 + $0x60] sm:$0xff] }
  0x11   :  { %v28_v26 = vld [vmem:[%s5701_s2 + $0x68] sm:$0xff]  ;;  %v29_v27 = vld [vmem:[%s5701_s2 + $0x70] sm:$0xff]  ;;  %v30_v28 = vld [vmem:[%s5701_s2 + $0x78] sm:$0xff] }
  0x12   :  { %2542 = vmatmul.mubr.msk.f32.gmra.mxu0 %vm63_vm0, %v17_v15  ;;  %v31_v29 = vld [vmem:[%s5701_s2 + $0x80] sm:$0xff]  ;;  %v32_v30 = vld [vmem:[%s5701_s2 + $0x88] sm:$0xff]  ;;  %v33_v31 = vld [vmem:[%s5701_s2 + $0x90] sm:$0xff] }
  0x13   :  { %3113 = vmatmul.mubr.msk.f32.gmra.mxu1 %vm63_vm0, %v20_v18  ;;  %254 = vmatprep.mubr.f32.mxu0 %v3915_v14  ;;  %v34_v32 = vld [vmem:[%s5701_s2 + $0x98] sm:$0xff]  ;;  %v35_v33 = vld [vmem:[%s5701_s2 + $0xa0] sm:$0xff]  ;;  %v36_v34 = vld [vmem:[%s5701_s2 + $0xa8] sm:$0xff] }
  0x14   :  { %3115 = vmatprep.mubr.msk.f32.mxu1 %vm63_vm0, %v21_v19  ;;  %v37_v35 = vld [vmem:[%s5701_s2 + $0xb0] sm:$0xff]  ;;  %v38_v36 = vld [vmem:[%s5701_s2 + $0xb8] sm:$0xff]  ;;  %v39_v37 = vld [vmem:[%s5701_s2 + $0xc0] sm:$0xff] }
  0x15   :  { %v40_v38 = vld [vmem:[%s5701_s2 + $0xc8] sm:$0xff]  ;;  %v41_v39 = vld [vmem:[%s5701_s2 + $0xd0] sm:$0xff]  ;;  %v42_v40 = vld [vmem:[%s5701_s2 + $0xd8] sm:$0xff] }
  0x16   :  { %2543 = vmatmul.mubr.msk.f32.gmra.mxu0 %vm63_vm0, %v18_v16  ;;  %v43_v41 = vld [vmem:[%s5701_s2 + $0xe0] sm:$0xff]  ;;  %v44_v42 = vld [vmem:[%s5701_s2 + $0xe8] sm:$0xff]  ;;  %v45_v43 = vld [vmem:[%s5701_s2 + $0xf0] sm:$0xff] }
  0x17   :  { %3116 = vmatmul.mubr.msk.f32.gmra.mxu1 %vm63_vm0, %v22_v20  ;;  %260 = vmatprep.mubr.f32.mxu0 %v3915_v14  ;;  %v46_v44 = vld [vmem:[%s5701_s2 + $0xf8] sm:$0xff]  ;;  %v47_v45 = vld [vmem:[%s5701_s2 + $0x100] sm:$0xff]  ;;  %v48_v46 = vld [vmem:[%s5701_s2 + $0x108] sm:$0xff] }
  0x18   :  { %3118 = vmatprep.mubr.msk.f32.mxu1 %vm63_vm0, %v23_v21  ;;  %v49_v47 = vld [vmem:[%s5701_s2 + $0x110] sm:$0xff]  ;;  %v50_v48 = vld [vmem:[%s5701_s2 + $0x118] sm:$0xff] }
  0x19   :  { %v4230_v12 = vld [vmem:[%s5700_s1 + $0xd0] sm:$0xff]  ;;  %v4243_v16 = vld [vmem:[%s5700_s1 + $0xd8] sm:$0xff] }
  0x1a   :  { %2544 = vmatmul.mubr.msk.f32.gmra.mxu0 %vm63_vm0, %v19_v17 }
  0x1b   :  { %3119 = vmatmul.mubr.msk.f32.gmra.mxu1 %vm63_vm0, %v24_v22  ;;  %266 = vmatprep.mubr.f32.mxu0 %v3915_v14 }
  0x1c   :  { %3121 = vmatprep.mubr.msk.f32.mxu1 %vm63_vm0, %v25_v23 }
  0x1e   :  { %2545 = vmatmul.mubr.msk.f32.gmra.mxu0 %vm63_vm0, %v20_v18 }
  0x1f   :  { %3122 = vmatmul.mubr.msk.f32.gmra.mxu1 %vm63_vm0, %v26_v24  ;;  %272 = vmatprep.mubr.f32.mxu0 %v3915_v14 }
  0x20   :  { %3124 = vmatprep.mubr.msk.f32.mxu1 %vm63_vm0, %v27_v25 }
  0x22   :  { %2546 = vmatmul.mubr.msk.f32.gmra.mxu0 %vm63_vm0, %v21_v19  ;;  %v4259_v19 = vld [vmem:[%s5700_s1 + $0xe0] sm:$0xff] }
  0x23   :  { %3125 = vmatmul.mubr.msk.f32.gmra.mxu1 %vm63_vm0, %v28_v26  ;;  %278 = vmatprep.mubr.f32.mxu0 %v3915_v14 }
  0x24   :  { %3127 = vmatprep.mubr.msk.f32.mxu1 %vm63_vm0, %v29_v27 }
  0x26   :  { %2547 = vmatmul.mubr.msk.f32.gmra.mxu0 %vm63_vm0, %v22_v20 }
  0x27   :  { %3128 = vmatmul.mubr.msk.f32.gmra.mxu1 %vm63_vm0, %v30_v28  ;;  %284 = vmatprep.mubr.f32.mxu0 %v3915_v14 }
  0x28   :  { %3130 = vmatprep.mubr.msk.f32.mxu1 %vm63_vm0, %v31_v29 }
  0x2a   :  { %2548 = vmatmul.mubr.msk.f32.gmra.mxu0 %vm63_vm0, %v23_v21 }
  0x2b   :  { %3131 = vmatmul.mubr.msk.f32.gmra.mxu1 %vm63_vm0, %v32_v30  ;;  %290 = vmatprep.mubr.f32.mxu0 %v3915_v14 }
  0x2c   :  { %3133 = vmatprep.mubr.msk.f32.mxu1 %vm63_vm0, %v33_v31 }
  0x2e   :  { %2549 = vmatmul.mubr.msk.f32.gmra.mxu0 %vm63_vm0, %v24_v22  ;;  %v4274_v22 = vld [vmem:[%s5700_s1 + $0xe8] sm:$0xff] }
  0x2f   :  { %3134 = vmatmul.mubr.msk.f32.gmra.mxu1 %vm63_vm0, %v34_v32  ;;  %296 = vmatprep.mubr.f32.mxu0 %v3915_v14 }
  0x30   :  { %3136 = vmatprep.mubr.msk.f32.mxu1 %vm63_vm0, %v35_v33 }
  0x32   :  { %2550 = vmatmul.mubr.msk.f32.gmra.mxu0 %vm63_vm0, %v25_v23 }
  0x33   :  { %3137 = vmatmul.mubr.msk.f32.gmra.mxu1 %vm63_vm0, %v36_v34  ;;  %302 = vmatprep.mubr.f32.mxu0 %v3915_v14 }
  0x34   :  { %3139 = vmatprep.mubr.msk.f32.mxu1 %vm63_vm0, %v37_v35 }
  0x36   :  { %2551 = vmatmul.mubr.msk.f32.gmra.mxu0 %vm63_vm0, %v26_v24 }
  0x37   :  { %3140 = vmatmul.mubr.msk.f32.gmra.mxu1 %vm63_vm0, %v38_v36  ;;  %308 = vmatprep.mubr.f32.mxu0 %v3915_v14 }
  0x38   :  { %3142 = vmatprep.mubr.msk.f32.mxu1 %vm63_vm0, %v39_v37 }
  0x3a   :  { %2552 = vmatmul.mubr.msk.f32.gmra.mxu0 %vm63_vm0, %v27_v25  ;;  %v4289_v25 = vld [vmem:[%s5700_s1 + $0x68] sm:$0xff] }
  0x3b   :  { %3143 = vmatmul.mubr.msk.f32.gmra.mxu1 %vm63_vm0, %v40_v38  ;;  %314 = vmatprep.mubr.f32.mxu0 %v3915_v14 }
  0x3c   :  { %3145 = vmatprep.mubr.msk.f32.mxu1 %vm63_vm0, %v41_v39 }
  0x3e   :  { %2553 = vmatmul.mubr.msk.f32.gmra.mxu0 %vm63_vm0, %v28_v26 }
  0x3f   :  { %3146 = vmatmul.mubr.msk.f32.gmra.mxu1 %vm63_vm0, %v42_v40  ;;  %320 = vmatprep.mubr.f32.mxu0 %v3915_v14 }
  0x40   :  { %3148 = vmatprep.mubr.msk.f32.mxu1 %vm63_vm0, %v43_v41 }
  0x42   :  { %2554 = vmatmul.mubr.msk.f32.gmra.mxu0 %vm63_vm0, %v29_v27  ;;  %v4300_v27 = vld [vmem:[%s5700_s1 + $0xf0] sm:$0xff] }
  0x43   :  { %326 = vmatprep.mubr.f32.mxu0 %v3915_v14  ;;  %3149 = vmatmul.mubr.msk.f32.gmra.mxu1 %vm63_vm0, %v44_v42 }
  0x44   :  { %3151 = vmatprep.mubr.msk.f32.mxu1 %vm63_vm0, %v45_v43 }
  0x46   :  { %2555 = vmatmul.mubr.msk.f32.gmra.mxu0 %vm63_vm0, %v30_v28 }
  0x47   :  { %332 = vmatprep.mubr.f32.mxu0 %v3915_v14  ;;  %3152 = vmatmul.mubr.msk.f32.gmra.mxu1 %vm63_vm0, %v46_v44 }
  0x48   :  { %3154 = vmatprep.mubr.msk.f32.mxu1 %vm63_vm0, %v47_v45 }
  0x4a   :  { %2556 = vmatmul.mubr.msk.f32.gmra.mxu0 %vm63_vm0, %v31_v29  ;;  %v4312_v29 = vld [vmem:[%s5700_s1 + $0x70] sm:$0xff] }
  0x4b   :  { %338 = vmatprep.mubr.f32.mxu0 %v3915_v14  ;;  %3155 = vmatmul.mubr.msk.f32.gmra.mxu1 %vm63_vm0, %v48_v46 }
  0x4c   :  { %3157 = vmatprep.mubr.msk.f32.mxu1 %vm63_vm0, %v49_v47 }
  0x4e   :  { %2557 = vmatmul.mubr.msk.f32.gmra.mxu0 %vm63_vm0, %v32_v30 }
  0x4f   :  { %344 = vmatprep.mubr.f32.mxu0 %v3915_v14  ;;  %3158 = vmatmul.mubr.msk.f32.gmra.mxu1 %vm63_vm0, %v50_v48 }
  0x50   :  { %3178 = vmatprep.mubr.msk.f32.mxu1 %vm3916_vm1, %v3915_v14 }
  0x52   :  { %2558 = vmatmul.mubr.msk.f32.gmra.mxu0 %vm63_vm0, %v33_v31  ;;  %v4324_v31 = vld [vmem:[%s5700_s1 + $0xf8] sm:$0xff] }
  0x53   :  { %350 = vmatprep.mubr.f32.mxu0 %v3915_v14 }
  0x56   :  { %2559 = vmatmul.mubr.msk.f32.gmra.mxu0 %vm63_vm0, %v34_v32 }
  0x57   :  { %356 = vmatprep.mubr.f32.mxu0 %v3915_v14 }
  0x5a   :  { %2560 = vmatmul.mubr.msk.f32.gmra.mxu0 %vm63_vm0, %v35_v33  ;;  %v4337_v33 = vld [vmem:[%s5700_s1 + $0x78] sm:$0xff] }
  0x5b   :  { %362 = vmatprep.mubr.f32.mxu0 %v3915_v14 }
  0x5e   :  { %2561 = vmatmul.mubr.msk.f32.gmra.mxu0 %vm63_vm0, %v36_v34 }
  0x5f   :  { %368 = vmatprep.mubr.f32.mxu0 %v3915_v14 }
  0x62   :  { %2562 = vmatmul.mubr.msk.f32.gmra.mxu0 %vm63_vm0, %v37_v35  ;;  %v4350_v35 = vld [vmem:[%s5700_s1 + $0x100] sm:$0xff] }
  0x63   :  { %374 = vmatprep.mubr.f32.mxu0 %v3915_v14 }
  0x66   :  { %2563 = vmatmul.mubr.msk.f32.gmra.mxu0 %vm63_vm0, %v38_v36 }
  0x67   :  { %380 = vmatprep.mubr.f32.mxu0 %v3915_v14 }
  0x6a   :  { %2564 = vmatmul.mubr.msk.f32.gmra.mxu0 %vm63_vm0, %v39_v37  ;;  %v4361_v37 = vld [vmem:[%s5700_s1 + $0x80] sm:$0xff] }
  0x6b   :  { %386 = vmatprep.mubr.f32.mxu0 %v3915_v14 }
  0x6e   :  { %2565 = vmatmul.mubr.msk.f32.gmra.mxu0 %vm63_vm0, %v40_v38 }
  0x6f   :  { %392 = vmatprep.mubr.f32.mxu0 %v3915_v14 }
  0x72   :  { %2566 = vmatmul.mubr.msk.f32.gmra.mxu0 %vm63_vm0, %v41_v39  ;;  %v4374_v39 = vld [vmem:[%s5700_s1 + $0x108] sm:$0xff] }
  0x73   :  { %398 = vmatprep.mubr.f32.mxu0 %v3915_v14 }
  0x76   :  { %2567 = vmatmul.mubr.msk.f32.gmra.mxu0 %vm63_vm0, %v42_v40 }
  0x77   :  { %404 = vmatprep.mubr.f32.mxu0 %v3915_v14 }
  0x7a   :  { %2568 = vmatmul.mubr.msk.f32.gmra.mxu0 %vm63_vm0, %v43_v41  ;;  %v4385_v41 = vld [vmem:[%s5700_s1 + $0x88] sm:$0xff] }
  0x7b   :  { %410 = vmatprep.mubr.f32.mxu0 %v3915_v14 }
  0x7e   :  { %2569 = vmatmul.mubr.msk.f32.gmra.mxu0 %vm63_vm0, %v44_v42 }
  0x7f   :  { %416 = vmatprep.mubr.f32.mxu0 %v3915_v14 }
  0x82   :  { %2570 = vmatmul.mubr.msk.f32.gmra.mxu0 %vm63_vm0, %v45_v43  ;;  %v4398_v43 = vld [vmem:[%s5700_s1 + $0x110] sm:$0xff] }
  0x83   :  { %422 = vmatprep.mubr.f32.mxu0 %v3915_v14 }
  0x86   :  { %2571 = vmatmul.mubr.msk.f32.gmra.mxu0 %vm63_vm0, %v46_v44 }
  0x87   :  { %428 = vmatprep.mubr.f32.mxu0 %v3915_v14 }
  0x8a   :  { %2572 = vmatmul.mubr.msk.f32.gmra.mxu0 %vm63_vm0, %v47_v45  ;;  %v4409_v45 = vld [vmem:[%s5700_s1 + $0x90] sm:$0xff] }
  0x8b   :  { %434 = vmatprep.mubr.f32.mxu0 %v3915_v14 }
  0x8e   :  { %2573 = vmatmul.mubr.msk.f32.gmra.mxu0 %vm63_vm0, %v48_v46 }
  0x8f   :  { %440 = vmatprep.mubr.f32.mxu0 %v3915_v14 }
  0x92   :  { %2574 = vmatmul.mubr.msk.f32.gmra.mxu0 %vm63_vm0, %v49_v47  ;;  %v4421_v47 = vld [vmem:[%s5700_s1 + $0x118] sm:$0xff] }
  0x93   :  { %446 = vmatprep.mubr.f32.mxu0 %v3915_v14 }
  0x96   :  { %2575 = vmatmul.mubr.msk.f32.gmra.mxu0 %vm63_vm0, %v50_v48 }
  0x97   :  { %3292 = vmatprep.mubr.msk.f32.mxu0 %vm3916_vm1, %v3915_v14 }
  0xca   :  { %v4198_v49 = vpop.f32.mrf.mxu0 }
  0xcb   :  { %v3108_v50 = vpop.f32.mrf.mxu1 }
  0xcc   :  { %v4200_v51 = vpop.f32.mrf.mxu0 }
  0xcd   :  { %v519_v52 = vpop.f32.mrf.mxu1 }
  0xce   :  { %v4202_v53 = vpop.f32.mrf.mxu0 }
  0xcf   :  { %v3111_v54 = vpop.f32.mrf.mxu1 }
  0xd0   :  { %v4204_v55 = vpop.f32.mrf.mxu0 }
  0xd1   :  { %v529_v56 = vpop.f32.mrf.mxu1 }
  0xd2   :  { %v4206_v57 = vpop.f32.mrf.mxu0 }
  0xd3   :  { %v3114_v58 = vpop.f32.mrf.mxu1 }
  0xd4   :  { %v4208_v59 = vpop.f32.mrf.mxu0 }
  0xd5   :  { %v539_v60 = vpop.f32.mrf.mxu1 }
  0xd6   :  { %v4210_v61 = vpop.f32.mrf.mxu0 }
  0xd7   :  { %v3117_v62 = vpop.f32.mrf.mxu1 }
  0xd8   :  { %v258_v63 = vpop.f32.mrf.mxu0 }
  0xd9   :  { %v549_v0 = vpop.f32.mrf.mxu1 }
  0xda   :  { %v4212_v1 = vpop.f32.mrf.mxu0 }
  0xdb   :  { %v4214_v2 = vpop.f32.mrf.mxu1 }
  0xdc   :  { %v264_v3 = vpop.f32.mrf.mxu0 }
  0xdd   :  { %v559_v4 = vpop.f32.mrf.mxu1 }
  0xde   :  { %3275 = vmatpush3.msra.mxu0 %v559_v4  ;;  %v4216_v5 = vpop.f32.mrf.mxu0  ;;  %v4528_v4 = vld [vmem:[%s5700_s1] sm:$0xff] }
  0xdf   :  { %3276 = vmatprep.subr.mxu0 %v3915_v14  ;;  %5725 = vst [vmem:[#allocation7_spill] sm:$0xff] %v4528_v4 }
  0xe0   :  { %3277 = vmatpush3.msra.mxu0 %v3117_v62  ;;  %v270_v6 = vpop.f32.mrf.mxu0  ;;  %v4503_v62 = vld [vmem:[%s5700_s1 + $0x130] sm:$0xff] }
  0xe1   :  { %3278 = vmatprep.subr.mxu0 %v3915_v14  ;;  %5724 = vst [vmem:[#allocation6_spill] sm:$0xff] %v4503_v62 }
  0xe2   :  { %3279 = vmatpush3.msra.mxu0 %v549_v0  ;;  %v4220_v7 = vpop.f32.mrf.mxu0 }
  0xe3   :  { %3280 = vmatprep.subr.mxu0 %v3915_v14 }
  0xe4   :  { %3281 = vmatpush3.msra.mxu0 %v3114_v58  ;;  %v276_v8 = vpop.f32.mrf.mxu0 }
  0xe5   :  { %3282 = vmatprep.subr.mxu0 %v3915_v14 }
  0xe6   :  { %3283 = vmatpush3.msra.mxu0 %v539_v60  ;;  %v280_v9 = vpop.f32.mrf.mxu0  ;;  %v4489_v60 = vld [vmem:[%s5700_s1 + $0xa8] sm:$0xff] }
  0xe7   :  { %3284 = vmatprep.subr.mxu0 %v3915_v14 }
  0xe8   :  { %3285 = vmatpush3.msra.mxu0 %v3111_v54  ;;  %v282_v10 = vpop.f32.mrf.mxu0 }
  0xe9   :  { %3286 = vmatprep.subr.mxu0 %v3915_v14 }
  0xea   :  { %3287 = vmatpush3.msra.mxu0 %v529_v56  ;;  %v286_v11 = vpop.f32.mrf.mxu0 }
  0xeb   :  { %3288 = vmatprep.subr.mxu0 %v3915_v14 }
  0xec   :  { %3289 = vmatpush3.msra.mxu0 %v3108_v50  ;;  %v288_v13 = vpop.f32.mrf.mxu0  ;;  %v4435_v50 = vld [vmem:[%s5700_s1 + $0x98] sm:$0xff] }
  0xed   :  { %3290 = vmatprep.subr.mxu0 %v3915_v14  ;;  %3161 = vmatpush3.msra.mxu1 %v288_v13  ;;  %v4569_v13 = vld [vmem:[%s5700_s1 + $0xc0] sm:$0xff] }
  0xee   :  { %3291 = vmatpush3.msra.mxu0 %v519_v52  ;;  %3162 = vmatprep.subr.mxu1 %v3915_v14  ;;  %v4236_v15 = vpop.f32.mrf.mxu0  ;;  %v4447_v52 = vld [vmem:[%s5700_s1 + $0x120] sm:$0xff] }
  0xef   :  { %3293 = vmatmul.mubr.msk.f32.vlgmr.msra.gmra.mxu0 %vm739_vm2, %v4230_v12  ;;  %3163 = vmatpush3.msra.mxu1 %v282_v10 }
  0xf0   :  { %3295 = vmatprep.mubr.msk.f32.mxu0 %vm3916_vm1, %v3915_v14  ;;  %3164 = vmatprep.subr.mxu1 %v3915_v14  ;;  %v4246_v17 = vpop.f32.mrf.mxu0 }
  0xf1   :  { %3388 = vmatprep.subr.mxu0 %v3915_v14  ;;  %3165 = vmatpush3.msra.mxu1 %v276_v8 }
  0xf2   :  { %3166 = vmatprep.subr.mxu1 %v3915_v14  ;;  %v4252_v18 = vpop.f32.mrf.mxu0 }
  0xf3   :  { %3296 = vmatmul.mubr.msk.f32.gmra.mxu0 %vm739_vm2, %v4243_v16  ;;  %3167 = vmatpush3.msra.mxu1 %v270_v6 }
  0xf4   :  { %3298 = vmatprep.mubr.msk.f32.mxu0 %vm3916_vm1, %v3915_v14  ;;  %3168 = vmatprep.subr.mxu1 %v3915_v14  ;;  %v4262_v20 = vpop.f32.mrf.mxu0 }
  0xf5   :  { %3169 = vmatpush3.msra.mxu1 %v264_v3 }
  0xf6   :  { %3170 = vmatprep.subr.mxu1 %v3915_v14  ;;  %v4267_v21 = vpop.f32.mrf.mxu0 }
  0xf7   :  { %3299 = vmatmul.mubr.msk.f32.gmra.mxu0 %vm739_vm2, %v4259_v19  ;;  %3171 = vmatpush3.msra.mxu1 %v258_v63 }
  0xf8   :  { %3301 = vmatprep.mubr.msk.f32.mxu0 %vm3916_vm1, %v3915_v14  ;;  %3172 = vmatprep.subr.mxu1 %v3915_v14  ;;  %v4277_v23 = vpop.f32.mrf.mxu0 }
  0xf9   :  { %3173 = vmatpush3.msra.mxu1 %v4208_v59 }
  0xfa   :  { %3174 = vmatprep.subr.mxu1 %v3915_v14  ;;  %v4283_v24 = vpop.f32.mrf.mxu0 }
  0xfb   :  { %3302 = vmatmul.mubr.msk.f32.gmra.mxu0 %vm739_vm2, %v4274_v22  ;;  %3175 = vmatpush3.msra.mxu1 %v4204_v55  ;;  %v4461_v55 = vld [vmem:[%s5700_s1 + $0xa0] sm:$0xff] }
  0xfc   :  { %3304 = vmatprep.mubr.msk.f32.mxu0 %vm3916_vm1, %v3915_v14  ;;  %3176 = vmatprep.subr.mxu1 %v3915_v14  ;;  %v4294_v26 = vpop.f32.mrf.mxu0 }
  0xfd   :  { %3177 = vmatpush3.msra.mxu1 %v4200_v51 }
  0xfe   :  { %3179 = vmatmul.mubr.msk.f32.vlgmr.msra.gmra.mxu1 %vm739_vm2, %v4289_v25  ;;  %3217 = vmatprep.subr.mxu1 %v3915_v14  ;;  %v4305_v28 = vpop.f32.mrf.mxu0 }
  0xff   :  { %3218 = vmatpush3.msra.mxu1 %v286_v11  ;;  %3181 = vmatprep.mubr.msk.f32.mxu1 %vm3916_vm1, %v3915_v14 }
 0x100   :  { %3219 = vmatprep.subr.mxu1 %v3915_v14  ;;  %3305 = vmatmul.mubr.msk.f32.gmra.mxu0 %vm739_vm2, %v4300_v27  ;;  %v4317_v30 = vpop.f32.mrf.mxu0 }
 0x101   :  { %3220 = vmatpush3.msra.mxu1 %v280_v9  ;;  %3307 = vmatprep.mubr.msk.f32.mxu0 %vm3916_vm1, %v3915_v14  ;;  %v4554_v9 = vld [vmem:[%s5700_s1 + $0x8] sm:$0xff] }
 0x102   :  { %3182 = vmatmul.mubr.msk.f32.gmra.mxu1 %vm739_vm2, %v4312_v29  ;;  %3221 = vmatprep.subr.mxu1 %v3915_v14  ;;  %v4329_v32 = vpop.f32.mrf.mxu0  ;;  %5726 = vst [vmem:[#allocation8_spill] sm:$0xff] %v4554_v9 }
 0x103   :  { %3222 = vmatpush3.msra.mxu1 %v4220_v7  ;;  %3184 = vmatprep.mubr.msk.f32.mxu1 %vm3916_vm1, %v3915_v14  ;;  %v4545_v7 = vld [vmem:[%s5700_s1 + $0xb8] sm:$0xff] }
 0x104   :  { %3223 = vmatprep.subr.mxu1 %v3915_v14  ;;  %3308 = vmatmul.mubr.msk.f32.gmra.mxu0 %vm739_vm2, %v4324_v31  ;;  %v4342_v34 = vpop.f32.mrf.mxu0 }
 0x105   :  { %3224 = vmatpush3.msra.mxu1 %v4216_v5  ;;  %3310 = vmatprep.mubr.msk.f32.mxu0 %vm3916_vm1, %v3915_v14 }
 0x106   :  { %3185 = vmatmul.mubr.msk.f32.gmra.mxu1 %vm739_vm2, %v4337_v33  ;;  %3225 = vmatprep.subr.mxu1 %v3915_v14  ;;  %v328_v36 = vpop.f32.mrf.mxu0 }
 0x107   :  { %3226 = vmatpush3.msra.mxu1 %v4212_v1  ;;  %3187 = vmatprep.mubr.msk.f32.mxu1 %vm3916_vm1, %v3915_v14  ;;  %v4517_v1 = vld [vmem:[%s5700_s1 + $0xb0] sm:$0xff] }
 0x108   :  { %3227 = vmatprep.subr.mxu1 %v3915_v14  ;;  %3311 = vmatmul.mubr.msk.f32.gmra.mxu0 %vm739_vm2, %v4350_v35  ;;  %v4366_v38 = vpop.f32.mrf.mxu0 }
 0x109   :  { %3228 = vmatpush3.msra.mxu1 %v4210_v61  ;;  %3313 = vmatprep.mubr.msk.f32.mxu0 %vm3916_vm1, %v3915_v14 }
 0x10a   :  { %3188 = vmatmul.mubr.msk.f32.gmra.mxu1 %vm739_vm2, %v4361_v37  ;;  %3229 = vmatprep.subr.mxu1 %v3915_v14  ;;  %v334_v40 = vpop.f32.mrf.mxu0 }
 0x10b   :  { %3230 = vmatpush3.msra.mxu1 %v4206_v57  ;;  %3190 = vmatprep.mubr.msk.f32.mxu1 %vm3916_vm1, %v3915_v14  ;;  %v4475_v57 = vld [vmem:[%s5700_s1 + $0x128] sm:$0xff] }
 0x10c   :  { %3231 = vmatprep.subr.mxu1 %v3915_v14  ;;  %3314 = vmatmul.mubr.msk.f32.gmra.mxu0 %vm739_vm2, %v4374_v39  ;;  %v4390_v42 = vpop.f32.mrf.mxu0  ;;  %5723 = vst [vmem:[#allocation5_spill] sm:$0xff] %v4475_v57 }
 0x10d   :  { %3232 = vmatpush3.msra.mxu1 %v4202_v53  ;;  %3316 = vmatprep.mubr.msk.f32.mxu0 %vm3916_vm1, %v3915_v14 }
 0x10e   :  { %3191 = vmatmul.mubr.msk.f32.gmra.mxu1 %vm739_vm2, %v4385_v41  ;;  %3233 = vmatprep.subr.mxu1 %v3915_v14  ;;  %v340_v44 = vpop.f32.mrf.mxu0 }
 0x10f   :  { %3234 = vmatpush3.msra.mxu1 %v4198_v49  ;;  %3193 = vmatprep.mubr.msk.f32.mxu1 %vm3916_vm1, %v3915_v14  ;;  %v4428_v49 = vpop.f32.mrf.mxu1 }
 0x110   :  { %3317 = vmatmul.mubr.msk.f32.gmra.mxu0 %vm739_vm2, %v4398_v43  ;;  %v4413_v46 = vpop.f32.mrf.mxu0  ;;  %3331 = vmatprep.subr.mxu1 %v3915_v14 }
 0x111   :  { %3319 = vmatprep.mubr.msk.f32.mxu0 %vm3916_vm1, %v3915_v14  ;;  %3389 = vmatpush3.msra.mxu0 %v340_v44  ;;  %v4454_v54 = vpop.f32.mrf.mxu1 }
 0x112   :  { %3194 = vmatmul.mubr.msk.f32.gmra.mxu1 %vm739_vm2, %v4409_v45  ;;  %3390 = vmatprep.subr.mxu0 %v3915_v14  ;;  %v4426_v48 = vpop.f32.mrf.mxu0 }
 0x113   :  { %3196 = vmatprep.mubr.msk.f32.mxu1 %vm3916_vm1, %v3915_v14  ;;  %3391 = vmatpush3.msra.mxu0 %v334_v40  ;;  %v4482_v59 = vpop.f32.mrf.mxu1  ;;  %v4615_v40 = vld [vmem:[%s5700_s1 + $0x20] sm:$0xff] }
 0x114   :  { %3320 = vmatmul.mubr.msk.f32.gmra.mxu0 %vm739_vm2, %v4421_v47  ;;  %3392 = vmatprep.subr.mxu0 %v3915_v14  ;;  %v4440_v51 = vpop.f32.mrf.mxu0 }
 0x115   :  { %3322 = vmatprep.mubr.msk.f32.mxu0 %vm3916_vm1, %v3915_v14  ;;  %3393 = vmatpush3.msra.mxu0 %v328_v36  ;;  %v4510_v0 = vpop.f32.mrf.mxu1 }
 0x116   :  { %3197 = vmatmul.mubr.msk.f32.gmra.mxu1 %vm739_vm2, %v4435_v50  ;;  %3394 = vmatprep.subr.mxu0 %v3915_v14  ;;  %v4452_v53 = vpop.f32.mrf.mxu0 }
 0x117   :  { %3199 = vmatprep.mubr.msk.f32.mxu1 %vm3916_vm1, %v3915_v14  ;;  %3395 = vmatpush3.msra.mxu0 %v4329_v32  ;;  %v4538_v6 = vpop.f32.mrf.mxu1 }
 0x118   :  { %3323 = vmatmul.mubr.msk.f32.gmra.mxu0 %vm739_vm2, %v4447_v52  ;;  %3396 = vmatprep.subr.mxu0 %v3915_v14  ;;  %v4467_v56 = vpop.f32.mrf.mxu0 }
 0x119   :  { %3325 = vmatprep.mubr.msk.f32.mxu0 %vm3916_vm1, %v3915_v14  ;;  %3397 = vmatpush3.msra.mxu0 %v4305_v28  ;;  %v4562_v11 = vpop.f32.mrf.mxu1  ;;  %v4598_v28 = vld [vmem:[%s5700_s1 + $0x18] sm:$0xff] }
 0x11a   :  { %3200 = vmatmul.mubr.msk.f32.gmra.mxu1 %vm739_vm2, %v4461_v55  ;;  %3398 = vmatprep.subr.mxu0 %v3915_v14  ;;  %v4480_v58 = vpop.f32.mrf.mxu0  ;;  %5728 = vst [vmem:[#allocation10_spill] sm:$0xff] %v4598_v28 }
 0x11b   :  { %3202 = vmatprep.mubr.msk.f32.mxu1 %vm3916_vm1, %v3915_v14  ;;  %3399 = vmatpush3.msra.mxu0 %v4283_v24  ;;  %v4591_v24 = vld [vmem:[%s5700_s1 + $0xc8] sm:$0xff] }
 0x11c   :  { %3326 = vmatmul.mubr.msk.f32.gmra.mxu0 %vm739_vm2, %v4475_v57  ;;  %3400 = vmatprep.subr.mxu0 %v3915_v14  ;;  %v4495_v61 = vpop.f32.mrf.mxu0  ;;  %v4633_v57 = vld [vmem:[%s5700_s1 + $0x28] sm:$0xff] }
 0x11d   :  { %3328 = vmatprep.mubr.msk.f32.mxu0 %vm3916_vm1, %v3915_v14  ;;  %3401 = vmatpush3.msra.mxu0 %v4267_v21  ;;  %v4584_v21 = vpop.f32.mrf.mxu1  ;;  %5729 = vst [vmem:[#allocation11_spill] sm:$0xff] %v4633_v57 }
 0x11e   :  { %3203 = vmatmul.mubr.msk.f32.gmra.mxu1 %vm739_vm2, %v4489_v60  ;;  %3402 = vmatprep.subr.mxu0 %v3915_v14  ;;  %v4508_v63 = vpop.f32.mrf.mxu0 }
 0x11f   :  { %3205 = vmatprep.mubr.msk.f32.mxu1 %vm3916_vm1, %v3915_v14  ;;  %3403 = vmatpush3.msra.mxu0 %v4252_v18  ;;  %v4606_v36 = vpop.f32.mrf.mxu1 }
 0x120   :  { %3329 = vmatmul.mubr.msk.f32.gmra.mxu0 %vm739_vm2, %v4503_v62  ;;  %3404 = vmatprep.subr.mxu0 %v3915_v14  ;;  %v4523_v3 = vpop.f32.mrf.mxu0 }
 0x121   :  { %3405 = vmatpush3.msra.mxu0 %v4236_v15  ;;  %3406 = vmatprep.mubr.msk.f32.mxu0 %vm3916_vm1, %v3915_v14  ;;  %v4576_v15 = vld [vmem:[%s5700_s1 + $0x10] sm:$0xff]  ;;  %v4621_v62 = vpop.f32.mrf.mxu1 }
 0x122   :  { %3206 = vmatmul.mubr.msk.f32.gmra.mxu1 %vm739_vm2, %v4517_v1  ;;  %v4535_v5 = vpop.f32.mrf.mxu0  ;;  %3502 = vmatprep.subr.mxu0 %v3915_v14  ;;  %5727 = vst [vmem:[#allocation9_spill] sm:$0xff] %v4576_v15 }
 0x123   :  { %3208 = vmatprep.mubr.msk.f32.mxu1 %vm3916_vm1, %v3915_v14 }
 0x124   :  { %3407 = vmatmul.mubr.msk.f32.vlgmr.msra.gmra.mxu0 %vm739_vm2, %v4528_v4  ;;  %v4549_v8 = vpop.f32.mrf.mxu0 }
 0x125   :  { %3409 = vmatprep.mubr.msk.f32.mxu0 %vm3916_vm1, %v3915_v14 }
 0x126   :  { %3209 = vmatmul.mubr.msk.f32.gmra.mxu1 %vm739_vm2, %v4545_v7  ;;  %v4560_v10 = vpop.f32.mrf.mxu0 }
 0x127   :  { %3211 = vmatprep.mubr.msk.f32.mxu1 %vm3916_vm1, %v3915_v14 }
 0x128   :  { %3410 = vmatmul.mubr.msk.f32.gmra.mxu0 %vm739_vm2, %v4554_v9  ;;  %v4582_v18 = vpop.f32.mrf.mxu0 }
 0x129   :  { %3412 = vmatprep.mubr.msk.f32.mxu0 %vm3916_vm1, %v3915_v14 }
 0x12a   :  { %3212 = vmatmul.mubr.msk.f32.gmra.mxu1 %vm739_vm2, %v4569_v13  ;;  %v4604_v32 = vpop.f32.mrf.mxu0 }
 0x12b   :  { %3214 = vmatprep.mubr.msk.f32.mxu1 %vm3916_vm1, %v3915_v14 }
 0x12c   :  { %3413 = vmatmul.mubr.msk.f32.gmra.mxu0 %vm739_vm2, %v4576_v15  ;;  %v384_v44 = vpop.f32.mrf.mxu0 }
 0x12d   :  { %3415 = vmatprep.mubr.msk.f32.mxu0 %vm3916_vm1, %v3915_v14 }
 0x12e   :  { %3215 = vmatmul.mubr.msk.f32.gmra.mxu1 %vm739_vm2, %v4591_v24 }
 0x12f   :  { %3235 = vmatprep.mubr.msk.f32.mxu1 %vm3916_vm1, %v3915_v14 }
 0x130   :  { %3416 = vmatmul.mubr.msk.f32.gmra.mxu0 %vm739_vm2, %v4598_v28 }
 0x131   :  { %3418 = vmatprep.mubr.msk.f32.mxu0 %vm3916_vm1, %v3915_v14 }
 0x132   :  { %3236 = vmatmul.mubr.msk.f32.vlgmr.msra.gmra.mxu1 %vm739_vm2, %v4528_v4  ;;  %v4642_v4 = vpop.f32.mrf.mxu1 }
 0x133   :  { %3238 = vmatprep.mubr.msk.f32.mxu1 %vm3916_vm1, %v3915_v14  ;;  %3332 = vmatpush3.msra.mxu1 %v4413_v46  ;;  %v4640_v46 = vpop.f32.mrf.mxu0 }
 0x134   :  { %3333 = vmatprep.subr.mxu1 %v3915_v14  ;;  %3419 = vmatmul.mubr.msk.f32.gmra.mxu0 %vm739_vm2, %v4615_v40 }
 0x135   :  { %3334 = vmatpush3.msra.mxu1 %v4390_v42  ;;  %3421 = vmatprep.mubr.msk.f32.mxu0 %vm3916_vm1, %v3915_v14  ;;  %v4654_v42 = vld [vmem:[%s5700_s1 + $0x30] sm:$0xff] }
 0x136   :  { %3239 = vmatmul.mubr.msk.f32.gmra.mxu1 %vm739_vm2, %v4554_v9  ;;  %3335 = vmatprep.subr.mxu1 %v3915_v14  ;;  %5730 = vst [vmem:[#allocation12_spill] sm:$0xff] %v4654_v42  ;;  %v4661_v9 = vpop.f32.mrf.mxu1 }
 0x137   :  { %3241 = vmatprep.mubr.msk.f32.mxu1 %vm3916_vm1, %v3915_v14  ;;  %3336 = vmatpush3.msra.mxu1 %v4366_v38  ;;  %v390_v38 = vpop.f32.mrf.mxu0 }
 0x138   :  { %3337 = vmatprep.subr.mxu1 %v3915_v14  ;;  %3422 = vmatmul.mubr.msk.f32.gmra.mxu0 %vm739_vm2, %v4633_v57 }
 0x139   :  { %3338 = vmatpush3.msra.mxu1 %v4342_v34  ;;  %3424 = vmatprep.mubr.msk.f32.mxu0 %vm3916_vm1, %v3915_v14  ;;  %v4673_v34 = vld [vmem:[%s5700_s1 + $0x38] sm:$0xff] }
 0x13a   :  { %3242 = vmatmul.mubr.msk.f32.gmra.mxu1 %vm739_vm2, %v4576_v15  ;;  %3339 = vmatprep.subr.mxu1 %v3915_v14  ;;  %5731 = vst [vmem:[#allocation13_spill] sm:$0xff] %v4673_v34  ;;  %v4682_v15 = vpop.f32.mrf.mxu1 }
 0x13b   :  { %3244 = vmatprep.mubr.msk.f32.mxu1 %vm3916_vm1, %v3915_v14  ;;  %3340 = vmatpush3.msra.mxu1 %v4317_v30  ;;  %v4680_v30 = vpop.f32.mrf.mxu0 }
 0x13c   :  { %3341 = vmatprep.subr.mxu1 %v3915_v14  ;;  %3425 = vmatmul.mubr.msk.f32.gmra.mxu0 %vm739_vm2, %v4654_v42 }
 0x13d   :  { %3342 = vmatpush3.msra.mxu1 %v4294_v26  ;;  %3427 = vmatprep.mubr.msk.f32.mxu0 %vm3916_vm1, %v3915_v14  ;;  %v4694_v26 = vld [vmem:[%s5700_s1 + $0x40] sm:$0xff] }
 0x13e   :  { %3245 = vmatmul.mubr.msk.f32.gmra.mxu1 %vm739_vm2, %v4598_v28  ;;  %3343 = vmatprep.subr.mxu1 %v3915_v14  ;;  %5732 = vst [vmem:[#allocation14_spill] sm:$0xff] %v4694_v26  ;;  %v4701_v28 = vpop.f32.mrf.mxu1 }
 0x13f   :  { %3247 = vmatprep.mubr.msk.f32.mxu1 %vm3916_vm1, %v3915_v14  ;;  %3344 = vmatpush3.msra.mxu1 %v4277_v23  ;;  %v396_v23 = vpop.f32.mrf.mxu0 }
 0x140   :  { %3345 = vmatprep.subr.mxu1 %v3915_v14  ;;  %3428 = vmatmul.mubr.msk.f32.gmra.mxu0 %vm739_vm2, %v4673_v34 }
 0x141   :  { %3346 = vmatpush3.msra.mxu1 %v4262_v20  ;;  %3430 = vmatprep.mubr.msk.f32.mxu0 %vm3916_vm1, %v3915_v14  ;;  %v4712_v20 = vld [vmem:[%s5700_s1 + $0x48] sm:$0xff] }
 0x142   :  { %3248 = vmatmul.mubr.msk.f32.gmra.mxu1 %vm739_vm2, %v4615_v40  ;;  %3347 = vmatprep.subr.mxu1 %v3915_v14 }
 0x143   :  { %3250 = vmatprep.mubr.msk.f32.mxu1 %vm3916_vm1, %v3915_v14  ;;  %3348 = vmatpush3.msra.mxu1 %v4246_v17  ;;  %v4719_v17 = vpop.f32.mrf.mxu1 }
 0x144   :  { %3431 = vmatmul.mubr.msk.f32.gmra.mxu0 %vm739_vm2, %v4694_v26  ;;  %3445 = vmatprep.subr.mxu1 %v3915_v14 }
 0x145   :  { %3433 = vmatprep.mubr.msk.f32.mxu0 %vm3916_vm1, %v3915_v14  ;;  %3503 = vmatpush3.msra.mxu0 %v396_v23  ;;  %v4729_v23 = vld [vmem:[%s5700_s1 + $0x50] sm:$0xff] }
 0x146   :  { %3251 = vmatmul.mubr.msk.f32.gmra.mxu1 %vm739_vm2, %v4633_v57  ;;  %3504 = vmatprep.subr.mxu0 %v3915_v14  ;;  %v4736_v57 = vpop.f32.mrf.mxu0 }
 0x147   :  { %3253 = vmatprep.mubr.msk.f32.mxu1 %vm3916_vm1, %v3915_v14  ;;  %3505 = vmatpush3.msra.mxu0 %v390_v38  ;;  %v3144_v38 = vpop.f32.mrf.mxu1 }
 0x148   :  { %3434 = vmatmul.mubr.msk.f32.gmra.mxu0 %vm739_vm2, %v4712_v20  ;;  %3506 = vmatprep.subr.mxu0 %v3915_v14 }
 0x149   :  { %3436 = vmatprep.mubr.msk.f32.mxu0 %vm3916_vm1, %v3915_v14  ;;  %3507 = vmatpush3.msra.mxu0 %v384_v44  ;;  %v4747_v44 = vld [vmem:[%s5700_s1 + $0x58] sm:$0xff] }
 0x14a   :  { %3254 = vmatmul.mubr.msk.f32.gmra.mxu1 %vm739_vm2, %v4654_v42  ;;  %3508 = vmatprep.subr.mxu0 %v3915_v14  ;;  %v4755_v42 = vpop.f32.mrf.mxu0 }
 0x14b   :  { %3256 = vmatprep.mubr.msk.f32.mxu1 %vm3916_vm1, %v3915_v14  ;;  %3509 = vmatpush3.msra.mxu0 %v4582_v18  ;;  %v639_v18 = vpop.f32.mrf.mxu1 }
 0x14c   :  { %3437 = vmatmul.mubr.msk.f32.gmra.mxu0 %vm739_vm2, %v4729_v23  ;;  %3510 = vmatprep.subr.mxu0 %v3915_v14 }
 0x14d   :  { %3439 = vmatprep.mubr.msk.f32.mxu0 %vm3916_vm1, %v3915_v14  ;;  %3511 = vmatpush3.msra.mxu0 %v4549_v8  ;;  %v4766_v8 = vld [vmem:[%s5700_s1 + $0x60] sm:$0xff] }
 0x14e   :  { %3257 = vmatmul.mubr.msk.f32.gmra.mxu1 %vm739_vm2, %v4673_v34  ;;  %3512 = vmatprep.subr.mxu0 %v3915_v14  ;;  %v4776_v34 = vpop.f32.mrf.mxu0 }
 0x14f   :  { %3259 = vmatprep.mubr.msk.f32.mxu1 %vm3916_vm1, %v3915_v14  ;;  %3513 = vmatpush3.msra.mxu0 %v4523_v3  ;;  %v4774_v3 = vpop.f32.mrf.mxu1 }
 0x150   :  { %3440 = vmatmul.mubr.msk.f32.gmra.mxu0 %vm739_vm2, %v4747_v44  ;;  %3514 = vmatprep.subr.mxu0 %v3915_v14 }
 0x151   :  { %3442 = vmatprep.mubr.msk.f32.mxu0 %vm3916_vm1, %v3915_v14  ;;  %3515 = vmatpush3.msra.mxu0 %v4495_v61  ;;  %v649_v61 = vpop.f32.mrf.mxu1 }
 0x152   :  { %3260 = vmatmul.mubr.msk.f32.gmra.mxu1 %vm739_vm2, %v4694_v26  ;;  %3516 = vmatprep.subr.mxu0 %v3915_v14  ;;  %v4790_v26 = vpop.f32.mrf.mxu0 }
 0x153   :  { %3262 = vmatprep.mubr.msk.f32.mxu1 %vm3916_vm1, %v3915_v14  ;;  %3517 = vmatpush3.msra.mxu0 %v4467_v56 }
 0x154   :  { %3443 = vmatmul.mubr.msk.f32.gmra.mxu0 %vm739_vm2, %v4766_v8  ;;  %3518 = vmatprep.subr.mxu0 %v3915_v14 }
 0x155   :  { %3519 = vmatpush3.msra.mxu0 %v4440_v51  ;;  %3520 = vmatprep.mubr.msk.f32.mxu0 %vm3916_vm1, %v3915_v14  ;;  %v4801_v51 = vpop.f32.mrf.mxu0 }
 0x156   :  { %3263 = vmatmul.mubr.msk.f32.gmra.mxu1 %vm739_vm2, %v4712_v20  ;;  %3616 = vmatprep.subr.mxu0 %v3915_v14 }
 0x157   :  { %3265 = vmatprep.mubr.msk.f32.mxu1 %vm3916_vm1, %v3915_v14  ;;  %v4813_v56 = vpop.f32.mrf.mxu0 }
 0x158   :  { %3521 = vmatmul.mubr.msk.f32.vlgmr.msra.gmra.mxu0 %vm739_vm2, %v4289_v25 }
 0x159   :  { %3523 = vmatprep.mubr.msk.f32.mxu0 %vm3916_vm1, %v3915_v14  ;;  %3617 = vmatpush3.msra.mxu0 %v649_v61 }
 0x15a   :  { %3266 = vmatmul.mubr.msk.f32.gmra.mxu1 %vm739_vm2, %v4729_v23  ;;  %3618 = vmatprep.subr.mxu0 %v3915_v14 }
 0x15b   :  { %3268 = vmatprep.mubr.msk.f32.mxu1 %vm3916_vm1, %v3915_v14  ;;  %3619 = vmatpush3.msra.mxu0 %v3144_v38  ;;  %v4827_v38 = vpop.f32.mrf.mxu0 }
 0x15c   :  { %3524 = vmatmul.mubr.msk.f32.gmra.mxu0 %vm739_vm2, %v4312_v29  ;;  %3620 = vmatprep.subr.mxu0 %v3915_v14 }
 0x15d   :  { %3526 = vmatprep.mubr.msk.f32.mxu0 %vm3916_vm1, %v3915_v14  ;;  %3621 = vmatpush3.msra.mxu0 %v639_v18 }
 0x15e   :  { %3269 = vmatmul.mubr.msk.f32.gmra.mxu1 %vm739_vm2, %v4747_v44  ;;  %3622 = vmatprep.subr.mxu0 %v3915_v14 }
 0x15f   :  { %3271 = vmatprep.mubr.msk.f32.mxu1 %vm3916_vm1, %v3915_v14  ;;  %3623 = vmatpush3.msra.mxu0 %v4701_v28  ;;  %v4841_v28 = vpop.f32.mrf.mxu0 }
 0x160   :  { %3527 = vmatmul.mubr.msk.f32.gmra.mxu0 %vm739_vm2, %v4337_v33  ;;  %3624 = vmatprep.subr.mxu0 %v3915_v14 }
 0x161   :  { %3529 = vmatprep.mubr.msk.f32.mxu0 %vm3916_vm1, %v3915_v14  ;;  %3625 = vmatpush3.msra.mxu0 %v4719_v17 }
 0x162   :  { %3272 = vmatmul.mubr.msk.f32.gmra.mxu1 %vm739_vm2, %v4766_v8  ;;  %3626 = vmatprep.subr.mxu0 %v3915_v14 }
 0x163   :  { %3349 = vmatprep.mubr.msk.f32.mxu1 %vm3916_vm1, %v3915_v14  ;;  %3627 = vmatpush3.msra.mxu0 %v4661_v9 }
 0x164   :  { %3530 = vmatmul.mubr.msk.f32.gmra.mxu0 %vm739_vm2, %v4361_v37  ;;  %3628 = vmatprep.subr.mxu0 %v3915_v14 }
 0x165   :  { %3532 = vmatprep.mubr.msk.f32.mxu0 %vm3916_vm1, %v3915_v14  ;;  %3629 = vmatpush3.msra.mxu0 %v4682_v15 }
 0x166   :  { %3350 = vmatmul.mubr.msk.f32.vlgmr.msra.gmra.mxu1 %vm739_vm2, %v4289_v25  ;;  %3630 = vmatprep.subr.mxu0 %v3915_v14  ;;  %v4855_v25 = vpop.f32.mrf.mxu0 }
 0x167   :  { %3446 = vmatpush3.msra.mxu1 %v4584_v21  ;;  %3352 = vmatprep.mubr.msk.f32.mxu1 %vm3916_vm1, %v3915_v14  ;;  %v5737_v21 = vld [vmem:[#allocation9_spill] sm:$0xff] }
 0x168   :  { %3447 = vmatprep.subr.mxu1 %v3915_v14  ;;  %3533 = vmatmul.mubr.msk.f32.gmra.mxu0 %vm739_vm2, %v4385_v41 }
 0x169   :  { %3448 = vmatpush3.msra.mxu1 %v4606_v36  ;;  %3535 = vmatprep.mubr.msk.f32.mxu0 %vm3916_vm1, %v3915_v14 }
 0x16a   :  { %3449 = vmatprep.subr.mxu1 %v3915_v14  ;;  %3353 = vmatmul.mubr.msk.f32.gmra.mxu1 %vm739_vm2, %v4312_v29  ;;  %v4869_v29 = vpop.f32.mrf.mxu0 }
 0x16b   :  { %3450 = vmatpush3.msra.mxu1 %v4538_v6  ;;  %3355 = vmatprep.mubr.msk.f32.mxu1 %vm3916_vm1, %v3915_v14 }
 0x16c   :  { %3451 = vmatprep.subr.mxu1 %v3915_v14  ;;  %3536 = vmatmul.mubr.msk.f32.gmra.mxu0 %vm739_vm2, %v4409_v45 }
 0x16d   :  { %3452 = vmatpush3.msra.mxu1 %v4562_v11  ;;  %3538 = vmatprep.mubr.msk.f32.mxu0 %vm3916_vm1, %v3915_v14 }
 0x16e   :  { %3453 = vmatprep.subr.mxu1 %v3915_v14  ;;  %3356 = vmatmul.mubr.msk.f32.gmra.mxu1 %vm739_vm2, %v4337_v33  ;;  %v430_v33 = vpop.f32.mrf.mxu0 }
 0x16f   :  { %3454 = vmatpush3.msra.mxu1 %v4482_v59  ;;  %3358 = vmatprep.mubr.msk.f32.mxu1 %vm3916_vm1, %v3915_v14  ;;  %v5733_v59 = vld [vmem:[#allocation5_spill] sm:$0xff] }
 0x170   :  { %3455 = vmatprep.subr.mxu1 %v3915_v14  ;;  %3539 = vmatmul.mubr.msk.f32.gmra.mxu0 %vm739_vm2, %v4435_v50 }
 0x171   :  { %3456 = vmatpush3.msra.mxu1 %v4510_v0  ;;  %3541 = vmatprep.mubr.msk.f32.mxu0 %vm3916_vm1, %v3915_v14 }
 0x172   :  { %3457 = vmatprep.subr.mxu1 %v3915_v14  ;;  %3359 = vmatmul.mubr.msk.f32.gmra.mxu1 %vm739_vm2, %v4361_v37  ;;  %v4895_v37 = vpop.f32.mrf.mxu0 }
 0x173   :  { %3458 = vmatpush3.msra.mxu1 %v4428_v49  ;;  %3361 = vmatprep.mubr.msk.f32.mxu1 %vm3916_vm1, %v3915_v14 }
 0x174   :  { %3459 = vmatprep.subr.mxu1 %v3915_v14  ;;  %3542 = vmatmul.mubr.msk.f32.gmra.mxu0 %vm739_vm2, %v4461_v55 }
 0x175   :  { %3460 = vmatpush3.msra.mxu1 %v4454_v54  ;;  %3544 = vmatprep.mubr.msk.f32.mxu0 %vm3916_vm1, %v3915_v14 }
 0x176   :  { %3461 = vmatprep.subr.mxu1 %v3915_v14  ;;  %3362 = vmatmul.mubr.msk.f32.gmra.mxu1 %vm739_vm2, %v4385_v41  ;;  %v436_v41 = vpop.f32.mrf.mxu0 }
 0x177   :  { %3462 = vmatpush3.msra.mxu1 %v4214_v2  ;;  %3364 = vmatprep.mubr.msk.f32.mxu1 %vm3916_vm1, %v3915_v14 }
 0x178   :  { %3545 = vmatmul.mubr.msk.f32.gmra.mxu0 %vm739_vm2, %v4489_v60  ;;  %3559 = vmatprep.subr.mxu1 %v3915_v14  ;;  %v4919_v2 = vpop.f32.mrf.mxu0 }
 0x179   :  { %3547 = vmatprep.mubr.msk.f32.mxu0 %vm3916_vm1, %v3915_v14  ;;  %3631 = vmatpush3.msra.mxu0 %v4621_v62 }
 0x17a   :  { %3365 = vmatmul.mubr.msk.f32.gmra.mxu1 %vm739_vm2, %v4409_v45  ;;  %3632 = vmatprep.subr.mxu0 %v3915_v14  ;;  %v442_v45 = vpop.f32.mrf.mxu0 }
 0x17b   :  { %3367 = vmatprep.mubr.msk.f32.mxu1 %vm3916_vm1, %v3915_v14  ;;  %3633 = vmatpush3.msra.mxu0 %v4642_v4  ;;  %v5735_v4 = vld [vmem:[#allocation7_spill] sm:$0xff] }
 0x17c   :  { %3548 = vmatmul.mubr.msk.f32.gmra.mxu0 %vm739_vm2, %v4517_v1  ;;  %3730 = vmatprep.subr.mxu0 %v3915_v14  ;;  %v4937_v49 = vpop.f32.mrf.mxu0 }
 0x17d   :  { %3550 = vmatprep.mubr.msk.f32.mxu0 %vm3916_vm1, %v3915_v14 }
 0x17e   :  { %3368 = vmatmul.mubr.msk.f32.gmra.mxu1 %vm739_vm2, %v4435_v50  ;;  %v448_v50 = vpop.f32.mrf.mxu0 }
 0x17f   :  { %3370 = vmatprep.mubr.msk.f32.mxu1 %vm3916_vm1, %v3915_v14 }
 0x180   :  { %3551 = vmatmul.mubr.msk.f32.gmra.mxu0 %vm739_vm2, %v4545_v7 }
 0x181   :  { %3553 = vmatprep.mubr.msk.f32.mxu0 %vm3916_vm1, %v3915_v14 }
 0x182   :  { %3371 = vmatmul.mubr.msk.f32.gmra.mxu1 %vm739_vm2, %v4461_v55 }
 0x183   :  { %3373 = vmatprep.mubr.msk.f32.mxu1 %vm3916_vm1, %v3915_v14 }
 0x184   :  { %3554 = vmatmul.mubr.msk.f32.gmra.mxu0 %vm739_vm2, %v4569_v13 }
 0x185   :  { %3556 = vmatprep.mubr.msk.f32.mxu0 %vm3916_vm1, %v3915_v14 }
 0x186   :  { %3374 = vmatmul.mubr.msk.f32.gmra.mxu1 %vm739_vm2, %v4489_v60 }
 0x187   :  { %3376 = vmatprep.mubr.msk.f32.mxu1 %vm3916_vm1, %v3915_v14 }
 0x188   :  { %3557 = vmatmul.mubr.msk.f32.gmra.mxu0 %vm739_vm2, %v4591_v24 }
 0x189   :  { %3634 = vmatprep.mubr.msk.f32.mxu0 %vm3916_vm1, %v3915_v14 }
 0x18a   :  { %3377 = vmatmul.mubr.msk.f32.gmra.mxu1 %vm739_vm2, %v4517_v1 }
 0x18b   :  { %3379 = vmatprep.mubr.msk.f32.mxu1 %vm3916_vm1, %v3915_v14 }
 0x18c   :  { %3635 = vmatmul.mubr.msk.f32.vlgmr.msra.gmra.mxu0 %vm739_vm2, %v4230_v12 }
 0x18d   :  { %3637 = vmatprep.mubr.msk.f32.mxu0 %vm3916_vm1, %v3915_v14  ;;  %3731 = vmatpush3.msra.mxu0 %v448_v50 }
 0x18e   :  { %3380 = vmatmul.mubr.msk.f32.gmra.mxu1 %vm739_vm2, %v4545_v7  ;;  %3732 = vmatprep.subr.mxu0 %v3915_v14 }
 0x18f   :  { %3382 = vmatprep.mubr.msk.f32.mxu1 %vm3916_vm1, %v3915_v14  ;;  %3733 = vmatpush3.msra.mxu0 %v442_v45 }
 0x190   :  { %3638 = vmatmul.mubr.msk.f32.gmra.mxu0 %vm739_vm2, %v4243_v16  ;;  %3734 = vmatprep.subr.mxu0 %v3915_v14 }
 0x191   :  { %3640 = vmatprep.mubr.msk.f32.mxu0 %vm3916_vm1, %v3915_v14  ;;  %3735 = vmatpush3.msra.mxu0 %v436_v41 }
 0x192   :  { %3383 = vmatmul.mubr.msk.f32.gmra.mxu1 %vm739_vm2, %v4569_v13  ;;  %3736 = vmatprep.subr.mxu0 %v3915_v14 }
 0x193   :  { %3385 = vmatprep.mubr.msk.f32.mxu1 %vm3916_vm1, %v3915_v14  ;;  %3737 = vmatpush3.msra.mxu0 %v430_v33 }
 0x194   :  { %3641 = vmatmul.mubr.msk.f32.gmra.mxu0 %vm739_vm2, %v4259_v19  ;;  %3738 = vmatprep.subr.mxu0 %v3915_v14 }
 0x195   :  { %3643 = vmatprep.mubr.msk.f32.mxu0 %vm3916_vm1, %v3915_v14  ;;  %3739 = vmatpush3.msra.mxu0 %v4855_v25 }
 0x196   :  { %3386 = vmatmul.mubr.msk.f32.gmra.mxu1 %vm739_vm2, %v4591_v24  ;;  %3740 = vmatprep.subr.mxu0 %v3915_v14 }
 0x197   :  { %3463 = vmatprep.mubr.msk.f32.mxu1 %vm3916_vm1, %v3915_v14  ;;  %3741 = vmatpush3.msra.mxu0 %v4827_v38 }
 0x198   :  { %3644 = vmatmul.mubr.msk.f32.gmra.mxu0 %vm739_vm2, %v4274_v22  ;;  %3742 = vmatprep.subr.mxu0 %v3915_v14 }
 0x199   :  { %3646 = vmatprep.mubr.msk.f32.mxu0 %vm3916_vm1, %v3915_v14  ;;  %3743 = vmatpush3.msra.mxu0 %v4801_v51 }
 0x19a   :  { %3464 = vmatmul.mubr.msk.f32.vlgmr.msra.gmra.mxu1 %vm739_vm2, %v4230_v12  ;;  %3744 = vmatprep.subr.mxu0 %v3915_v14  ;;  %v5005_v12 = vpop.f32.mrf.mxu1 }
 0x19b   :  { %3560 = vmatpush3.msra.mxu1 %v4680_v30  ;;  %3466 = vmatprep.mubr.msk.f32.mxu1 %vm3916_vm1, %v3915_v14 }
 0x19c   :  { %3561 = vmatprep.subr.mxu1 %v3915_v14  ;;  %3647 = vmatmul.mubr.msk.f32.gmra.mxu0 %vm739_vm2, %v4300_v27 }
 0x19d   :  { %3562 = vmatpush3.msra.mxu1 %v4640_v46  ;;  %3649 = vmatprep.mubr.msk.f32.mxu0 %vm3916_vm1, %v3915_v14 }
 0x19e   :  { %3563 = vmatprep.subr.mxu1 %v3915_v14  ;;  %3467 = vmatmul.mubr.msk.f32.gmra.mxu1 %vm739_vm2, %v4243_v16  ;;  %v5019_v16 = vpop.f32.mrf.mxu1 }
 0x19f   :  { %3564 = vmatpush3.msra.mxu1 %v4604_v32  ;;  %3469 = vmatprep.mubr.msk.f32.mxu1 %vm3916_vm1, %v3915_v14 }
 0x1a0   :  { %3565 = vmatprep.subr.mxu1 %v3915_v14  ;;  %3650 = vmatmul.mubr.msk.f32.gmra.mxu0 %vm739_vm2, %v4324_v31 }
 0x1a1   :  { %3566 = vmatpush3.msra.mxu1 %v4560_v10  ;;  %3652 = vmatprep.mubr.msk.f32.mxu0 %vm3916_vm1, %v3915_v14  ;;  %v5736_v10 = vld [vmem:[#allocation8_spill] sm:$0xff] }
 0x1a2   :  { %3567 = vmatprep.subr.mxu1 %v3915_v14  ;;  %3470 = vmatmul.mubr.msk.f32.gmra.mxu1 %vm739_vm2, %v4259_v19  ;;  %v5033_v19 = vpop.f32.mrf.mxu1 }
 0x1a3   :  { %3568 = vmatpush3.msra.mxu1 %v4535_v5  ;;  %3472 = vmatprep.mubr.msk.f32.mxu1 %vm3916_vm1, %v3915_v14 }
 0x1a4   :  { %3569 = vmatprep.subr.mxu1 %v3915_v14  ;;  %3653 = vmatmul.mubr.msk.f32.gmra.mxu0 %vm739_vm2, %v4350_v35  ;;  %v5048_v54 = vpop.f32.mrf.mxu1 }
 0x1a5   :  { %3570 = vmatpush3.msra.mxu1 %v4508_v63  ;;  %3655 = vmatprep.mubr.msk.f32.mxu0 %vm3916_vm1, %v3915_v14  ;;  %v5734_v63 = vld [vmem:[#allocation6_spill] sm:$0xff] }
 0x1a6   :  { %3571 = vmatprep.subr.mxu1 %v3915_v14  ;;  %3473 = vmatmul.mubr.msk.f32.gmra.mxu1 %vm739_vm2, %v4274_v22  ;;  %v5043_v22 = vpop.f32.mrf.mxu0 }
 0x1a7   :  { %3572 = vmatpush3.msra.mxu1 %v4480_v58  ;;  %3475 = vmatprep.mubr.msk.f32.mxu1 %vm3916_vm1, %v3915_v14 }
 0x1a8   :  { %3573 = vmatprep.subr.mxu1 %v3915_v14  ;;  %3656 = vmatmul.mubr.msk.f32.gmra.mxu0 %vm739_vm2, %v4374_v39 }
 0x1a9   :  { %3574 = vmatpush3.msra.mxu1 %v4452_v53  ;;  %3658 = vmatprep.mubr.msk.f32.mxu0 %vm3916_vm1, %v3915_v14 }
 0x1aa   :  { %3575 = vmatprep.subr.mxu1 %v3915_v14  ;;  %3476 = vmatmul.mubr.msk.f32.gmra.mxu1 %vm739_vm2, %v4300_v27 }
 0x1ab   :  { %3576 = vmatpush3.msra.mxu1 %v4426_v48  ;;  %3478 = vmatprep.mubr.msk.f32.mxu1 %vm3916_vm1, %v3915_v14  ;;  %v5064_v48 = vpop.f32.mrf.mxu1 }
 0x1ac   :  { %3659 = vmatmul.mubr.msk.f32.gmra.mxu0 %vm739_vm2, %v4398_v43  ;;  %3673 = vmatprep.subr.mxu1 %v3915_v14 }
 0x1ad   :  { %3661 = vmatprep.mubr.msk.f32.mxu0 %vm3916_vm1, %v3915_v14  ;;  %3745 = vmatpush3.msra.mxu0 %v4776_v34  ;;  %v5077_v55 = vpop.f32.mrf.mxu1  ;;  %v5738_v34 = vld [vmem:[#allocation10_spill] sm:$0xff] }
 0x1ae   :  { %3479 = vmatmul.mubr.msk.f32.gmra.mxu1 %vm739_vm2, %v4324_v31  ;;  %3746 = vmatprep.subr.mxu0 %v3915_v14 }
 0x1af   :  { %v5059_v27 = vpop.f32.mrf.mxu0  ;;  %3481 = vmatprep.mubr.msk.f32.mxu1 %vm3916_vm1, %v3915_v14  ;;  %3747 = vmatpush3.msra.mxu0 %v4736_v57 }
 0x1b0   :  { %3662 = vmatmul.mubr.msk.f32.gmra.mxu0 %vm739_vm2, %v4421_v47  ;;  %3787 = vmatprep.subr.mxu0 %v3915_v14 }
 0x1b1   :  { %v3294_v53 = vpop.f32.mrf.mxu0  ;;  %3664 = vmatprep.mubr.msk.f32.mxu0 %vm3916_vm1, %v3915_v14 }
 0x1b2   :  { %3482 = vmatmul.mubr.msk.f32.gmra.mxu1 %vm739_vm2, %v4350_v35  ;;  %v5089_v35 = vpop.f32.mrf.mxu1  ;;  %v5740_v53 = vld [vmem:[#allocation12_spill] sm:$0xff] }
 0x1b3   :  { %v5073_v31 = vpop.f32.mrf.mxu0  ;;  %3484 = vmatprep.mubr.msk.f32.mxu1 %vm3916_vm1, %v3915_v14 }
 0x1b4   :  { %3665 = vmatmul.mubr.msk.f32.gmra.mxu0 %vm739_vm2, %v4447_v52 }
 0x1b5   :  { %v3297_v57 = vpop.f32.mrf.mxu0  ;;  %3667 = vmatprep.mubr.msk.f32.mxu0 %vm3916_vm1, %v3915_v14 }
 0x1b6   :  { %3485 = vmatmul.mubr.msk.f32.gmra.mxu1 %vm739_vm2, %v4374_v39  ;;  %v5101_v39 = vpop.f32.mrf.mxu1 }
 0x1b7   :  { %v5085_v58 = vpop.f32.mrf.mxu0  ;;  %3487 = vmatprep.mubr.msk.f32.mxu1 %vm3916_vm1, %v3915_v14 }
 0x1b8   :  { %3668 = vmatmul.mubr.msk.f32.gmra.mxu0 %vm739_vm2, %v5733_v59 }
 0x1b9   :  { %v3300_v60 = vpop.f32.mrf.mxu0  ;;  %3670 = vmatprep.mubr.msk.f32.mxu0 %vm3916_vm1, %v3915_v14 }
 0x1ba   :  { %3488 = vmatmul.mubr.msk.f32.gmra.mxu1 %vm739_vm2, %v4398_v43  ;;  %v5741_v60 = vld [vmem:[#allocation13_spill] sm:$0xff] }
 0x1bb   :  { %v5097_v62 = vpop.f32.mrf.mxu0  ;;  %3490 = vmatprep.mubr.msk.f32.mxu1 %vm3916_vm1, %v3915_v14 }
 0x1bc   :  { %3671 = vmatmul.mubr.msk.f32.gmra.mxu0 %vm739_vm2, %v5734_v63 }
 0x1bd   :  { %v3303_v0 = vpop.f32.mrf.mxu0  ;;  %3748 = vmatprep.mubr.msk.f32.mxu0 %vm3916_vm1, %v3915_v14 }
 0x1be   :  { %3491 = vmatmul.mubr.msk.f32.gmra.mxu1 %vm739_vm2, %v4421_v47  ;;  %v5109_v1 = vpop.f32.mrf.mxu1 }
 0x1bf   :  { %3493 = vmatprep.mubr.msk.f32.mxu1 %vm3916_vm1, %v3915_v14 }
 0x1c0   :  { %v3180_v43 = vpop.f32.mrf.mxu1  ;;  %3749 = vmatmul.mubr.msk.f32.vlgmr.msra.gmra.mxu0 %vm739_vm2, %v5735_v4  ;;  %v5115_v5 = vpop.f32.mrf.mxu0 }
 0x1c1   :  { %3788 = vmatpush3.msra.mxu0 %v5089_v35  ;;  %3751 = vmatprep.mubr.msk.f32.mxu0 %vm3916_vm1, %v3915_v14  ;;  %v5742_v43 = vld [vmem:[#allocation14_spill] sm:$0xff] }
 0x1c2   :  { %3494 = vmatmul.mubr.msk.f32.gmra.mxu1 %vm739_vm2, %v4447_v52  ;;  %v5122_v47 = vpop.f32.mrf.mxu1  ;;  %3789 = vmatprep.subr.mxu0 %v3915_v14  ;;  %v3306_v6 = vpop.f32.mrf.mxu0 }
 0x1c3   :  { %3496 = vmatprep.mubr.msk.f32.mxu1 %vm3916_vm1, %v3915_v14  ;;  %3790 = vmatpush3.msra.mxu0 %v5101_v39 }
 0x1c4   :  { %v3183_v7 = vpop.f32.mrf.mxu1  ;;  %3791 = vmatprep.subr.mxu0 %v3915_v14  ;;  %v5129_v9 = vpop.f32.mrf.mxu0  ;;  %3752 = vmatmul.mubr.msk.f32.gmra.mxu0 %vm739_vm2, %v5736_v10 }
 0x1c5   :  { %3792 = vmatpush3.msra.mxu0 %v5064_v48  ;;  %3754 = vmatprep.mubr.msk.f32.mxu0 %vm3916_vm1, %v3915_v14 }
 0x1c6   :  { %3497 = vmatmul.mubr.msk.f32.gmra.mxu1 %vm739_vm2, %v5733_v59  ;;  %v5138_v52 = vpop.f32.mrf.mxu1  ;;  %3793 = vmatprep.subr.mxu0 %v3915_v14  ;;  %v3309_v11 = vpop.f32.mrf.mxu0 }
 0x1c7   :  { %3499 = vmatprep.mubr.msk.f32.mxu1 %vm3916_vm1, %v3915_v14  ;;  %3794 = vmatpush3.msra.mxu0 %v5077_v55 }
 0x1c8   :  { %v3186_v13 = vpop.f32.mrf.mxu1  ;;  %3795 = vmatprep.subr.mxu0 %v3915_v14  ;;  %v5145_v15 = vpop.f32.mrf.mxu0  ;;  %3755 = vmatmul.mubr.msk.f32.gmra.mxu0 %vm739_vm2, %v5737_v21 }
 0x1c9   :  { %3796 = vmatpush3.msra.mxu0 %v5033_v19  ;;  %3757 = vmatprep.mubr.msk.f32.mxu0 %vm3916_vm1, %v3915_v14 }
 0x1ca   :  { %3500 = vmatmul.mubr.msk.f32.gmra.mxu1 %vm739_vm2, %v5734_v63  ;;  %v5154_v24 = vpop.f32.mrf.mxu1  ;;  %3797 = vmatprep.subr.mxu0 %v3915_v14  ;;  %v3312_v32 = vpop.f32.mrf.mxu0 }
 0x1cb   :  { %3577 = vmatprep.mubr.msk.f32.mxu1 %vm3916_vm1, %v3915_v14  ;;  %3798 = vmatpush3.msra.mxu0 %v5048_v54 }
 0x1cc   :  { %v3189_v36 = vpop.f32.mrf.mxu1  ;;  %3799 = vmatprep.subr.mxu0 %v3915_v14  ;;  %v5161_v46 = vpop.f32.mrf.mxu0  ;;  %3758 = vmatmul.mubr.msk.f32.gmra.mxu0 %vm739_vm2, %v5738_v34 }
 0x1cd   :  { %3800 = vmatpush3.msra.mxu0 %v5005_v12  ;;  %3760 = vmatprep.mubr.msk.f32.mxu0 %vm3916_vm1, %v3915_v14 }
 0x1ce   :  { %3578 = vmatmul.mubr.msk.f32.vlgmr.msra.gmra.mxu1 %vm739_vm2, %v5735_v4  ;;  %v5170_v30 = vpop.f32.mrf.mxu1  ;;  %3801 = vmatprep.subr.mxu0 %v3915_v14  ;;  %v3315_v17 = vpop.f32.mrf.mxu0 }
 0x1cf   :  { %3580 = vmatprep.mubr.msk.f32.mxu1 %vm3916_vm1, %v3915_v14  ;;  %3674 = vmatpush3.msra.mxu1 %v5043_v22 }
 0x1d0   :  { %v3192_v18 = vpop.f32.mrf.mxu1  ;;  %3675 = vmatprep.subr.mxu1 %v3915_v14  ;;  %3802 = vmatpush3.msra.mxu0 %v5019_v16  ;;  %v5178_v61 = vpop.f32.mrf.mxu0 }
 0x1d1   :  { %3676 = vmatpush3.msra.mxu1 %v4937_v49  ;;  %3803 = vmatprep.subr.mxu0 %v3915_v14  ;;  %v5739_v49 = vld [vmem:[#allocation11_spill] sm:$0xff] }
 0x1d2   :  { %3581 = vmatmul.mubr.msk.f32.gmra.mxu1 %vm739_vm2, %v5736_v10  ;;  %v5184_v51 = vpop.f32.mrf.mxu1  ;;  %3677 = vmatprep.subr.mxu1 %v3915_v14  ;;  %v3318_v38 = vpop.f32.mrf.mxu0 }
 0x1d3   :  { %3583 = vmatprep.mubr.msk.f32.mxu1 %vm3916_vm1, %v3915_v14  ;;  %3678 = vmatpush3.msra.mxu1 %v4919_v2 }
 0x1d4   :  { %v3195_v25 = vpop.f32.mrf.mxu1  ;;  %3679 = vmatprep.subr.mxu1 %v3915_v14  ;;  %3804 = vmatpush3.msra.mxu0 %v4774_v3  ;;  %v5192_v33 = vpop.f32.mrf.mxu0 }
 0x1d5   :  { %3680 = vmatpush3.msra.mxu1 %v4895_v37  ;;  %3761 = vmatmul.mubr.msk.f32.gmra.mxu0 %vm739_vm2, %v4615_v40 }
 0x1d6   :  { %3584 = vmatmul.mubr.msk.f32.gmra.mxu1 %vm739_vm2, %v5737_v21  ;;  %v5199_v41 = vpop.f32.mrf.mxu1  ;;  %3681 = vmatprep.subr.mxu1 %v3915_v14  ;;  %v3321_v2 = vpop.f32.mrf.mxu0 }
 0x1d7   :  { %3586 = vmatprep.mubr.msk.f32.mxu1 %vm3916_vm1, %v3915_v14  ;;  %3682 = vmatpush3.msra.mxu1 %v4869_v29 }
 0x1d8   :  { %v3198_v45 = vpop.f32.mrf.mxu1  ;;  %3683 = vmatprep.subr.mxu1 %v3915_v14  ;;  %3763 = vmatprep.mubr.msk.f32.mxu0 %vm3916_vm1, %v3915_v14  ;;  %v5208_v37 = vpop.f32.mrf.mxu0 }
 0x1d9   :  { %3684 = vmatpush3.msra.mxu1 %v4841_v28  ;;  %3764 = vmatmul.mubr.msk.f32.gmra.mxu0 %vm739_vm2, %v5739_v49 }
 0x1da   :  { %3587 = vmatmul.mubr.msk.f32.gmra.mxu1 %vm739_vm2, %v5738_v34  ;;  %v5215_v50 = vpop.f32.mrf.mxu1  ;;  %3685 = vmatprep.subr.mxu1 %v3915_v14  ;;  %v3324_v29 = vpop.f32.mrf.mxu0 }
 0x1db   :  { %3589 = vmatprep.mubr.msk.f32.mxu1 %vm3916_vm1, %v3915_v14  ;;  %3686 = vmatpush3.msra.mxu1 %v4813_v56 }
 0x1dc   :  { %v3201_v22 = vpop.f32.mrf.mxu1  ;;  %3687 = vmatprep.subr.mxu1 %v3915_v14  ;;  %3766 = vmatprep.mubr.msk.f32.mxu0 %vm3916_vm1, %v3915_v14  ;;  %v5224_v28 = vpop.f32.mrf.mxu0 }
 0x1dd   :  { %3688 = vmatpush3.msra.mxu1 %v4790_v26  ;;  %3767 = vmatmul.mubr.msk.f32.gmra.mxu0 %vm739_vm2, %v5740_v53 }
 0x1de   :  { %3590 = vmatmul.mubr.msk.f32.gmra.mxu1 %vm739_vm2, %v4615_v40  ;;  %v5231_v57 = vpop.f32.mrf.mxu1  ;;  %3689 = vmatprep.subr.mxu1 %v3915_v14  ;;  %v3327_v56 = vpop.f32.mrf.mxu0 }
 0x1df   :  { %3592 = vmatprep.mubr.msk.f32.mxu1 %vm3916_vm1, %v3915_v14  ;;  %3690 = vmatpush3.msra.mxu1 %v4755_v42 }
 0x1e0   :  { %v3204_v59 = vpop.f32.mrf.mxu1  ;;  %3844 = vmatprep.subr.mxu1 %v3915_v14  ;;  %3769 = vmatprep.mubr.msk.f32.mxu0 %vm3916_vm1, %v3915_v14  ;;  %v5240_v26 = vpop.f32.mrf.mxu0 }
 0x1e1   :  { %3770 = vmatmul.mubr.msk.f32.gmra.mxu0 %vm739_vm2, %v5741_v60 }
 0x1e2   :  { %3593 = vmatmul.mubr.msk.f32.gmra.mxu1 %vm739_vm2, %v5739_v49  ;;  %v5246_v40 = vpop.f32.mrf.mxu1  ;;  %3772 = vmatprep.mubr.msk.f32.mxu0 %vm3916_vm1, %v3915_v14  ;;  %v3330_v42 = vpop.f32.mrf.mxu0 }
 0x1e3   :  { %3595 = vmatprep.mubr.msk.f32.mxu1 %vm3916_vm1, %v3915_v14 }
 0x1e4   :  { %v3207_v63 = vpop.f32.mrf.mxu1  ;;  %v5252_v0 = vpop.f32.mrf.mxu0 }
 0x1e5   :  { %3773 = vmatmul.mubr.msk.f32.gmra.mxu0 %vm739_vm2, %v5742_v43 }
 0x1e6   :  { %3596 = vmatmul.mubr.msk.f32.gmra.mxu1 %vm739_vm2, %v5740_v53  ;;  %v5258_v4 = vpop.f32.mrf.mxu1  ;;  %3775 = vmatprep.mubr.msk.f32.mxu0 %vm3916_vm1, %v3915_v14  ;;  %v3408_v6 = vpop.f32.mrf.mxu0 }
 0x1e7   :  { %3598 = vmatprep.mubr.msk.f32.mxu1 %vm3916_vm1, %v3915_v14 }
 0x1e8   :  { %v3210_v7 = vpop.f32.mrf.mxu1  ;;  %v5264_v10 = vpop.f32.mrf.mxu0 }
 0x1e9   :  { %3776 = vmatmul.mubr.msk.f32.gmra.mxu0 %vm739_vm2, %v4712_v20 }
 0x1ea   :  { %3599 = vmatmul.mubr.msk.f32.gmra.mxu1 %vm739_vm2, %v5741_v60  ;;  %v5270_v11 = vpop.f32.mrf.mxu1  ;;  %3778 = vmatprep.mubr.msk.f32.mxu0 %vm3916_vm1, %v3915_v14  ;;  %v3411_v13 = vpop.f32.mrf.mxu0 }
 0x1eb   :  { %3601 = vmatprep.mubr.msk.f32.mxu1 %vm3916_vm1, %v3915_v14 }
 0x1ec   :  { %v3213_v21 = vpop.f32.mrf.mxu1  ;;  %v5276_v32 = vpop.f32.mrf.mxu0 }
 0x1ed   :  { %3779 = vmatmul.mubr.msk.f32.gmra.mxu0 %vm739_vm2, %v4729_v23  ;;  %v3870_v21 = vld [vmem:[%s5700_s1 + $0x68] sm:$0xff] }
 0x1ee   :  { %3602 = vmatmul.mubr.msk.f32.gmra.mxu1 %vm739_vm2, %v5742_v43  ;;  %v5282_v36 = vpop.f32.mrf.mxu1  ;;  %3781 = vmatprep.mubr.msk.f32.mxu0 %vm3916_vm1, %v3915_v14  ;;  %v3414_v34 = vpop.f32.mrf.mxu0 }
 0x1ef   :  { %3604 = vmatprep.mubr.msk.f32.mxu1 %vm3916_vm1, %v3915_v14 }
 0x1f0   :  { %v3216_v17 = vpop.f32.mrf.mxu1  ;;  %v5288_v18 = vpop.f32.mrf.mxu0 }
 0x1f1   :  { %3782 = vmatmul.mubr.msk.f32.gmra.mxu0 %vm739_vm2, %v4747_v44 }
 0x1f2   :  { %3605 = vmatmul.mubr.msk.f32.gmra.mxu1 %vm739_vm2, %v4712_v20  ;;  %v1014_v38 = vpop.f32.mrf.mxu1  ;;  %3784 = vmatprep.mubr.msk.f32.mxu0 %vm3916_vm1, %v3915_v14  ;;  %v3417_v25 = vpop.f32.mrf.mxu0 }
 0x1f3   :  { %v1015_v2 = vadd.f32 %v1014_v38, %v5109_v1  ;;  %3607 = vmatprep.mubr.msk.f32.mxu1 %vm3916_vm1, %v3915_v14 }
 0x1f4   :  { %v3237_v45 = vpop.f32.mrf.mxu1  ;;  %v5299_v49 = vpop.f32.mrf.mxu0 }
 0x1f5   :  { %v1247_v29 = vadd.f32 %v5059_v27, %v1015_v2  ;;  %3785 = vmatmul.mubr.msk.f32.gmra.mxu0 %vm739_vm2, %v4766_v8  ;;  %v3871_v2 = vld [vmem:[%s5700_s1 + $0xe8] sm:$0xff] }
 0x1f6   :  { %3608 = vmatmul.mubr.msk.f32.gmra.mxu1 %vm739_vm2, %v4729_v23  ;;  %v1019_v20 = vpop.f32.mrf.mxu1  ;;  %3805 = vmatprep.mubr.msk.f32.mxu0 %vm3916_vm1, %v3915_v14  ;;  %v3420_v22 = vpop.f32.mrf.mxu0  ;;  %v3867_v23 = vld [vmem:[%s5700_s1 + $0xd0] sm:$0xff] }
 0x1f7   :  { %1260 = vst [vmem:[#allocation2] sm:$0xff] %v1247_v29  ;;  %v1020_v1 = vadd.f32 %v1019_v20, %v5122_v47  ;;  %3610 = vmatprep.mubr.msk.f32.mxu1 %vm3916_vm1, %v3915_v14 }
 0x1f8   :  { %v3240_v53 = vpop.f32.mrf.mxu1  ;;  %v5311_v56 = vpop.f32.mrf.mxu0 }
 0x1f9   :  { %v1248_v27 = vadd.f32 %v5073_v31, %v1020_v1  ;;  %3806 = vmatmul.mubr.msk.f32.vlgmr.msra.gmra.mxu0 %vm739_vm2, %v3867_v23 }
 0x1fa   :  { %3611 = vmatmul.mubr.msk.f32.gmra.mxu1 %vm739_vm2, %v4747_v44  ;;  %v1024_v59 = vpop.f32.mrf.mxu1  ;;  %3808 = vmatprep.mubr.msk.f32.mxu0 %vm3916_vm1, %v3915_v14  ;;  %v3423_v47 = vpop.f32.mrf.mxu0  ;;  %v3868_v44 = vld [vmem:[%s5700_s1 + $0xd8] sm:$0xff] }
 0x1fb   :  { %1261 = vst [vmem:[#allocation2 + $0x8] sm:$0xff] %v1248_v27  ;;  %v1025_v60 = vadd.f32 %v1024_v59, %v5138_v52  ;;  %3613 = vmatprep.mubr.msk.f32.mxu1 %vm3916_vm1, %v3915_v14 }
 0x1fc   :  { %v3243_v31 = vpop.f32.mrf.mxu1  ;;  %v5325_v42 = vpop.f32.mrf.mxu0 }
 0x1fd   :  { %v1249_v63 = vadd.f32 %v5085_v58, %v1025_v60  ;;  %3809 = vmatmul.mubr.msk.f32.gmra.mxu0 %vm739_vm2, %v3868_v44  ;;  %v3876_v44 = vld [vmem:[%s5700_s1 + $0x90] sm:$0xff] }
 0x1fe   :  { %3614 = vmatmul.mubr.msk.f32.gmra.mxu1 %vm739_vm2, %v4766_v8  ;;  %v1029_v43 = vpop.f32.mrf.mxu1  ;;  %3811 = vmatprep.mubr.msk.f32.mxu0 %vm3916_vm1, %v3915_v14  ;;  %v3426_v52 = vpop.f32.mrf.mxu0  ;;  %v3869_v8 = vld [vmem:[%s5700_s1 + $0xe0] sm:$0xff] }
 0x1ff   :  { %1262 = vst [vmem:[#allocation2 + $0x10] sm:$0xff] %v1249_v63  ;;  %v1030_v6 = vadd.f32 %v1029_v43, %v5154_v24  ;;  %3691 = vmatprep.mubr.msk.f32.mxu1 %vm3916_vm1, %v3915_v14 }
 0x200   :  { %v3246_v58 = vpop.f32.mrf.mxu1  ;;  %v5339_v7 = vpop.f32.mrf.mxu0 }
 0x201   :  { %v1250_v13 = vadd.f32 %v5097_v62, %v1030_v6  ;;  %3812 = vmatmul.mubr.msk.f32.gmra.mxu0 %vm739_vm2, %v3869_v8  ;;  %v3877_v58 = vld [vmem:[%s5700_s1 + $0x98] sm:$0xff] }
 0x202   :  { %3692 = vmatmul.mubr.msk.f32.vlgmr.msra.gmra.mxu1 %vm739_vm2, %v3870_v21  ;;  %v1034_v24 = vpop.f32.mrf.mxu1  ;;  %3814 = vmatprep.mubr.msk.f32.mxu0 %vm3916_vm1, %v3915_v14  ;;  %v3429_v34 = vpop.f32.mrf.mxu0 }
 0x203   :  { %3853 = vmatpush3.msra.mxu1 %v5089_v35  ;;  %1263 = vst [vmem:[#allocation2 + $0x18] sm:$0xff] %v1250_v13  ;;  %v1035_v62 = vadd.f32 %v1034_v24, %v5170_v30  ;;  %3694 = vmatprep.mubr.msk.f32.mxu1 %vm3916_vm1, %v3915_v14  ;;  %v3872_v30 = vld [vmem:[%s5700_s1 + $0x70] sm:$0xff]  ;;  %v3878_v34 = vld [vmem:[%s5700_s1 + $0xa0] sm:$0xff] }
 0x204   :  { %3845 = vmatprep.subr.mxu1 %v3915_v14  ;;  %v3249_v17 = vpop.f32.mrf.mxu1  ;;  %v5357_v38 = vpop.f32.mrf.mxu0 }
 0x205   :  { %3854 = vmatpush3.msra.mxu1 %v5101_v39  ;;  %v1251_v25 = vadd.f32 %v5115_v5, %v1035_v62  ;;  %3815 = vmatmul.mubr.msk.f32.gmra.mxu0 %vm739_vm2, %v3871_v2 }
 0x206   :  { %3846 = vmatprep.subr.mxu1 %v3915_v14  ;;  %v1039_v35 = vpop.f32.mrf.mxu1  ;;  %3695 = vmatmul.mubr.msk.f32.gmra.mxu1 %vm739_vm2, %v3872_v30  ;;  %v3432_v45 = vpop.f32.mrf.mxu0 }
 0x207   :  { %3855 = vmatpush3.msra.mxu1 %v5064_v48  ;;  %1264 = vst [vmem:[#allocation2 + $0x20] sm:$0xff] %v1251_v25  ;;  %v1040_v39 = vadd.f32 %v1039_v35, %v5184_v51  ;;  %3697 = vmatprep.mubr.msk.f32.mxu1 %vm3916_vm1, %v3915_v14  ;;  %v3873_v48 = vld [vmem:[%s5700_s1 + $0x78] sm:$0xff]  ;;  %v3879_v35 = vld [vmem:[%s5700_s1 + $0xa8] sm:$0xff] }
 0x208   :  { %3847 = vmatprep.subr.mxu1 %v3915_v14  ;;  %v3252_v5 = vpop.f32.mrf.mxu1  ;;  %v5375_v29 = vpop.f32.mrf.mxu0 }
 0x209   :  { %3856 = vmatpush3.msra.mxu1 %v5077_v55  ;;  %v1252_v20 = vadd.f32 %v5129_v9, %v1040_v39 }
 0x20a   :  { %3848 = vmatprep.subr.mxu1 %v3915_v14  ;;  %v1044_v22 = vpop.f32.mrf.mxu1  ;;  %3698 = vmatmul.mubr.msk.f32.gmra.mxu1 %vm739_vm2, %v3873_v48  ;;  %v3435_v51 = vpop.f32.mrf.mxu0 }
 0x20b   :  { %3857 = vmatpush3.msra.mxu1 %v5033_v19  ;;  %1265 = vst [vmem:[#allocation2 + $0x28] sm:$0xff] %v1252_v20  ;;  %v1045_v1 = vadd.f32 %v1044_v22, %v5199_v41  ;;  %3700 = vmatprep.mubr.msk.f32.mxu1 %vm3916_vm1, %v3915_v14  ;;  %v3874_v19 = vld [vmem:[%s5700_s1 + $0x80] sm:$0xff]  ;;  %v3880_v20 = vld [vmem:[%s5700_s1 + $0xb0] sm:$0xff] }
 0x20c   :  { %3849 = vmatprep.subr.mxu1 %v3915_v14  ;;  %v3255_v55 = vpop.f32.mrf.mxu1  ;;  %v5389_v9 = vpop.f32.mrf.mxu0 }
 0x20d   :  { %3858 = vmatpush3.msra.mxu1 %v5048_v54  ;;  %v1253_v53 = vadd.f32 %v5145_v15, %v1045_v1 }
 0x20e   :  { %3850 = vmatprep.subr.mxu1 %v3915_v14  ;;  %v1049_v27 = vpop.f32.mrf.mxu1  ;;  %3701 = vmatmul.mubr.msk.f32.gmra.mxu1 %vm739_vm2, %v3874_v19  ;;  %v3438_v41 = vpop.f32.mrf.mxu0  ;;  %v3882_v19 = vld [vmem:[%s5700_s1 + $0xc0] sm:$0xff] }
 0x20f   :  { %3859 = vmatpush3.msra.mxu1 %v5005_v12  ;;  %1266 = vst [vmem:[#allocation2 + $0x30] sm:$0xff] %v1253_v53  ;;  %v1050_v23 = vadd.f32 %v1049_v27, %v5215_v50  ;;  %3703 = vmatprep.mubr.msk.f32.mxu1 %vm3916_vm1, %v3915_v14  ;;  %v3875_v12 = vld [vmem:[%s5700_s1 + $0x88] sm:$0xff] }
 0x210   :  { %3851 = vmatprep.subr.mxu1 %v3915_v14  ;;  %v3258_v54 = vpop.f32.mrf.mxu1  ;;  %v5403_v15 = vpop.f32.mrf.mxu0 }
 0x211   :  { %3860 = vmatpush3.msra.mxu1 %v5019_v16  ;;  %v1254_v59 = vadd.f32 %v5161_v46, %v1050_v23 }
 0x212   :  { %3852 = vmatprep.subr.mxu1 %v3915_v14  ;;  %v1054_v47 = vpop.f32.mrf.mxu1  ;;  %3704 = vmatmul.mubr.msk.f32.gmra.mxu1 %vm739_vm2, %v3875_v12  ;;  %v3441_v50 = vpop.f32.mrf.mxu0 }
 0x213   :  { %3861 = vmatpush3.msra.mxu1 %v4774_v3  ;;  %1267 = vst [vmem:[#allocation2 + $0x38] sm:$0xff] %v1254_v59  ;;  %v1055_v60 = vadd.f32 %v1054_v47, %v5231_v57  ;;  %3706 = vmatprep.mubr.msk.f32.mxu1 %vm3916_vm1, %v3915_v14  ;;  %v3883_v47 = vld [vmem:[%s5700_s1 + $0xc8] sm:$0xff] }
 0x214   :  { %v3261_v16 = vpop.f32.mrf.mxu1  ;;  %v5416_v46 = vpop.f32.mrf.mxu0 }
 0x215   :  { %v1255_v31 = vadd.f32 %v5178_v61, %v1055_v60 }
 0x216   :  { %v1059_v63 = vpop.f32.mrf.mxu1  ;;  %3707 = vmatmul.mubr.msk.f32.gmra.mxu1 %vm739_vm2, %v3876_v44  ;;  %v3444_v43 = vpop.f32.mrf.mxu0 }
 0x217   :  { %1268 = vst [vmem:[#allocation2 + $0x40] sm:$0xff] %v1255_v31  ;;  %v1060_v3 = vadd.f32 %v1059_v63, %v5246_v40  ;;  %3709 = vmatprep.mubr.msk.f32.mxu1 %vm3916_vm1, %v3915_v14  ;;  %v3884_v31 = vld [vmem:[%s5700_s1 + $0xf0] sm:$0xff] }
 0x218   :  { %v3264_v57 = vpop.f32.mrf.mxu1  ;;  %v5426_v52 = vpop.f32.mrf.mxu0 }
 0x219   :  { %v1256_v6 = vadd.f32 %v5192_v33, %v1060_v3  ;;  %v3885_v57 = vld [vmem:[%s5700_s1 + $0xf8] sm:$0xff] }
 0x21a   :  { %v1064_v61 = vpop.f32.mrf.mxu1  ;;  %3710 = vmatmul.mubr.msk.f32.gmra.mxu1 %vm739_vm2, %v3877_v58  ;;  %v3522_v13 = vpop.f32.mrf.mxu0 }
 0x21b   :  { %1269 = vst [vmem:[#allocation2 + $0x48] sm:$0xff] %v1256_v6  ;;  %v1065_v8 = vadd.f32 %v1064_v61, %v5258_v4  ;;  %3712 = vmatprep.mubr.msk.f32.mxu1 %vm3916_vm1, %v3915_v14 }
 0x21c   :  { %v3267_v40 = vpop.f32.mrf.mxu1  ;;  %v5436_v21 = vpop.f32.mrf.mxu0 }
 0x21d   :  { %v1257_v24 = vadd.f32 %v5208_v37, %v1065_v8  ;;  %v3886_v8 = vld [vmem:[%s5700_s1 + $0x100] sm:$0xff] }
 0x21e   :  { %v1069_v33 = vpop.f32.mrf.mxu1  ;;  %3713 = vmatmul.mubr.msk.f32.gmra.mxu1 %vm739_vm2, %v3878_v34  ;;  %v3525_v62 = vpop.f32.mrf.mxu0 }
 0x21f   :  { %1270 = vst [vmem:[#allocation2 + $0x50] sm:$0xff] %v1257_v24  ;;  %v1070_v17 = vadd.f32 %v1069_v33, %v5270_v11  ;;  %3715 = vmatprep.mubr.msk.f32.mxu1 %vm3916_vm1, %v3915_v14  ;;  %v3887_v62 = vld [vmem:[%s5700_s1 + $0x108] sm:$0xff] }
 0x220   :  { %v3270_v4 = vpop.f32.mrf.mxu1  ;;  %v5446_v25 = vpop.f32.mrf.mxu0 }
 0x221   :  { %v1258_v2 = vadd.f32 %v5224_v28, %v1070_v17 }
 0x222   :  { %v1074_v37 = vpop.f32.mrf.mxu1  ;;  %3716 = vmatmul.mubr.msk.f32.gmra.mxu1 %vm739_vm2, %v3879_v35  ;;  %v3528_v30 = vpop.f32.mrf.mxu0  ;;  %v3888_v35 = vld [vmem:[%s5700_s1 + $0x110] sm:$0xff] }
 0x223   :  { %1271 = vst [vmem:[#allocation2 + $0x58] sm:$0xff] %v1258_v2  ;;  %v1075_v45 = vadd.f32 %v1074_v37, %v5282_v36  ;;  %3718 = vmatprep.mubr.msk.f32.mxu1 %vm3916_vm1, %v3915_v14 }
 0x224   :  { %v3273_v11 = vpop.f32.mrf.mxu1  ;;  %v5456_v39 = vpop.f32.mrf.mxu0 }
 0x225   :  { %v1259_v5 = vadd.f32 %v5240_v26, %v1075_v45  ;;  %v3881_v26 = vld [vmem:[%s5700_s1 + $0xb8] sm:$0xff] }
 0x226   :  { %v5459_v28 = vpop.f32.mrf.mxu1  ;;  %3719 = vmatmul.mubr.msk.f32.gmra.mxu1 %vm739_vm2, %v3880_v20  ;;  %v3531_v22 = vpop.f32.mrf.mxu0  ;;  %v3889_v20 = vld [vmem:[%s5700_s1 + $0x118] sm:$0xff] }
 0x227   :  { %1272 = vst [vmem:[#allocation2 + $0x60] sm:$0xff] %v1259_v5  ;;  %3721 = vmatprep.mubr.msk.f32.mxu1 %vm3916_vm1, %v3915_v14 }
 0x228   :  { %v3351_v36 = vpop.f32.mrf.mxu1  ;;  %v5467_v48 = vpop.f32.mrf.mxu0 }
 0x22a   :  { %v5469_v51 = vpop.f32.mrf.mxu1  ;;  %3722 = vmatmul.mubr.msk.f32.gmra.mxu1 %vm739_vm2, %v3881_v26  ;;  %v3534_v1 = vpop.f32.mrf.mxu0 }
 0x22b   :  { %3724 = vmatprep.mubr.msk.f32.mxu1 %vm3916_vm1, %v3915_v14 }
 0x22c   :  { %v3354_v55 = vpop.f32.mrf.mxu1  ;;  %v5477_v53 = vpop.f32.mrf.mxu0 }
 0x22d   :  { %v3890_v55 = vld [vmem:[%s5700_s1 + $0x120] sm:$0xff] }
 0x22e   :  { %v5479_v27 = vpop.f32.mrf.mxu1  ;;  %3725 = vmatmul.mubr.msk.f32.gmra.mxu1 %vm739_vm2, %v3882_v19  ;;  %v3537_v41 = vpop.f32.mrf.mxu0 }
 0x22f   :  { %3727 = vmatprep.mubr.msk.f32.mxu1 %vm3916_vm1, %v3915_v14 }
 0x230   :  { %v3357_v23 = vpop.f32.mrf.mxu1  ;;  %v5487_v54 = vpop.f32.mrf.mxu0 }
 0x232   :  { %v5489_v59 = vpop.f32.mrf.mxu1  ;;  %3728 = vmatmul.mubr.msk.f32.gmra.mxu1 %vm739_vm2, %v3883_v47  ;;  %v3540_v12 = vpop.f32.mrf.mxu0 }
 0x233   :  { %3817 = vmatprep.mubr.msk.f32.mxu1 %vm3916_vm1, %v3915_v14  ;;  %v3891_v12 = vld [vmem:[%s5700_s1 + $0x128] sm:$0xff] }
 0x234   :  { %v3360_v50 = vpop.f32.mrf.mxu1  ;;  %v5497_v60 = vpop.f32.mrf.mxu0 }
 0x236   :  { %v5499_v16 = vpop.f32.mrf.mxu1  ;;  %3818 = vmatmul.mubr.msk.f32.vlgmr.msra.gmra.mxu1 %vm739_vm2, %v3884_v31  ;;  %v3543_v63 = vpop.f32.mrf.mxu0 }
 0x237   :  { %3820 = vmatprep.mubr.msk.f32.mxu1 %vm3916_vm1, %v3915_v14 }
 0x238   :  { %v3363_v44 = vpop.f32.mrf.mxu1  ;;  %v5507_v43 = vpop.f32.mrf.mxu0 }
 0x23a   :  { %v5509_v3 = vpop.f32.mrf.mxu1  ;;  %3821 = vmatmul.mubr.msk.f32.gmra.mxu1 %vm739_vm2, %v3885_v57  ;;  %v3546_v6 = vpop.f32.mrf.mxu0  ;;  %v3892_v57 = vld [vmem:[%s5700_s1 + $0x130] sm:$0xff]  ;;  %s3917_s1 = smov [#allocation2]  }
 0x23b   :  { %3823 = vmatprep.mubr.msk.f32.mxu1 %vm3916_vm1, %v3915_v14  ;;  %s2529_s10 = sshll.u32 %s3917_s1, 4  ;;  %s2530_s10 = int_to_ptr.vmem [resolvable:$true] %s2529_s10 }
 0x23c   :  { %v3366_v61 = vpop.f32.mrf.mxu1  ;;  %v5517_v58 = vpop.f32.mrf.mxu0  ;;  %s3893_s11 = scalar_lea.vmem %s2530_s10, 6656  ;;  %p3898_p1 = scmp.lt.s32.totalorder %s2530_s10, %s2530_s10 }
 0x23d   :  { %p3894_p0 = scmp.ne.s32.totalorder %s2530_s10, %s3893_s11  ;;  %p3899_p2 = scmp.lt.s32.totalorder %s3893_s11, %s3893_s11 }
 0x23e   :  { %v5519_v13 = vpop.f32.mrf.mxu1  ;;  %3824 = vmatmul.mubr.msk.f32.gmra.mxu1 %vm739_vm2, %v3886_v8  ;;  %v3549_v40 = vpop.f32.mrf.mxu0 }
 0x23f   :  { %3826 = vmatprep.mubr.msk.f32.mxu1 %vm3916_vm1, %v3915_v14  ;;  %v1470_v40 = vadd.f32 %v5252_v0, %v5459_v28  ;;  %p3900_p3 = por %p3899_p2, %p3898_p1 }
 0x240   :  { %v3369_v24 = vpop.f32.mrf.mxu1  ;;  %v5527_v33 = vpop.f32.mrf.mxu0 }
 0x241   :  { %p3901_p4 = pnand %p3900_p3, %p3894_p0 }
 0x242   :  { %v5529_v34 = vpop.f32.mrf.mxu1  ;;  %3827 = vmatmul.mubr.msk.f32.gmra.mxu1 %vm739_vm2, %v3887_v62  ;;  %v3552_v17 = vpop.f32.mrf.mxu0 }
 0x243   :  { %3829 = vmatprep.mubr.msk.f32.mxu1 %vm3916_vm1, %v3915_v14 }
 0x244   :  { %v3372_v4 = vpop.f32.mrf.mxu1  ;;  %v5537_v2 = vpop.f32.mrf.mxu0 }
 0x246   :  { %v5539_v37 = vpop.f32.mrf.mxu1  ;;  %3830 = vmatmul.mubr.msk.f32.gmra.mxu1 %vm739_vm2, %v3888_v35  ;;  %v3555_v30 = vpop.f32.mrf.mxu0  ;;  %v1475_v35 = vadd.f32 %v5264_v10, %v5469_v51  ;;  %v1485_v10 = vadd.f32 %v5288_v18, %v5489_v59  ;;  %v1495_v18 = vadd.f32 %v5311_v56, %v5509_v3  ;;  %v1505_v56 = vadd.f32 %v5339_v7, %v5529_v34 }
 0x247   :  { %3832 = vmatprep.mubr.msk.f32.mxu1 %vm3916_vm1, %v3915_v14 }
 0x248   :  { %v3375_v45 = vpop.f32.mrf.mxu1  ;;  %v5547_v11 = vpop.f32.mrf.mxu0 }
 0x24a   :  { %v5549_v5 = vpop.f32.mrf.mxu1  ;;  %3833 = vmatmul.mubr.msk.f32.gmra.mxu1 %vm739_vm2, %v3889_v20  ;;  %v3558_v22 = vpop.f32.mrf.mxu0 }
 0x24b   :  { %3835 = vmatprep.mubr.msk.f32.mxu1 %vm3916_vm1, %v3915_v14  ;;  %v1515_v7 = vadd.f32 %v5375_v29, %v5549_v5 }
 0x24c   :  { %v3378_v36 = vpop.f32.mrf.mxu1  ;;  %v5557_v26 = vpop.f32.mrf.mxu0 }
 0x24e   :  { %v5559_v1 = vpop.f32.mrf.mxu1  ;;  %3836 = vmatmul.mubr.msk.f32.gmra.mxu1 %vm739_vm2, %v3890_v55  ;;  %v3636_v19 = vpop.f32.mrf.mxu0  ;;  %v1480_v55 = vadd.f32 %v5276_v32, %v5479_v27  ;;  %v1490_v32 = vadd.f32 %v5299_v49, %v5499_v16  ;;  %v1500_v49 = vadd.f32 %v5325_v42, %v5519_v13  ;;  %v1510_v42 = vadd.f32 %v5357_v38, %v5539_v37 }
 0x24f   :  { %3838 = vmatprep.mubr.msk.f32.mxu1 %vm3916_vm1, %v3915_v14  ;;  %v1520_v38 = vadd.f32 %v5389_v9, %v5559_v1 }
 0x250   :  { %v3381_v41 = vpop.f32.mrf.mxu1  ;;  %v5567_v23 = vpop.f32.mrf.mxu0 }
 0x252   :  { %v5569_v47 = vpop.f32.mrf.mxu1  ;;  %3839 = vmatmul.mubr.msk.f32.gmra.mxu1 %vm739_vm2, %v3891_v12  ;;  %v3639_v50 = vpop.f32.mrf.mxu0 }
 0x253   :  { %3841 = vmatprep.mubr.msk.f32.mxu1 %vm3916_vm1, %v3915_v14  ;;  %v1525_v29 = vadd.f32 %v5403_v15, %v5569_v47 }
 0x254   :  { %v3384_v31 = vpop.f32.mrf.mxu1  ;;  %v5577_v63 = vpop.f32.mrf.mxu0 }
 0x256   :  { %v5579_v44 = vpop.f32.mrf.mxu1  ;;  %3842 = vmatmul.mubr.msk.f32.gmra.mxu1 %vm739_vm2, %v3892_v57  ;;  %v3642_v6 = vpop.f32.mrf.mxu0 }
 0x257   :  { %v1530_v9 = vadd.f32 %v5416_v46, %v5579_v44 }
 0x258   :  { %v3387_v61 = vpop.f32.mrf.mxu1  ;;  %v5585_v8 = vpop.f32.mrf.mxu0 }
 0x25a   :  { %v1599_v24 = vpop.f32.mrf.mxu1  ;;  %v3645_v14 = vpop.f32.mrf.mxu0 }
 0x25b   :  { %v1663_v62 = vadd.f32 %v1599_v24, %v1470_v40 }
 0x25c   :  { %v3465_v17 = vpop.f32.mrf.mxu1  ;;  %v5589_v4 = vpop.f32.mrf.mxu0 }
 0x25d   :  { %1677 = vst [vmem:[#allocation2 + $0x68] sm:$0xff] %v1663_v62 }
 0x25e   :  { %v1604_v30 = vpop.f32.mrf.mxu1  ;;  %v3648_v45 = vpop.f32.mrf.mxu0 }
 0x25f   :  { %v1664_v20 = vadd.f32 %v1604_v30, %v1475_v35 }
 0x260   :  { %v3468_v22 = vpop.f32.mrf.mxu1  ;;  %v5593_v36 = vpop.f32.mrf.mxu0 }
 0x261   :  { %1678 = vst [vmem:[#allocation2 + $0x70] sm:$0xff] %v1664_v20 }
 0x262   :  { %v1609_v0 = vpop.f32.mrf.mxu1  ;;  %v3651_v28 = vpop.f32.mrf.mxu0 }
 0x263   :  { %v1665_v19 = vadd.f32 %v1609_v0, %v1480_v55 }
 0x264   :  { %v3471_v41 = vpop.f32.mrf.mxu1  ;;  %v5597_v12 = vpop.f32.mrf.mxu0 }
 0x265   :  { %1679 = vst [vmem:[#allocation2 + $0x78] sm:$0xff] %v1665_v19 }
 0x266   :  { %v1614_v51 = vpop.f32.mrf.mxu1  ;;  %v3654_v50 = vpop.f32.mrf.mxu0 }
 0x267   :  { %v1666_v31 = vadd.f32 %v1614_v51, %v1485_v10 }
 0x268   :  { %v3474_v57 = vpop.f32.mrf.mxu1  ;;  %v5601_v6 = vpop.f32.mrf.mxu0 }
 0x269   :  { %1680 = vst [vmem:[#allocation2 + $0x80] sm:$0xff] %v1666_v31 }
 0x26a   :  { %v1619_v27 = vpop.f32.mrf.mxu1  ;;  %v3657_v61 = vpop.f32.mrf.mxu0 }
 0x26b   :  { %v1667_v40 = vadd.f32 %v1619_v27, %v1490_v32 }
 0x26c   :  { %v3477_v24 = vpop.f32.mrf.mxu1  ;;  %v5605_v14 = vpop.f32.mrf.mxu0 }
 0x26d   :  { %1681 = vst [vmem:[#allocation2 + $0x88] sm:$0xff] %v1667_v40 }
 0x26e   :  { %v1624_v59 = vpop.f32.mrf.mxu1  ;;  %v3660_v62 = vpop.f32.mrf.mxu0 }
 0x26f   :  { %v1668_v17 = vadd.f32 %v1624_v59, %v1495_v18 }
 0x270   :  { %v3480_v35 = vpop.f32.mrf.mxu1  ;;  %v5609_v30 = vpop.f32.mrf.mxu0 }
 0x271   :  { %1682 = vst [vmem:[#allocation2 + $0x90] sm:$0xff] %v1668_v17 }
 0x272   :  { %v1629_v16 = vpop.f32.mrf.mxu1  ;;  %v3663_v45 = vpop.f32.mrf.mxu0 }
 0x273   :  { %v1669_v20 = vadd.f32 %v1629_v16, %v1500_v49 }
 0x274   :  { %v3483_v22 = vpop.f32.mrf.mxu1  ;;  %v5613_v55 = vpop.f32.mrf.mxu0 }
 0x275   :  { %1683 = vst [vmem:[#allocation2 + $0x98] sm:$0xff] %v1669_v20 }
 0x276   :  { %v1634_v3 = vpop.f32.mrf.mxu1  ;;  %v3666_v0 = vpop.f32.mrf.mxu0 }
 0x277   :  { %v1670_v28 = vadd.f32 %v1634_v3, %v1505_v56 }
 0x278   :  { %v3486_v19 = vpop.f32.mrf.mxu1  ;;  %v5617_v41 = vpop.f32.mrf.mxu0 }
 0x279   :  { %1684 = vst [vmem:[#allocation2 + $0xa0] sm:$0xff] %v1670_v28 }
 0x27a   :  { %v1639_v13 = vpop.f32.mrf.mxu1  ;;  %v3669_v10 = vpop.f32.mrf.mxu0 }
 0x27b   :  { %v1671_v51 = vadd.f32 %v1639_v13, %v1510_v42 }
 0x27c   :  { %v3489_v50 = vpop.f32.mrf.mxu1  ;;  %v5621_v31 = vpop.f32.mrf.mxu0 }
 0x27d   :  { %1685 = vst [vmem:[#allocation2 + $0xa8] sm:$0xff] %v1671_v51 }
 0x27e   :  { %v1644_v34 = vpop.f32.mrf.mxu1  ;;  %v3672_v57 = vpop.f32.mrf.mxu0 }
 0x27f   :  { %v1672_v32 = vadd.f32 %v1644_v34, %v1515_v7 }
 0x280   :  { %v3492_v27 = vpop.f32.mrf.mxu1  ;;  %v5625_v61 = vpop.f32.mrf.mxu0 }
 0x281   :  { %1686 = vst [vmem:[#allocation2 + $0xb0] sm:$0xff] %v1672_v32 }
 0x282   :  { %v1649_v37 = vpop.f32.mrf.mxu1  ;;  %v3750_v40 = vpop.f32.mrf.mxu0 }
 0x283   :  { %v1673_v24 = vadd.f32 %v1649_v37, %v1520_v38 }
 0x284   :  { %v3495_v18 = vpop.f32.mrf.mxu1  ;;  %v5629_v59 = vpop.f32.mrf.mxu0 }
 0x285   :  { %1687 = vst [vmem:[#allocation2 + $0xb8] sm:$0xff] %v1673_v24 }
 0x286   :  { %v1654_v5 = vpop.f32.mrf.mxu1  ;;  %v3753_v62 = vpop.f32.mrf.mxu0 }
 0x287   :  { %v1674_v17 = vadd.f32 %v1654_v5, %v1525_v29 }
 0x288   :  { %v3498_v35 = vpop.f32.mrf.mxu1  ;;  %v5633_v49 = vpop.f32.mrf.mxu0 }
 0x289   :  { %1688 = vst [vmem:[#allocation2 + $0xc0] sm:$0xff] %v1674_v17 }
 0x28a   :  { %v1659_v1 = vpop.f32.mrf.mxu1  ;;  %v3756_v16 = vpop.f32.mrf.mxu0 }
 0x28b   :  { %v1675_v45 = vadd.f32 %v1659_v1, %v1530_v9 }
 0x28c   :  { %v3501_v20 = vpop.f32.mrf.mxu1  ;;  %v5637_v22 = vpop.f32.mrf.mxu0 }
 0x28d   :  { %1689 = vst [vmem:[#allocation2 + $0xc8] sm:$0xff] %v1675_v45 }
 0x28e   :  { %v1886_v56 = vpop.f32.mrf.mxu1  ;;  %v3759_v15 = vpop.f32.mrf.mxu0 }
 0x28f   :  { %v1887_v47 = vadd.f32 %v1886_v56, %v5426_v52 }
 0x290   :  { %v3579_v3 = vpop.f32.mrf.mxu1 }
 0x291   :  { %v2080_v0 = vadd.f32 %v5557_v26, %v1887_v47 }
 0x292   :  { %v1891_v28 = vpop.f32.mrf.mxu1 }
 0x293   :  { %2094 = vst [vmem:[#allocation2 + $0xd0] sm:$0xff] %v2080_v0  ;;  %v1892_v19 = vadd.f32 %v1891_v28, %v5436_v21 }
 0x294   :  { %v3582_v46 = vpop.f32.mrf.mxu1 }
 0x295   :  { %v2081_v44 = vadd.f32 %v5567_v23, %v1892_v19  ;;  %v5643_v42 = vpop.f32.mrf.mxu0 }
 0x296   :  { %v1896_v13 = vpop.f32.mrf.mxu1 }
 0x297   :  { %2095 = vst [vmem:[#allocation2 + $0xd8] sm:$0xff] %v2081_v44  ;;  %v1897_v10 = vadd.f32 %v1896_v13, %v5446_v25  ;;  %v3762_v51 = vpop.f32.mrf.mxu0 }
 0x298   :  { %v3585_v50 = vpop.f32.mrf.mxu1 }
 0x299   :  { %v2082_v52 = vadd.f32 %v5577_v63, %v1897_v10  ;;  %v5647_v7 = vpop.f32.mrf.mxu0 }
 0x29a   :  { %v1901_v26 = vpop.f32.mrf.mxu1 }
 0x29b   :  { %2096 = vst [vmem:[#allocation2 + $0xe0] sm:$0xff] %v2082_v52  ;;  %v1902_v34 = vadd.f32 %v1901_v26, %v5456_v39  ;;  %v3765_v21 = vpop.f32.mrf.mxu0 }
 0x29c   :  { %v3588_v57 = vpop.f32.mrf.mxu1 }
 0x29d   :  { %v2083_v23 = vadd.f32 %v5585_v8, %v1902_v34  ;;  %v5651_v32 = vpop.f32.mrf.mxu0 }
 0x29e   :  { %v1906_v27 = vpop.f32.mrf.mxu1 }
 0x29f   :  { %2097 = vst [vmem:[#allocation2 + $0xe8] sm:$0xff] %v2083_v23  ;;  %v1907_v25 = vadd.f32 %v1906_v27, %v5467_v48  ;;  %v3768_v38 = vpop.f32.mrf.mxu0 }
 0x2a0   :  { %v3591_v37 = vpop.f32.mrf.mxu1 }
 0x2a1   :  { %v2084_v63 = vadd.f32 %v5589_v4, %v1907_v25  ;;  %v5655_v40 = vpop.f32.mrf.mxu0 }
 0x2a2   :  { %v1911_v24 = vpop.f32.mrf.mxu1 }
 0x2a3   :  { %2098 = vst [vmem:[#allocation2 + $0xf0] sm:$0xff] %v2084_v63  ;;  %v1912_v39 = vadd.f32 %v1911_v24, %v5477_v53  ;;  %v3771_v18 = vpop.f32.mrf.mxu0 }
 0x2a4   :  { %v3594_v29 = vpop.f32.mrf.mxu1 }
 0x2a5   :  { %v2085_v8 = vadd.f32 %v5593_v36, %v1912_v39  ;;  %v5659_v5 = vpop.f32.mrf.mxu0 }
 0x2a6   :  { %v1916_v62 = vpop.f32.mrf.mxu1 }
 0x2a7   :  { %2099 = vst [vmem:[#allocation2 + $0xf8] sm:$0xff] %v2085_v8  ;;  %v1917_v48 = vadd.f32 %v1916_v62, %v5487_v54  ;;  %v3774_v17 = vpop.f32.mrf.mxu0 }
 0x2a8   :  { %v3597_v35 = vpop.f32.mrf.mxu1 }
 0x2a9   :  { %v2086_v4 = vadd.f32 %v5597_v12, %v1917_v48  ;;  %v5663_v9 = vpop.f32.mrf.mxu0 }
 0x2aa   :  { %v1921_v1 = vpop.f32.mrf.mxu1 }
 0x2ab   :  { %2100 = vst [vmem:[#allocation2 + $0x100] sm:$0xff] %v2086_v4  ;;  %v1922_v53 = vadd.f32 %v1921_v1, %v5497_v60  ;;  %v3777_v16 = vpop.f32.mrf.mxu0 }
 0x2ac   :  { %v3600_v45 = vpop.f32.mrf.mxu1 }
 0x2ad   :  { %v2087_v36 = vadd.f32 %v5601_v6, %v1922_v53  ;;  %v5667_v20 = vpop.f32.mrf.mxu0 }
 0x2ae   :  { %v1926_v56 = vpop.f32.mrf.mxu1 }
 0x2af   :  { %2101 = vst [vmem:[#allocation2 + $0x108] sm:$0xff] %v2087_v36  ;;  %v1927_v54 = vadd.f32 %v1926_v56, %v5507_v43  ;;  %v3780_v15 = vpop.f32.mrf.mxu0 }
 0x2b0   :  { %v3603_v47 = vpop.f32.mrf.mxu1 }
 0x2b1   :  { %v2088_v12 = vadd.f32 %v5605_v14, %v1927_v54  ;;  %v5671_v3 = vpop.f32.mrf.mxu0 }
 0x2b2   :  { %v1931_v0 = vpop.f32.mrf.mxu1 }
 0x2b3   :  { %2102 = vst [vmem:[#allocation2 + $0x110] sm:$0xff] %v2088_v12  ;;  %v1932_v60 = vadd.f32 %v1931_v0, %v5517_v58  ;;  %v3783_v28 = vpop.f32.mrf.mxu0 }
 0x2b4   :  { %v3606_v19 = vpop.f32.mrf.mxu1 }
 0x2b5   :  { %v2089_v6 = vadd.f32 %v5609_v30, %v1932_v60  ;;  %v5675_v46 = vpop.f32.mrf.mxu0 }
 0x2b6   :  { %v1936_v44 = vpop.f32.mrf.mxu1 }
 0x2b7   :  { %2103 = vst [vmem:[#allocation2 + $0x118] sm:$0xff] %v2089_v6  ;;  %v1937_v43 = vadd.f32 %v1936_v44, %v5527_v33  ;;  %v3786_v13 = vpop.f32.mrf.mxu0 }
 0x2b8   :  { %v3609_v10 = vpop.f32.mrf.mxu1 }
 0x2b9   :  { %v2090_v14 = vadd.f32 %v5613_v55, %v1937_v43  ;;  %v2433_v51 = vpop.f32.mrf.mxu0 }
 0x2ba   :  { %v1941_v50 = vpop.f32.mrf.mxu1 }
 0x2bb   :  { %2104 = vst [vmem:[#allocation2 + $0x120] sm:$0xff] %v2090_v14  ;;  %v1942_v52 = vadd.f32 %v1941_v50, %v5537_v2  ;;  %v3807_v58 = vpop.f32.mrf.mxu0 }
 0x2bc   :  { %v3612_v26 = vpop.f32.mrf.mxu1 }
 0x2bd   :  { %v2091_v34 = vadd.f32 %v5617_v41, %v1942_v52  ;;  %v2438_v30 = vpop.f32.mrf.mxu0 }
 0x2be   :  { %v1946_v21 = vpop.f32.mrf.mxu1 }
 0x2bf   :  { %2105 = vst [vmem:[#allocation2 + $0x128] sm:$0xff] %v2091_v34  ;;  %v1947_v57 = vadd.f32 %v1946_v21, %v5547_v11  ;;  %v3810_v23 = vpop.f32.mrf.mxu0 }
 0x2c0   :  { %v3615_v33 = vpop.f32.mrf.mxu1 }
 0x2c1   :  { %v2092_v27 = vadd.f32 %v5621_v31, %v1947_v57  ;;  %v2443_v25 = vpop.f32.mrf.mxu0 }
 0x2c2   :  { %v2173_v55 = vpop.f32.mrf.mxu1 }
 0x2c3   :  { %2106 = vst [vmem:[#allocation2 + $0x130] sm:$0xff] %v2092_v27  ;;  %v2304_v38 = vadd.f32 %v5625_v61, %v2173_v55  ;;  %v3813_v37 = vpop.f32.mrf.mxu0 }
 0x2c4   :  { %v3693_v2 = vpop.f32.mrf.mxu1 }
 0x2c5   :  { %v2497_v63 = vadd.f32 %v2433_v51, %v2304_v38  ;;  %v2448_v24 = vpop.f32.mrf.mxu0 }
 0x2c6   :  { %v2178_v39 = vpop.f32.mrf.mxu1 }
 0x2c7   :  { %v2309_v41 = vadd.f32 %v5629_v59, %v2178_v39  ;;  %2511 = vst [vmem:[#allocation2 + $0x138] sm:$0xff] %v2497_v63  ;;  %v3816_v18 = vpop.f32.mrf.mxu0 }
 0x2c8   :  { %v3696_v29 = vpop.f32.mrf.mxu1 }
 0x2c9   :  { %v2498_v11 = vadd.f32 %v2438_v30, %v2309_v41 }
 0x2ca   :  { %v2183_v8 = vpop.f32.mrf.mxu1 }
 0x2cb   :  { %v2314_v62 = vadd.f32 %v5633_v49, %v2183_v8  ;;  %2512 = vst [vmem:[#allocation2 + $0x140] sm:$0xff] %v2498_v11 }
 0x2cc   :  { %v3699_v31 = vpop.f32.mrf.mxu1 }
 0x2cd   :  { %v2499_v48 = vadd.f32 %v2443_v25, %v2314_v62 }
 0x2ce   :  { %v2188_v17 = vpop.f32.mrf.mxu1 }
 0x2cf   :  { %v2319_v61 = vadd.f32 %v5637_v22, %v2188_v17  ;;  %2513 = vst [vmem:[#allocation2 + $0x148] sm:$0xff] %v2499_v48 }
 0x2d0   :  { %v3702_v35 = vpop.f32.mrf.mxu1 }
 0x2d1   :  { %v2500_v4 = vadd.f32 %v2448_v24, %v2319_v61 }
 0x2d2   :  { %v2193_v1 = vpop.f32.mrf.mxu1 }
 0x2d3   :  { %2514 = vst [vmem:[#allocation2 + $0x150] sm:$0xff] %v2500_v4  ;;  %v2324_v44 = vadd.f32 %v5643_v42, %v2193_v1 }
 0x2d4   :  { %v3705_v53 = vpop.f32.mrf.mxu1 }
 0x2d6   :  { %v2198_v59 = vpop.f32.mrf.mxu1 }
 0x2d7   :  { %v2329_v14 = vadd.f32 %v5647_v7, %v2198_v59 }
 0x2d8   :  { %v3708_v16 = vpop.f32.mrf.mxu1 }
 0x2da   :  { %v2203_v45 = vpop.f32.mrf.mxu1 }
 0x2db   :  { %v2334_v58 = vadd.f32 %v5651_v32, %v2203_v45 }
 0x2dc   :  { %v3711_v36 = vpop.f32.mrf.mxu1 }
 0x2de   :  { %v2208_v56 = vpop.f32.mrf.mxu1 }
 0x2df   :  { %v2339_v21 = vadd.f32 %v5655_v40, %v2208_v56 }
 0x2e0   :  { %v3714_v54 = vpop.f32.mrf.mxu1 }
 0x2e2   :  { %v2213_v15 = vpop.f32.mrf.mxu1 }
 0x2e3   :  { %v2344_v33 = vadd.f32 %v5659_v5, %v2213_v15 }
 0x2e4   :  { %v3717_v49 = vpop.f32.mrf.mxu1 }
 0x2e6   :  { %v2218_v47 = vpop.f32.mrf.mxu1 }
 0x2e7   :  { %v2349_v55 = vadd.f32 %v5663_v9, %v2218_v47 }
 0x2e8   :  { %v3720_v12 = vpop.f32.mrf.mxu1 }
 0x2ea   :  { %v2223_v0 = vpop.f32.mrf.mxu1 }
 0x2eb   :  { %v2354_v2 = vadd.f32 %v5667_v20, %v2223_v0 }
 0x2ec   :  { %v3723_v60 = vpop.f32.mrf.mxu1 }
 0x2ee   :  { %v2228_v28 = vpop.f32.mrf.mxu1 }
 0x2ef   :  { %v2359_v39 = vadd.f32 %v5671_v3, %v2228_v28 }
 0x2f0   :  { %v3726_v22 = vpop.f32.mrf.mxu1 }
 0x2f2   :  { %v2233_v19 = vpop.f32.mrf.mxu1 }
 0x2f3   :  { %v2364_v9 = vadd.f32 %v5675_v46, %v2233_v19 }
 0x2f4   :  { %v3729_v6 = vpop.f32.mrf.mxu1 }
 0x2f6   :  { %v2453_v43 = vpop.f32.mrf.mxu1 }
 0x2f7   :  { %v2501_v13 = vadd.f32 %v2453_v43, %v2324_v44 }
 0x2f8   :  { %v3819_v10 = vpop.f32.mrf.mxu1 }
 0x2f9   :  { %2515 = vst [vmem:[#allocation2 + $0x158] sm:$0xff] %v2501_v13 }
 0x2fa   :  { %v2458_v51 = vpop.f32.mrf.mxu1 }
 0x2fb   :  { %v2502_v50 = vadd.f32 %v2458_v51, %v2329_v14 }
 0x2fc   :  { %v3822_v52 = vpop.f32.mrf.mxu1 }
 0x2fd   :  { %2516 = vst [vmem:[#allocation2 + $0x160] sm:$0xff] %v2502_v50 }
 0x2fe   :  { %v2463_v26 = vpop.f32.mrf.mxu1 }
 0x2ff   :  { %v2503_v34 = vadd.f32 %v2463_v26, %v2334_v58 }
 0x300   :  { %v3825_v30 = vpop.f32.mrf.mxu1 }
 0x301   :  { %2517 = vst [vmem:[#allocation2 + $0x168] sm:$0xff] %v2503_v34 }
 0x302   :  { %v2468_v57 = vpop.f32.mrf.mxu1 }
 0x303   :  { %v2504_v42 = vadd.f32 %v2468_v57, %v2339_v21 }
 0x304   :  { %v3828_v23 = vpop.f32.mrf.mxu1 }
 0x305   :  { %2518 = vst [vmem:[#allocation2 + $0x170] sm:$0xff] %v2504_v42 }
 0x306   :  { %v2473_v7 = vpop.f32.mrf.mxu1 }
 0x307   :  { %v2505_v27 = vadd.f32 %v2473_v7, %v2344_v33 }
 0x308   :  { %v3831_v25 = vpop.f32.mrf.mxu1 }
 0x309   :  { %2519 = vst [vmem:[#allocation2 + $0x178] sm:$0xff] %v2505_v27 }
 0x30a   :  { %v2478_v32 = vpop.f32.mrf.mxu1 }
 0x30b   :  { %v2506_v38 = vadd.f32 %v2478_v32, %v2349_v55 }
 0x30c   :  { %v3834_v37 = vpop.f32.mrf.mxu1 }
 0x30d   :  { %2520 = vst [vmem:[#allocation2 + $0x180] sm:$0xff] %v2506_v38 }
 0x30e   :  { %v2483_v40 = vpop.f32.mrf.mxu1 }
 0x30f   :  { %v2507_v63 = vadd.f32 %v2483_v40, %v2354_v2 }
 0x310   :  { %v3837_v24 = vpop.f32.mrf.mxu1 }
 0x311   :  { %2521 = vst [vmem:[#allocation2 + $0x188] sm:$0xff] %v2507_v63 }
 0x312   :  { %v2488_v5 = vpop.f32.mrf.mxu1 }
 0x313   :  { %v2508_v41 = vadd.f32 %v2488_v5, %v2359_v39 }
 0x314   :  { %v3840_v18 = vpop.f32.mrf.mxu1 }
 0x315   :  { %2522 = vst [vmem:[#allocation2 + $0x190] sm:$0xff] %v2508_v41 }
 0x316   :  { %v2493_v29 = vpop.f32.mrf.mxu1 }
 0x317   :  { %v2509_v11 = vadd.f32 %v2493_v29, %v2364_v9 }
 0x318   :  { %v3843_v8 = vpop.f32.mrf.mxu1 }
 0x319   :  { %2523 = vst [vmem:[#allocation2 + $0x198] sm:$0xff] %v2509_v11 }
 0x31a   :  { %3904 = shalt.err (!%p3901_p4)
}
 0x31b   :  { %s3918_s12 = smov 128   ;;  %s3919_s13 = smov 8  }
 0x31c   :  { %2535 = dma.vmem_to_hbm [thread:$0]  %s2530_s10, 6656, %s5702_s3, [#allocation3], %s3918_s12, %s3918_s12, %s3919_s13  }
 0x31d   :  { %3913 = dma.done.wait [#allocation3], 6656  }
 0x31e   :  { %3914 = vsyncadd [#allocation3], 4294960640 }
 0x31f   :  { %2539 = vsyncpa [#allocation3], 1 }

</bundles_post_ra>
